<compile_context>
chip_gen: v7x
topology: tpu7x:2x2x1
jax: 0.10.0
libtpu: 0.0.40
codegen_flags: <defaults>
</compile_context>

<pallas_src>
import functools
from typing import NamedTuple

import jax
import jax.numpy as jnp
from jax.experimental import pallas as pl
from jax.experimental.pallas import tpu as pltpu


class LayerCfg(NamedTuple):
    c_in: int
    c_out: int
    kernel_size: int
    stride: int
    padding: int
    dilation: int
    l_in: int
    l_out: int
    l_buf: int  # padded length, rounded up to a multiple of stride


def _conv_out_len(l_in, k, s, p, d):
    return (l_in + 2 * p - d * (k - 1) - 1) // s + 1


def _round_up(x, m):
    return (x + m - 1) // m * m


def build_cfgs(channel_ls, kernel_size, stride, padding_ls, dilation_ls, pad_to):
    cfgs = []
    l_in = pad_to
    for i in range(len(channel_ls) - 1):
        s, p, d = stride[i], padding_ls[i], dilation_ls[i]
        l_out = _conv_out_len(l_in, kernel_size, s, p, d)
        l_buf = _round_up(l_in + 2 * p, s)
        cfgs.append(LayerCfg(channel_ls[i], channel_ls[i + 1], kernel_size,
                             s, p, d, l_in, l_out, l_buf))
        l_in = l_out
    return cfgs


def _backbone_kernel(*refs, cfgs, tile_b):
    n_layers = len(cfgs)
    x_ref = refs[0]
    w_refs = [refs[1 + 2 * i] for i in range(n_layers)]       # (K, C_in, C_out) bf16
    shift_refs = [refs[2 + 2 * i] for i in range(n_layers)]   # (1, 1, C_out) f32
    out_ref = refs[1 + 2 * n_layers]
    buf_refs = list(refs[2 + 2 * n_layers:])

    # Zero the padding / stride-round-up halo rows UNCONDITIONALLY every grid
    # step.  (A one-shot @pl.when(program_id==0) init is wrong on v7x megacore:
    # the second TensorCore has its own scratch and never executes step 0.)
    for cfg, buf in zip(cfgs, buf_refs):
        if cfg.padding > 0:
            buf[0:cfg.padding, :, :] = jnp.zeros(
                (cfg.padding, tile_b, cfg.c_in), jnp.float32)
        tail = cfg.l_buf - (cfg.padding + cfg.l_in)
        if tail > 0:
            buf[cfg.padding + cfg.l_in:cfg.l_buf, :, :] = jnp.zeros(
                (tail, tile_b, cfg.c_in), jnp.float32)

    # Stage the (L0, TILE_B, C0) input tile into layer 0's padded buffer.
    cfg0 = cfgs[0]
    buf_refs[0][cfg0.padding:cfg0.padding + cfg0.l_in, :, :] = (
        x_ref[...].astype(jnp.float32))

    for i, cfg in enumerate(cfgs):
        v = buf_refs[i][...]                                   # (L_buf, TB, C_in) f32
        if cfg.stride > 1:
            # Free leading-dim reshape: phase-decompose the length axis.
            v = v.reshape(cfg.l_buf // cfg.stride, cfg.stride, tile_b, cfg.c_in)

        # Per-tap accumulated matmuls (no lane-axis concat): y = sum_k tap_k @ W_k.
        # bf16 operands (MXU-native), f32 accumulation.
        acc = None
        for k in range(cfg.kernel_size):
            pos = k * cfg.dilation
            if cfg.stride > 1:
                q, r = divmod(pos, cfg.stride)
                tap = v[q:q + cfg.l_out, r]                    # (L_out, TB, C_in)
            else:
                tap = v[pos:pos + cfg.l_out]
            lhs = tap.reshape(cfg.l_out * tile_b, cfg.c_in).astype(jnp.bfloat16)
            part = jnp.dot(lhs, w_refs[i][k],
                           preferred_element_type=jnp.float32)
            acc = part if acc is None else acc + part
        y = acc.reshape(cfg.l_out, tile_b, cfg.c_out)

        # BN scale folded into the weights on the host; only shift + ReLU here.
        y = jnp.maximum(y + shift_refs[i][...], 0.0)

        if i + 1 < n_layers:
            nxt = cfgs[i + 1]
            buf_refs[i + 1][nxt.padding:nxt.padding + cfg.l_out, :, :] = y
        else:
            out_ref[...] = y.astype(out_ref.dtype)


def backbone_forward(x, layer_params, cfgs, *, tile_b=16):
    """x: (B, L0, C0) channels-last (the PyTorch `x.shape[2] == 4` path)."""
    batch = x.shape[0]
    assert batch % tile_b == 0, "batch must be divisible by the batch tile"
    assert tile_b % 8 == 0, "batch tile must be a multiple of 8 sublanes"
    cfg0, cfg_last = cfgs[0], cfgs[-1]

    # Host-side prep: fold conv bias + BN (inference) into shift, fold the BN
    # scale directly into the conv weight, and lay the weight out as
    # (K, C_in, C_out) in bf16 so the kernel does per-tap matmuls.
    flat_inputs = []
    in_specs = [pl.BlockSpec((cfg0.l_in, tile_b, cfg0.c_in),
                             lambda i: (0, i, 0))]
    flops = 0
    for cfg, p in zip(cfgs, layer_params):
        inv_std = 1.0 / jnp.sqrt(p["var"] + 1e-5)
        scale = (p["gamma"] * inv_std).astype(jnp.float32)               # (C_out,)
        shift = (p["beta"] + scale * (p["b"] - p["mean"])).astype(jnp.float32)
        w_kic = (jnp.transpose(p["w"], (2, 1, 0)).astype(jnp.float32)
                 * scale[None, None, :]).astype(jnp.bfloat16)            # (K,Ci,Co)
        flat_inputs += [w_kic, shift.reshape(1, 1, cfg.c_out)]
        in_specs += [
            pl.BlockSpec((cfg.kernel_size, cfg.c_in, cfg.c_out),
                         lambda i: (0, 0, 0)),
            pl.BlockSpec((1, 1, cfg.c_out), lambda i: (0, 0, 0)),
        ]
        flops += 2 * batch * cfg.l_out * cfg.kernel_size * cfg.c_in * cfg.c_out

    # (B, L, C) -> (L, B, C): channels on lanes, batch tile on sublanes.
    x_lbc = jnp.transpose(x, (1, 0, 2)).astype(jnp.float32)

    out_spec = pl.BlockSpec((cfg_last.l_out, tile_b, cfg_last.c_out),
                            lambda i: (0, i, 0))
    scratch = [pltpu.VMEM((cfg.l_buf, tile_b, cfg.c_in), jnp.float32)
               for cfg in cfgs]

    bytes_accessed = (int(x_lbc.size) * 4
                      + sum(int(a.size) * a.dtype.itemsize for a in flat_inputs)
                      + cfg_last.l_out * batch * cfg_last.c_out * 4)

    kernel = functools.partial(_backbone_kernel, cfgs=tuple(cfgs), tile_b=tile_b)
    out_lbc = pl.pallas_call(
        kernel,
        out_shape=jax.ShapeDtypeStruct(
            (cfg_last.l_out, batch, cfg_last.c_out), jnp.float32),
        grid=(batch // tile_b,),
        in_specs=in_specs,
        out_specs=out_spec,
        scratch_shapes=scratch,
        compiler_params=pltpu.CompilerParams(
            dimension_semantics=("parallel",)),
        cost_estimate=pl.CostEstimate(
            flops=flops, transcendentals=0, bytes_accessed=bytes_accessed),
    )(x_lbc, *flat_inputs)

    # (L_last, B, C_last) -> (B, C_last, L_last): PyTorch conv layout.
    # Kept outside the kernel: writing L_last=8 on lanes would force masked
    # partial stores; this external transpose of a tiny tensor is negligible.
    return jnp.transpose(out_lbc, (1, 2, 0))


def init_params(key, cfgs):
    params = []
    for cfg in cfgs:
        key, kw, kb, kg, kbe, km, kv = jax.random.split(key, 7)
        fan_in = float(cfg.c_in * cfg.kernel_size)
        w = jax.random.normal(kw, (cfg.c_out, cfg.c_in, cfg.kernel_size),
                              jnp.float32) / jnp.sqrt(fan_in)
        b = 0.1 * jax.random.normal(kb, (cfg.c_out,), jnp.float32)
        gamma = jax.random.uniform(kg, (cfg.c_out,), jnp.float32, 0.5, 1.5)
        beta = 0.1 * jax.random.normal(kbe, (cfg.c_out,), jnp.float32)
        mean = 0.1 * jax.random.normal(km, (cfg.c_out,), jnp.float32)
        var = jax.random.uniform(kv, (cfg.c_out,), jnp.float32, 0.5, 1.5)
        params.append(dict(w=w, b=b, gamma=gamma, beta=beta, mean=mean, var=var))
    return params


def ref_forward(x, layer_params, cfgs):
    """Pure-JAX reference mirroring the PyTorch module (eval-mode BN)."""
    h = jnp.transpose(x, (0, 2, 1)).astype(jnp.float32)      # (B, C0, L0)
    for cfg, p in zip(cfgs, layer_params):
        h = jax.lax.conv_general_dilated(
            h, p["w"], window_strides=(cfg.stride,),
            padding=[(cfg.padding, cfg.padding)],
            rhs_dilation=(cfg.dilation,),
            dimension_numbers=("NCH", "OIH", "NCH"),
            precision=jax.lax.Precision.HIGHEST)
        h = h + p["b"][None, :, None]
        inv = 1.0 / jnp.sqrt(p["var"] + 1e-5)
        h = (h - p["mean"][None, :, None]) * (p["gamma"] * inv)[None, :, None] \
            + p["beta"][None, :, None]
        h = jnp.maximum(h, 0.0)
    return h


if __name__ == "__main__":
    # conv_args-style config: channel_ls, kernel_size, stride, padding, dilation, pad_to
    channel_ls = [4, 32, 64, 128]
    kernel_size = 3
    stride = [2, 2, 2]
    padding_ls = [1, 1, 1]
    dilation_ls = [1, 1, 1]
    pad_to = 64          # input sequence length
    batch = 32

    cfgs = build_cfgs(channel_ls, kernel_size, stride, padding_ls,
                      dilation_ls, pad_to)

    key = jax.random.PRNGKey(0)
    kx, kp = jax.random.split(key)
    x = jax.random.normal(kx, (batch, pad_to, channel_ls[0]), jnp.float32)
    params = init_params(kp, cfgs)

    # tile_b=16 -> 2 grid steps (both v7x TensorCores get work); still one pass
    # per core on v5e/v6e with 2x taller MXU matmuls than the old tile_b=8.
    y = backbone_forward(x, params, cfgs, tile_b=16)
    y = jax.block_until_ready(y)

    y_ref = ref_forward(x, params, cfgs)
    assert y.shape == y_ref.shape == (batch, channel_ls[-1], cfgs[-1].l_out), y.shape
    err = float(jnp.max(jnp.abs(y - y_ref)))
    # Tolerance reflects bf16 MXU operands (f32 accumulation) vs. an f32
    # HIGHEST-precision reference over a 3-layer stack.
    assert jnp.allclose(y, y_ref, atol=5e-2, rtol=5e-2), f"max abs err {err}"

    print("KERNEL_OK")
</pallas_src>

<mosaic_0001>
module attributes {stable_mosaic.version = 11 : i64} {
  func.func @_backbone_kernel(%arg0: i32, %arg1: memref<64x16x4xf32, #tpu.memory_space<vmem>>, %arg2: memref<3x4x32xbf16, #tpu.memory_space<vmem>>, %arg3: memref<1x1x32xf32, #tpu.memory_space<vmem>>, %arg4: memref<3x32x64xbf16, #tpu.memory_space<vmem>>, %arg5: memref<1x1x64xf32, #tpu.memory_space<vmem>>, %arg6: memref<3x64x128xbf16, #tpu.memory_space<vmem>>, %arg7: memref<1x1x128xf32, #tpu.memory_space<vmem>>, %arg8: memref<8x16x128xf32, #tpu.memory_space<vmem>>, %arg9: memref<66x16x4xf32, #tpu.memory_space<vmem>>, %arg10: memref<34x16x32xf32, #tpu.memory_space<vmem>>, %arg11: memref<18x16x64xf32, #tpu.memory_space<vmem>>) attributes {dimension_semantics = [#tpu.dimension_semantics<parallel>], iteration_bounds = array<i64: 2>, scalar_prefetch = 0 : i64, scratch_operands = 3 : i64, tpu.core_type = #tpu.core_type<tc>, window_params = [{transform_indices = @transform_0, window_bounds = array<i64: 64, 16, 4>}, {pipeline_mode = #tpu.pipeline_mode<synchronous>, transform_indices = @transform_1, window_bounds = array<i64: 3, 4, 32>}, {pipeline_mode = #tpu.pipeline_mode<synchronous>, transform_indices = @transform_2, window_bounds = array<i64: 1, 1, 32>}, {pipeline_mode = #tpu.pipeline_mode<synchronous>, transform_indices = @transform_3, window_bounds = array<i64: 3, 32, 64>}, {pipeline_mode = #tpu.pipeline_mode<synchronous>, transform_indices = @transform_4, window_bounds = array<i64: 1, 1, 64>}, {pipeline_mode = #tpu.pipeline_mode<synchronous>, transform_indices = @transform_5, window_bounds = array<i64: 3, 64, 128>}, {pipeline_mode = #tpu.pipeline_mode<synchronous>, transform_indices = @transform_6, window_bounds = array<i64: 1, 1, 128>}, {transform_indices = @transform_7, window_bounds = array<i64: 8, 16, 128>}]} {
    %cst = arith.constant 0.000000e+00 : f32
    %0 = vector.broadcast %cst : f32 to vector<1x16x4xf32>
    %c0 = arith.constant 0 : index
    %c0_0 = arith.constant 0 : index
    %c0_1 = arith.constant 0 : index
    %1 = vector.load %arg9[%c0, %c0_0, %c0_1] : memref<66x16x4xf32, #tpu.memory_space<vmem>>, vector<1x16x4xf32>
    tpu.vector_store %arg9[%c0, %c0_0, %c0_1], %0 {strides = array<i32>} : memref<66x16x4xf32, #tpu.memory_space<vmem>>, vector<1x16x4xf32>,
    %cst_2 = arith.constant 0.000000e+00 : f32
    %2 = vector.broadcast %cst_2 : f32 to vector<1x16x4xf32>
    %c65 = arith.constant 65 : index
    %c0_3 = arith.constant 0 : index
    %c0_4 = arith.constant 0 : index
    %3 = vector.load %arg9[%c65, %c0_3, %c0_4] : memref<66x16x4xf32, #tpu.memory_space<vmem>>, vector<1x16x4xf32>
    tpu.vector_store %arg9[%c65, %c0_3, %c0_4], %2 {strides = array<i32>} : memref<66x16x4xf32, #tpu.memory_space<vmem>>, vector<1x16x4xf32>,
    %cst_5 = arith.constant 0.000000e+00 : f32
    %4 = vector.broadcast %cst_5 : f32 to vector<1x16x32xf32>
    %c0_6 = arith.constant 0 : index
    %c0_7 = arith.constant 0 : index
    %c0_8 = arith.constant 0 : index
    %5 = vector.load %arg10[%c0_6, %c0_7, %c0_8] : memref<34x16x32xf32, #tpu.memory_space<vmem>>, vector<1x16x32xf32>
    tpu.vector_store %arg10[%c0_6, %c0_7, %c0_8], %4 {strides = array<i32>} : memref<34x16x32xf32, #tpu.memory_space<vmem>>, vector<1x16x32xf32>,
    %cst_9 = arith.constant 0.000000e+00 : f32
    %6 = vector.broadcast %cst_9 : f32 to vector<1x16x32xf32>
    %c33 = arith.constant 33 : index
    %c0_10 = arith.constant 0 : index
    %c0_11 = arith.constant 0 : index
    %7 = vector.load %arg10[%c33, %c0_10, %c0_11] : memref<34x16x32xf32, #tpu.memory_space<vmem>>, vector<1x16x32xf32>
    tpu.vector_store %arg10[%c33, %c0_10, %c0_11], %6 {strides = array<i32>} : memref<34x16x32xf32, #tpu.memory_space<vmem>>, vector<1x16x32xf32>,
    %cst_12 = arith.constant 0.000000e+00 : f32
    %8 = vector.broadcast %cst_12 : f32 to vector<1x16x64xf32>
    %c0_13 = arith.constant 0 : index
    %c0_14 = arith.constant 0 : index
    %c0_15 = arith.constant 0 : index
    %9 = vector.load %arg11[%c0_13, %c0_14, %c0_15] : memref<18x16x64xf32, #tpu.memory_space<vmem>>, vector<1x16x64xf32>
    tpu.vector_store %arg11[%c0_13, %c0_14, %c0_15], %8 {strides = array<i32>} : memref<18x16x64xf32, #tpu.memory_space<vmem>>, vector<1x16x64xf32>,
    %cst_16 = arith.constant 0.000000e+00 : f32
    %10 = vector.broadcast %cst_16 : f32 to vector<1x16x64xf32>
    %c17 = arith.constant 17 : index
    %c0_17 = arith.constant 0 : index
    %c0_18 = arith.constant 0 : index
    %11 = vector.load %arg11[%c17, %c0_17, %c0_18] : memref<18x16x64xf32, #tpu.memory_space<vmem>>, vector<1x16x64xf32>
    tpu.vector_store %arg11[%c17, %c0_17, %c0_18], %10 {strides = array<i32>} : memref<18x16x64xf32, #tpu.memory_space<vmem>>, vector<1x16x64xf32>,
    %c0_19 = arith.constant 0 : index
    %c0_20 = arith.constant 0 : index
    %c0_21 = arith.constant 0 : index
    %12 = vector.load %arg1[%c0_19, %c0_20, %c0_21] : memref<64x16x4xf32, #tpu.memory_space<vmem>>, vector<64x16x4xf32>
    %c1 = arith.constant 1 : index
    %c0_22 = arith.constant 0 : index
    %c0_23 = arith.constant 0 : index
    %13 = vector.load %arg9[%c1, %c0_22, %c0_23] : memref<66x16x4xf32, #tpu.memory_space<vmem>>, vector<64x16x4xf32>
    tpu.vector_store %arg9[%c1, %c0_22, %c0_23], %12 {strides = array<i32>} : memref<66x16x4xf32, #tpu.memory_space<vmem>>, vector<64x16x4xf32>,
    %c0_24 = arith.constant 0 : index
    %c0_25 = arith.constant 0 : index
    %c0_26 = arith.constant 0 : index
    %14 = vector.load %arg9[%c0_24, %c0_25, %c0_26] : memref<66x16x4xf32, #tpu.memory_space<vmem>>, vector<66x16x4xf32>
    %15 = vector.shape_cast %14 : vector<66x16x4xf32> to vector<33x2x16x4xf32>
    %16 = vector.extract_strided_slice %15 {offsets = [0, 0, 0, 0], sizes = [32, 1, 16, 4], strides = [1, 1, 1, 1]} : vector<33x2x16x4xf32> to vector<32x1x16x4xf32>
    %17 = vector.shape_cast %16 : vector<32x1x16x4xf32> to vector<32x16x4xf32>
    %18 = vector.shape_cast %17 : vector<32x16x4xf32> to vector<512x4xf32>
    %19 = arith.truncf %18 : vector<512x4xf32> to vector<512x4xbf16>
    %c0_27 = arith.constant 0 : index
    %c0_28 = arith.constant 0 : index
    %c0_29 = arith.constant 0 : index
    %20 = vector.load %arg2[%c0_27, %c0_28, %c0_29] : memref<3x4x32xbf16, #tpu.memory_space<vmem>>, vector<1x4x32xbf16>
    %21 = vector.shape_cast %20 : vector<1x4x32xbf16> to vector<4x32xbf16>
    %cst_30 = arith.constant dense<0.000000e+00> : vector<512x32xf32>
    %22 = tpu.matmul %19, %21, %cst_30 {dimension_numbers = #tpu.dot_dimension_numbers<[1], [0], [0], [1], [0, 0, 1, 1], [], []>} : vector<512x4xbf16>, vector<4x32xbf16>, vector<512x32xf32> -> vector<512x32xf32>
    %23 = vector.extract_strided_slice %15 {offsets = [0, 1, 0, 0], sizes = [32, 1, 16, 4], strides = [1, 1, 1, 1]} : vector<33x2x16x4xf32> to vector<32x1x16x4xf32>
    %24 = vector.shape_cast %23 : vector<32x1x16x4xf32> to vector<32x16x4xf32>
    %25 = vector.shape_cast %24 : vector<32x16x4xf32> to vector<512x4xf32>
    %26 = arith.truncf %25 : vector<512x4xf32> to vector<512x4xbf16>
    %c1_31 = arith.constant 1 : index
    %c0_32 = arith.constant 0 : index
    %c0_33 = arith.constant 0 : index
    %27 = vector.load %arg2[%c1_31, %c0_32, %c0_33] : memref<3x4x32xbf16, #tpu.memory_space<vmem>>, vector<1x4x32xbf16>
    %28 = vector.shape_cast %27 : vector<1x4x32xbf16> to vector<4x32xbf16>
    %cst_34 = arith.constant dense<0.000000e+00> : vector<512x32xf32>
    %29 = tpu.matmul %26, %28, %cst_34 {dimension_numbers = #tpu.dot_dimension_numbers<[1], [0], [0], [1], [0, 0, 1, 1], [], []>} : vector<512x4xbf16>, vector<4x32xbf16>, vector<512x32xf32> -> vector<512x32xf32>
    %30 = arith.addf %22, %29 : vector<512x32xf32>
    %31 = vector.extract_strided_slice %15 {offsets = [1, 0, 0, 0], sizes = [32, 1, 16, 4], strides = [1, 1, 1, 1]} : vector<33x2x16x4xf32> to vector<32x1x16x4xf32>
    %32 = vector.shape_cast %31 : vector<32x1x16x4xf32> to vector<32x16x4xf32>
    %33 = vector.shape_cast %32 : vector<32x16x4xf32> to vector<512x4xf32>
    %34 = arith.truncf %33 : vector<512x4xf32> to vector<512x4xbf16>
    %c2 = arith.constant 2 : index
    %c0_35 = arith.constant 0 : index
    %c0_36 = arith.constant 0 : index
    %35 = vector.load %arg2[%c2, %c0_35, %c0_36] : memref<3x4x32xbf16, #tpu.memory_space<vmem>>, vector<1x4x32xbf16>
    %36 = vector.shape_cast %35 : vector<1x4x32xbf16> to vector<4x32xbf16>
    %cst_37 = arith.constant dense<0.000000e+00> : vector<512x32xf32>
    %37 = tpu.matmul %34, %36, %cst_37 {dimension_numbers = #tpu.dot_dimension_numbers<[1], [0], [0], [1], [0, 0, 1, 1], [], []>} : vector<512x4xbf16>, vector<4x32xbf16>, vector<512x32xf32> -> vector<512x32xf32>
    %38 = arith.addf %30, %37 : vector<512x32xf32>
    %39 = vector.shape_cast %38 : vector<512x32xf32> to vector<32x16x32xf32>
    %c0_38 = arith.constant 0 : index
    %c0_39 = arith.constant 0 : index
    %c0_40 = arith.constant 0 : index
    %40 = vector.load %arg3[%c0_38, %c0_39, %c0_40] : memref<1x1x32xf32, #tpu.memory_space<vmem>>, vector<1x1x32xf32>
    %41 = vector.broadcast %40 : vector<1x1x32xf32> to vector<32x16x32xf32>
    %42 = arith.addf %39, %41 : vector<32x16x32xf32>
    %cst_41 = arith.constant 0.000000e+00 : f32
    %43 = vector.broadcast %cst_41 : f32 to vector<32x16x32xf32>
    %44 = arith.maximumf %42, %43 : vector<32x16x32xf32>
    %c1_42 = arith.constant 1 : index
    %c0_43 = arith.constant 0 : index
    %c0_44 = arith.constant 0 : index
    %45 = vector.load %arg10[%c1_42, %c0_43, %c0_44] : memref<34x16x32xf32, #tpu.memory_space<vmem>>, vector<32x16x32xf32>
    tpu.vector_store %arg10[%c1_42, %c0_43, %c0_44], %44 {strides = array<i32>} : memref<34x16x32xf32, #tpu.memory_space<vmem>>, vector<32x16x32xf32>,
    %c0_45 = arith.constant 0 : index
    %c0_46 = arith.constant 0 : index
    %c0_47 = arith.constant 0 : index
    %46 = vector.load %arg10[%c0_45, %c0_46, %c0_47] : memref<34x16x32xf32, #tpu.memory_space<vmem>>, vector<34x16x32xf32>
    %47 = vector.shape_cast %46 : vector<34x16x32xf32> to vector<17x2x16x32xf32>
    %48 = vector.extract_strided_slice %47 {offsets = [0, 0, 0, 0], sizes = [16, 1, 16, 32], strides = [1, 1, 1, 1]} : vector<17x2x16x32xf32> to vector<16x1x16x32xf32>
    %49 = vector.shape_cast %48 : vector<16x1x16x32xf32> to vector<16x16x32xf32>
    %50 = vector.shape_cast %49 : vector<16x16x32xf32> to vector<256x32xf32>
    %51 = arith.truncf %50 : vector<256x32xf32> to vector<256x32xbf16>
    %c0_48 = arith.constant 0 : index
    %c0_49 = arith.constant 0 : index
    %c0_50 = arith.constant 0 : index
    %52 = vector.load %arg4[%c0_48, %c0_49, %c0_50] : memref<3x32x64xbf16, #tpu.memory_space<vmem>>, vector<1x32x64xbf16>
    %53 = vector.shape_cast %52 : vector<1x32x64xbf16> to vector<32x64xbf16>
    %cst_51 = arith.constant dense<0.000000e+00> : vector<256x64xf32>
    %54 = tpu.matmul %51, %53, %cst_51 {dimension_numbers = #tpu.dot_dimension_numbers<[1], [0], [0], [1], [0, 0, 1, 1], [], []>} : vector<256x32xbf16>, vector<32x64xbf16>, vector<256x64xf32> -> vector<256x64xf32>
    %55 = vector.extract_strided_slice %47 {offsets = [0, 1, 0, 0], sizes = [16, 1, 16, 32], strides = [1, 1, 1, 1]} : vector<17x2x16x32xf32> to vector<16x1x16x32xf32>
    %56 = vector.shape_cast %55 : vector<16x1x16x32xf32> to vector<16x16x32xf32>
    %57 = vector.shape_cast %56 : vector<16x16x32xf32> to vector<256x32xf32>
    %58 = arith.truncf %57 : vector<256x32xf32> to vector<256x32xbf16>
    %c1_52 = arith.constant 1 : index
    %c0_53 = arith.constant 0 : index
    %c0_54 = arith.constant 0 : index
    %59 = vector.load %arg4[%c1_52, %c0_53, %c0_54] : memref<3x32x64xbf16, #tpu.memory_space<vmem>>, vector<1x32x64xbf16>
    %60 = vector.shape_cast %59 : vector<1x32x64xbf16> to vector<32x64xbf16>
    %cst_55 = arith.constant dense<0.000000e+00> : vector<256x64xf32>
    %61 = tpu.matmul %58, %60, %cst_55 {dimension_numbers = #tpu.dot_dimension_numbers<[1], [0], [0], [1], [0, 0, 1, 1], [], []>} : vector<256x32xbf16>, vector<32x64xbf16>, vector<256x64xf32> -> vector<256x64xf32>
    %62 = arith.addf %54, %61 : vector<256x64xf32>
    %63 = vector.extract_strided_slice %47 {offsets = [1, 0, 0, 0], sizes = [16, 1, 16, 32], strides = [1, 1, 1, 1]} : vector<17x2x16x32xf32> to vector<16x1x16x32xf32>
    %64 = vector.shape_cast %63 : vector<16x1x16x32xf32> to vector<16x16x32xf32>
    %65 = vector.shape_cast %64 : vector<16x16x32xf32> to vector<256x32xf32>
    %66 = arith.truncf %65 : vector<256x32xf32> to vector<256x32xbf16>
    %c2_56 = arith.constant 2 : index
    %c0_57 = arith.constant 0 : index
    %c0_58 = arith.constant 0 : index
    %67 = vector.load %arg4[%c2_56, %c0_57, %c0_58] : memref<3x32x64xbf16, #tpu.memory_space<vmem>>, vector<1x32x64xbf16>
    %68 = vector.shape_cast %67 : vector<1x32x64xbf16> to vector<32x64xbf16>
    %cst_59 = arith.constant dense<0.000000e+00> : vector<256x64xf32>
    %69 = tpu.matmul %66, %68, %cst_59 {dimension_numbers = #tpu.dot_dimension_numbers<[1], [0], [0], [1], [0, 0, 1, 1], [], []>} : vector<256x32xbf16>, vector<32x64xbf16>, vector<256x64xf32> -> vector<256x64xf32>
    %70 = arith.addf %62, %69 : vector<256x64xf32>
    %71 = vector.shape_cast %70 : vector<256x64xf32> to vector<16x16x64xf32>
    %c0_60 = arith.constant 0 : index
    %c0_61 = arith.constant 0 : index
    %c0_62 = arith.constant 0 : index
    %72 = vector.load %arg5[%c0_60, %c0_61, %c0_62] : memref<1x1x64xf32, #tpu.memory_space<vmem>>, vector<1x1x64xf32>
    %73 = vector.broadcast %72 : vector<1x1x64xf32> to vector<16x16x64xf32>
    %74 = arith.addf %71, %73 : vector<16x16x64xf32>
    %cst_63 = arith.constant 0.000000e+00 : f32
    %75 = vector.broadcast %cst_63 : f32 to vector<16x16x64xf32>
    %76 = arith.maximumf %74, %75 : vector<16x16x64xf32>
    %c1_64 = arith.constant 1 : index
    %c0_65 = arith.constant 0 : index
    %c0_66 = arith.constant 0 : index
    %77 = vector.load %arg11[%c1_64, %c0_65, %c0_66] : memref<18x16x64xf32, #tpu.memory_space<vmem>>, vector<16x16x64xf32>
    tpu.vector_store %arg11[%c1_64, %c0_65, %c0_66], %76 {strides = array<i32>} : memref<18x16x64xf32, #tpu.memory_space<vmem>>, vector<16x16x64xf32>,
    %c0_67 = arith.constant 0 : index
    %c0_68 = arith.constant 0 : index
    %c0_69 = arith.constant 0 : index
    %78 = vector.load %arg11[%c0_67, %c0_68, %c0_69] : memref<18x16x64xf32, #tpu.memory_space<vmem>>, vector<18x16x64xf32>
    %79 = vector.shape_cast %78 : vector<18x16x64xf32> to vector<9x2x16x64xf32>
    %80 = vector.extract_strided_slice %79 {offsets = [0, 0, 0, 0], sizes = [8, 1, 16, 64], strides = [1, 1, 1, 1]} : vector<9x2x16x64xf32> to vector<8x1x16x64xf32>
    %81 = vector.shape_cast %80 : vector<8x1x16x64xf32> to vector<8x16x64xf32>
    %82 = vector.shape_cast %81 : vector<8x16x64xf32> to vector<128x64xf32>
    %83 = arith.truncf %82 : vector<128x64xf32> to vector<128x64xbf16>
    %c0_70 = arith.constant 0 : index
    %c0_71 = arith.constant 0 : index
    %c0_72 = arith.constant 0 : index
    %84 = vector.load %arg6[%c0_70, %c0_71, %c0_72] : memref<3x64x128xbf16, #tpu.memory_space<vmem>>, vector<1x64x128xbf16>
    %85 = vector.shape_cast %84 : vector<1x64x128xbf16> to vector<64x128xbf16>
    %cst_73 = arith.constant dense<0.000000e+00> : vector<128x128xf32>
    %86 = tpu.matmul %83, %85, %cst_73 {dimension_numbers = #tpu.dot_dimension_numbers<[1], [0], [0], [1], [0, 0, 1, 1], [], []>} : vector<128x64xbf16>, vector<64x128xbf16>, vector<128x128xf32> -> vector<128x128xf32>
    %87 = vector.extract_strided_slice %79 {offsets = [0, 1, 0, 0], sizes = [8, 1, 16, 64], strides = [1, 1, 1, 1]} : vector<9x2x16x64xf32> to vector<8x1x16x64xf32>
    %88 = vector.shape_cast %87 : vector<8x1x16x64xf32> to vector<8x16x64xf32>
    %89 = vector.shape_cast %88 : vector<8x16x64xf32> to vector<128x64xf32>
    %90 = arith.truncf %89 : vector<128x64xf32> to vector<128x64xbf16>
    %c1_74 = arith.constant 1 : index
    %c0_75 = arith.constant 0 : index
    %c0_76 = arith.constant 0 : index
    %91 = vector.load %arg6[%c1_74, %c0_75, %c0_76] : memref<3x64x128xbf16, #tpu.memory_space<vmem>>, vector<1x64x128xbf16>
    %92 = vector.shape_cast %91 : vector<1x64x128xbf16> to vector<64x128xbf16>
    %cst_77 = arith.constant dense<0.000000e+00> : vector<128x128xf32>
    %93 = tpu.matmul %90, %92, %cst_77 {dimension_numbers = #tpu.dot_dimension_numbers<[1], [0], [0], [1], [0, 0, 1, 1], [], []>} : vector<128x64xbf16>, vector<64x128xbf16>, vector<128x128xf32> -> vector<128x128xf32>
    %94 = arith.addf %86, %93 : vector<128x128xf32>
    %95 = vector.extract_strided_slice %79 {offsets = [1, 0, 0, 0], sizes = [8, 1, 16, 64], strides = [1, 1, 1, 1]} : vector<9x2x16x64xf32> to vector<8x1x16x64xf32>
    %96 = vector.shape_cast %95 : vector<8x1x16x64xf32> to vector<8x16x64xf32>
    %97 = vector.shape_cast %96 : vector<8x16x64xf32> to vector<128x64xf32>
    %98 = arith.truncf %97 : vector<128x64xf32> to vector<128x64xbf16>
    %c2_78 = arith.constant 2 : index
    %c0_79 = arith.constant 0 : index
    %c0_80 = arith.constant 0 : index
    %99 = vector.load %arg6[%c2_78, %c0_79, %c0_80] : memref<3x64x128xbf16, #tpu.memory_space<vmem>>, vector<1x64x128xbf16>
    %100 = vector.shape_cast %99 : vector<1x64x128xbf16> to vector<64x128xbf16>
    %cst_81 = arith.constant dense<0.000000e+00> : vector<128x128xf32>
    %101 = tpu.matmul %98, %100, %cst_81 {dimension_numbers = #tpu.dot_dimension_numbers<[1], [0], [0], [1], [0, 0, 1, 1], [], []>} : vector<128x64xbf16>, vector<64x128xbf16>, vector<128x128xf32> -> vector<128x128xf32>
    %102 = arith.addf %94, %101 : vector<128x128xf32>
    %103 = vector.shape_cast %102 : vector<128x128xf32> to vector<8x16x128xf32>
    %c0_82 = arith.constant 0 : index
    %c0_83 = arith.constant 0 : index
    %c0_84 = arith.constant 0 : index
    %104 = vector.load %arg7[%c0_82, %c0_83, %c0_84] : memref<1x1x128xf32, #tpu.memory_space<vmem>>, vector<1x1x128xf32>
    %105 = vector.broadcast %104 : vector<1x1x128xf32> to vector<8x16x128xf32>
    %106 = arith.addf %103, %105 : vector<8x16x128xf32>
    %cst_85 = arith.constant 0.000000e+00 : f32
    %107 = vector.broadcast %cst_85 : f32 to vector<8x16x128xf32>
    %108 = arith.maximumf %106, %107 : vector<8x16x128xf32>
    %c0_86 = arith.constant 0 : index
    %c0_87 = arith.constant 0 : index
    %c0_88 = arith.constant 0 : index
    %109 = vector.load %arg8[%c0_86, %c0_87, %c0_88] : memref<8x16x128xf32, #tpu.memory_space<vmem>>, vector<8x16x128xf32>
    tpu.vector_store %arg8[%c0_86, %c0_87, %c0_88], %108 {strides = array<i32>} : memref<8x16x128xf32, #tpu.memory_space<vmem>>, vector<8x16x128xf32>,
    return
  }
  func.func @transform_0(%arg0: i32) -> (i32, i32, i32) {
    %c0_i32 = arith.constant 0 : i32
    %c0_i32_0 = arith.constant 0 : i32
    %c0_i32_1 = arith.constant 0 : i32
    return %c0_i32, %arg0, %c0_i32_0 : i32, i32, i32
  }
  func.func @transform_1(%arg0: i32) -> (i32, i32, i32) {
    %c0_i32 = arith.constant 0 : i32
    %c0_i32_0 = arith.constant 0 : i32
    %c0_i32_1 = arith.constant 0 : i32
    %c0_i32_2 = arith.constant 0 : i32
    return %c0_i32, %c0_i32_0, %c0_i32_1 : i32, i32, i32
  }
  func.func @transform_2(%arg0: i32) -> (i32, i32, i32) {
    %c0_i32 = arith.constant 0 : i32
    %c0_i32_0 = arith.constant 0 : i32
    %c0_i32_1 = arith.constant 0 : i32
    %c0_i32_2 = arith.constant 0 : i32
    return %c0_i32, %c0_i32_0, %c0_i32_1 : i32, i32, i32
  }
  func.func @transform_3(%arg0: i32) -> (i32, i32, i32) {
    %c0_i32 = arith.constant 0 : i32
    %c0_i32_0 = arith.constant 0 : i32
    %c0_i32_1 = arith.constant 0 : i32
    %c0_i32_2 = arith.constant 0 : i32
    return %c0_i32, %c0_i32_0, %c0_i32_1 : i32, i32, i32
  }
  func.func @transform_4(%arg0: i32) -> (i32, i32, i32) {
    %c0_i32 = arith.constant 0 : i32
    %c0_i32_0 = arith.constant 0 : i32
    %c0_i32_1 = arith.constant 0 : i32
    %c0_i32_2 = arith.constant 0 : i32
    return %c0_i32, %c0_i32_0, %c0_i32_1 : i32, i32, i32
  }
  func.func @transform_5(%arg0: i32) -> (i32, i32, i32) {
    %c0_i32 = arith.constant 0 : i32
    %c0_i32_0 = arith.constant 0 : i32
    %c0_i32_1 = arith.constant 0 : i32
    %c0_i32_2 = arith.constant 0 : i32
    return %c0_i32, %c0_i32_0, %c0_i32_1 : i32, i32, i32
  }
  func.func @transform_6(%arg0: i32) -> (i32, i32, i32) {
    %c0_i32 = arith.constant 0 : i32
    %c0_i32_0 = arith.constant 0 : i32
    %c0_i32_1 = arith.constant 0 : i32
    %c0_i32_2 = arith.constant 0 : i32
    return %c0_i32, %c0_i32_0, %c0_i32_1 : i32, i32, i32
  }
  func.func @transform_7(%arg0: i32) -> (i32, i32, i32) {
    %c0_i32 = arith.constant 0 : i32
    %c0_i32_0 = arith.constant 0 : i32
    %c0_i32_1 = arith.constant 0 : i32
    return %c0_i32, %arg0, %c0_i32_0 : i32, i32, i32
  }
}

</mosaic_0001>

<bundles_post_ra>
// kernel: tpu_custom_call.1
= control target key start
LH: loop header
LB: loop body
LE: loop exit
PB: predicated region body
PF: predicated region fallthrough
CT: control target
= control target key end

     0   :  { %12 = vsyncpa [#allocation7], 0  ;;  %s6657_s0 = inlined_call_operand.vmem [shape: f32[64,32,4], index: 0, kind: input, shape index: {}]   ;;  %s6658_s1 = inlined_call_operand.vmem [shape: bf16[3,4,32], index: 1, kind: input, shape index: {}]   ;;  %s6659_s2 = inlined_call_operand.vmem [shape: f32[1,1,32], index: 2, kind: input, shape index: {}]   ;;  %s6660_s3 = inlined_call_operand.vmem [shape: bf16[3,32,64], index: 3, kind: input, shape index: {}]   ;;  %s6661_s4 = inlined_call_operand.vmem [shape: f32[1,1,64], index: 4, kind: input, shape index: {}]   ;;  %s6662_s5 = inlined_call_operand.vmem [shape: bf16[3,64,128], index: 5, kind: input, shape index: {}]   ;;  %s6663_s6 = inlined_call_operand.vmem [shape: f32[1,1,128], index: 6, kind: input, shape index: {}]   ;;  %s6664_s7 = inlined_call_operand.hbm [shape: f32[8,32,128], index: 7, kind: output, shape index: {}]  }
   0x1   :  { %14 = vsyncpa [#allocation7 + $0x1], 0  ;;  %s5357_s24 = smov 0   ;;  %s5359_s25 = smov 0  }
   0x2   :  { %s5361_s26 = smov 0   ;;  %s5363_s27 = smov 0  }
   0x3 LB: > { %s4173_s28 = sadd.s32 4294967295, %s5307_s27   ;;  %s4174_s29 = sadd.s32 4294967294, %s5307_s27   ;;  %s5307_s27 = sphi %s5363_s27, %s6670_s27   ;;  %s5303_s26 = sphi %s5361_s26, %s6669_s26   ;;  %s5299_s25 = sphi %s5359_s25, %s6668_s25   ;;  %s5295_s24 = sphi %s5357_s24, %s6667_s24  }
   0x4   : > { %s5380_s30 = sadd.s32 1, %s5307_s27   ;;  %s27_s8 = sadd.s32 1, %s5303_s26 }
   0x5   : > { %s24_s9 = ssub.s32 %s5307_s27, %s5380_s30  ;;  %p34_p0 = scmp.ne.s32.totalorder %s5303_s26, %s5299_s25 }
   0x6   : > { %p25_p1 = scmp.eq.s32.totalorder %s24_s9, 0  ;;  %p35_p2 = scmp.eq.s32.totalorder %s5307_s27, 0 }
   0x7   : > { %p190_p3 = scmp.eq.s32.totalorder %s4173_s28, 1  ;;  %p195_p4 = scmp.ne.s32.totalorder %s5299_s25, %s5295_s24 }
   0x8   : > { %s5393_s10 = scalar_select %p25_p1, %s5303_s26, %s27_s8  }
   0x9   : > { %p36_p5 = por %p35_p2, %p34_p0  ;;  %p5395_p6 = por %p190_p3, %p34_p0 }
   0xa   : > { %p196_p7 = scmp.eq.s32.totalorder %s4174_s29, 1  ;;  %p4176_p9 = scmp.ge.s32.totalorder %s5307_s27, 2 }
   0xc   : > { %p5399_p8 = por %p196_p7, %p195_p4  ;;  %230 = sbr.rel (%p4176_p9) target bundleno = 87 (0x57), region = 40 }
  0x13   : > { %233 = sbr.rel (!%p36_p5) target bundleno = 87 (0x57), region = 44  ;;  %s235_s13 = sand.u32 (%p36_p5), 1, %s5303_s26  }
  0x14   : > { %s4403_s14 = sshll.u32 (%p36_p5), %s5307_s27, 4  ;;  %s4177_s15 = sshll.u32 (%p36_p5), %s235_s13, 10 }
  0x15   : > { %s5411_s18 = scalar_lea.vmem (%p36_p5), %s6657_s0, %s4403_s14  ;;  %s5416_s19 = scalar_lea.vmem (%p36_p5), [#allocation5], %s4177_s15 }
  0x16   : > { %v522_v0 = vld [vmem:[%s5411_s18] sm:$0xff] (%p36_p5)  ;;  %v524_v1 = vld [vmem:[%s5411_s18 + $0x8] sm:$0xff] (%p36_p5) }
  0x17   : > { %v526_v2 = vld [vmem:[%s5411_s18 + $0x20] sm:$0xff] (%p36_p5)  ;;  %523 = vst [vmem:[%s5416_s19] sm:$0xff] (%p36_p5), %v522_v0  ;;  %525 = vst [vmem:[%s5416_s19 + $0x8] sm:$0xff] (%p36_p5), %v524_v1  ;;  %v528_v3 = vld [vmem:[%s5411_s18 + $0x28] sm:$0xff] (%p36_p5) }
  0x18   : > { %527 = vst [vmem:[%s5416_s19 + $0x10] sm:$0xff] (%p36_p5), %v526_v2  ;;  %v530_v4 = vld [vmem:[%s5411_s18 + $0x40] sm:$0xff] (%p36_p5)  ;;  %v532_v5 = vld [vmem:[%s5411_s18 + $0x48] sm:$0xff] (%p36_p5)  ;;  %529 = vst [vmem:[%s5416_s19 + $0x18] sm:$0xff] (%p36_p5), %v528_v3 }
  0x19   : > { %531 = vst [vmem:[%s5416_s19 + $0x20] sm:$0xff] (%p36_p5), %v530_v4  ;;  %533 = vst [vmem:[%s5416_s19 + $0x28] sm:$0xff] (%p36_p5), %v532_v5  ;;  %v534_v6 = vld [vmem:[%s5411_s18 + $0x60] sm:$0xff] (%p36_p5)  ;;  %v536_v7 = vld [vmem:[%s5411_s18 + $0x68] sm:$0xff] (%p36_p5) }
  0x1a   : > { %v538_v8 = vld [vmem:[%s5411_s18 + $0x80] sm:$0xff]  ;;  %535 = vst [vmem:[%s5416_s19 + $0x30] sm:$0xff] %v534_v6  ;;  %537 = vst [vmem:[%s5416_s19 + $0x38] sm:$0xff] %v536_v7  ;;  %v540_v9 = vld [vmem:[%s5411_s18 + $0x88] sm:$0xff] }
  0x1b   : > { %539 = vst [vmem:[%s5416_s19 + $0x40] sm:$0xff] %v538_v8  ;;  %v542_v10 = vld [vmem:[%s5411_s18 + $0xa0] sm:$0xff]  ;;  %v544_v11 = vld [vmem:[%s5411_s18 + $0xa8] sm:$0xff]  ;;  %541 = vst [vmem:[%s5416_s19 + $0x48] sm:$0xff] %v540_v9 }
  0x1c   : > { %543 = vst [vmem:[%s5416_s19 + $0x50] sm:$0xff] %v542_v10  ;;  %545 = vst [vmem:[%s5416_s19 + $0x58] sm:$0xff] %v544_v11  ;;  %v546_v12 = vld [vmem:[%s5411_s18 + $0xc0] sm:$0xff]  ;;  %v548_v13 = vld [vmem:[%s5411_s18 + $0xc8] sm:$0xff] }
  0x1d   : > { %v550_v14 = vld [vmem:[%s5411_s18 + $0xe0] sm:$0xff]  ;;  %547 = vst [vmem:[%s5416_s19 + $0x60] sm:$0xff] %v546_v12  ;;  %549 = vst [vmem:[%s5416_s19 + $0x68] sm:$0xff] %v548_v13  ;;  %v552_v15 = vld [vmem:[%s5411_s18 + $0xe8] sm:$0xff] }
  0x1e   : > { %551 = vst [vmem:[%s5416_s19 + $0x70] sm:$0xff] %v550_v14  ;;  %v554_v16 = vld [vmem:[%s5411_s18 + $0x100] sm:$0xff]  ;;  %v556_v17 = vld [vmem:[%s5411_s18 + $0x108] sm:$0xff]  ;;  %553 = vst [vmem:[%s5416_s19 + $0x78] sm:$0xff] %v552_v15 }
  0x1f   : > { %555 = vst [vmem:[%s5416_s19 + $0x80] sm:$0xff] %v554_v16  ;;  %557 = vst [vmem:[%s5416_s19 + $0x88] sm:$0xff] %v556_v17  ;;  %v558_v18 = vld [vmem:[%s5411_s18 + $0x120] sm:$0xff]  ;;  %v560_v19 = vld [vmem:[%s5411_s18 + $0x128] sm:$0xff] }
  0x20   : > { %v562_v20 = vld [vmem:[%s5411_s18 + $0x140] sm:$0xff]  ;;  %559 = vst [vmem:[%s5416_s19 + $0x90] sm:$0xff] %v558_v18  ;;  %561 = vst [vmem:[%s5416_s19 + $0x98] sm:$0xff] %v560_v19  ;;  %v564_v21 = vld [vmem:[%s5411_s18 + $0x148] sm:$0xff] }
  0x21   : > { %563 = vst [vmem:[%s5416_s19 + $0xa0] sm:$0xff] %v562_v20  ;;  %v566_v22 = vld [vmem:[%s5411_s18 + $0x160] sm:$0xff]  ;;  %v568_v23 = vld [vmem:[%s5411_s18 + $0x168] sm:$0xff]  ;;  %565 = vst [vmem:[%s5416_s19 + $0xa8] sm:$0xff] %v564_v21 }
  0x22   : > { %567 = vst [vmem:[%s5416_s19 + $0xb0] sm:$0xff] %v566_v22  ;;  %569 = vst [vmem:[%s5416_s19 + $0xb8] sm:$0xff] %v568_v23  ;;  %v570_v24 = vld [vmem:[%s5411_s18 + $0x180] sm:$0xff]  ;;  %v572_v25 = vld [vmem:[%s5411_s18 + $0x188] sm:$0xff] }
  0x23   : > { %v574_v26 = vld [vmem:[%s5411_s18 + $0x1a0] sm:$0xff]  ;;  %571 = vst [vmem:[%s5416_s19 + $0xc0] sm:$0xff] %v570_v24  ;;  %573 = vst [vmem:[%s5416_s19 + $0xc8] sm:$0xff] %v572_v25  ;;  %v576_v27 = vld [vmem:[%s5411_s18 + $0x1a8] sm:$0xff] }
  0x24   : > { %575 = vst [vmem:[%s5416_s19 + $0xd0] sm:$0xff] %v574_v26  ;;  %v578_v28 = vld [vmem:[%s5411_s18 + $0x1c0] sm:$0xff]  ;;  %v580_v29 = vld [vmem:[%s5411_s18 + $0x1c8] sm:$0xff]  ;;  %577 = vst [vmem:[%s5416_s19 + $0xd8] sm:$0xff] %v576_v27 }
  0x25   : > { %579 = vst [vmem:[%s5416_s19 + $0xe0] sm:$0xff] %v578_v28  ;;  %581 = vst [vmem:[%s5416_s19 + $0xe8] sm:$0xff] %v580_v29  ;;  %v582_v30 = vld [vmem:[%s5411_s18 + $0x1e0] sm:$0xff]  ;;  %v584_v31 = vld [vmem:[%s5411_s18 + $0x1e8] sm:$0xff] }
  0x26   : > { %v586_v32 = vld [vmem:[%s5411_s18 + $0x200] sm:$0xff]  ;;  %583 = vst [vmem:[%s5416_s19 + $0xf0] sm:$0xff] %v582_v30  ;;  %585 = vst [vmem:[%s5416_s19 + $0xf8] sm:$0xff] %v584_v31  ;;  %v588_v33 = vld [vmem:[%s5411_s18 + $0x208] sm:$0xff] }
  0x27   : > { %587 = vst [vmem:[%s5416_s19 + $0x100] sm:$0xff] %v586_v32  ;;  %v590_v34 = vld [vmem:[%s5411_s18 + $0x220] sm:$0xff]  ;;  %v592_v35 = vld [vmem:[%s5411_s18 + $0x228] sm:$0xff]  ;;  %589 = vst [vmem:[%s5416_s19 + $0x108] sm:$0xff] %v588_v33 }
  0x28   : > { %591 = vst [vmem:[%s5416_s19 + $0x110] sm:$0xff] %v590_v34  ;;  %593 = vst [vmem:[%s5416_s19 + $0x118] sm:$0xff] %v592_v35  ;;  %v594_v36 = vld [vmem:[%s5411_s18 + $0x240] sm:$0xff]  ;;  %v596_v37 = vld [vmem:[%s5411_s18 + $0x248] sm:$0xff] }
  0x29   : > { %v598_v38 = vld [vmem:[%s5411_s18 + $0x260] sm:$0xff]  ;;  %595 = vst [vmem:[%s5416_s19 + $0x120] sm:$0xff] %v594_v36  ;;  %597 = vst [vmem:[%s5416_s19 + $0x128] sm:$0xff] %v596_v37  ;;  %v600_v39 = vld [vmem:[%s5411_s18 + $0x268] sm:$0xff] }
  0x2a   : > { %599 = vst [vmem:[%s5416_s19 + $0x130] sm:$0xff] %v598_v38  ;;  %v602_v40 = vld [vmem:[%s5411_s18 + $0x280] sm:$0xff]  ;;  %v604_v41 = vld [vmem:[%s5411_s18 + $0x288] sm:$0xff]  ;;  %601 = vst [vmem:[%s5416_s19 + $0x138] sm:$0xff] %v600_v39 }
  0x2b   : > { %603 = vst [vmem:[%s5416_s19 + $0x140] sm:$0xff] %v602_v40  ;;  %605 = vst [vmem:[%s5416_s19 + $0x148] sm:$0xff] %v604_v41  ;;  %v606_v42 = vld [vmem:[%s5411_s18 + $0x2a0] sm:$0xff]  ;;  %v608_v43 = vld [vmem:[%s5411_s18 + $0x2a8] sm:$0xff] }
  0x2c   : > { %v610_v44 = vld [vmem:[%s5411_s18 + $0x2c0] sm:$0xff]  ;;  %607 = vst [vmem:[%s5416_s19 + $0x150] sm:$0xff] %v606_v42  ;;  %609 = vst [vmem:[%s5416_s19 + $0x158] sm:$0xff] %v608_v43  ;;  %v612_v45 = vld [vmem:[%s5411_s18 + $0x2c8] sm:$0xff] }
  0x2d   : > { %611 = vst [vmem:[%s5416_s19 + $0x160] sm:$0xff] %v610_v44  ;;  %v614_v46 = vld [vmem:[%s5411_s18 + $0x2e0] sm:$0xff]  ;;  %v616_v47 = vld [vmem:[%s5411_s18 + $0x2e8] sm:$0xff]  ;;  %613 = vst [vmem:[%s5416_s19 + $0x168] sm:$0xff] %v612_v45 }
  0x2e   : > { %615 = vst [vmem:[%s5416_s19 + $0x170] sm:$0xff] %v614_v46  ;;  %617 = vst [vmem:[%s5416_s19 + $0x178] sm:$0xff] %v616_v47  ;;  %v618_v48 = vld [vmem:[%s5411_s18 + $0x300] sm:$0xff]  ;;  %v620_v49 = vld [vmem:[%s5411_s18 + $0x308] sm:$0xff] }
  0x2f   : > { %v622_v50 = vld [vmem:[%s5411_s18 + $0x320] sm:$0xff]  ;;  %619 = vst [vmem:[%s5416_s19 + $0x180] sm:$0xff] %v618_v48  ;;  %621 = vst [vmem:[%s5416_s19 + $0x188] sm:$0xff] %v620_v49  ;;  %v624_v51 = vld [vmem:[%s5411_s18 + $0x328] sm:$0xff] }
  0x30   : > { %623 = vst [vmem:[%s5416_s19 + $0x190] sm:$0xff] %v622_v50  ;;  %v626_v52 = vld [vmem:[%s5411_s18 + $0x340] sm:$0xff]  ;;  %v628_v53 = vld [vmem:[%s5411_s18 + $0x348] sm:$0xff]  ;;  %625 = vst [vmem:[%s5416_s19 + $0x198] sm:$0xff] %v624_v51 }
  0x31   : > { %627 = vst [vmem:[%s5416_s19 + $0x1a0] sm:$0xff] %v626_v52  ;;  %629 = vst [vmem:[%s5416_s19 + $0x1a8] sm:$0xff] %v628_v53  ;;  %v630_v54 = vld [vmem:[%s5411_s18 + $0x360] sm:$0xff]  ;;  %v632_v55 = vld [vmem:[%s5411_s18 + $0x368] sm:$0xff] }
  0x32   : > { %v634_v56 = vld [vmem:[%s5411_s18 + $0x380] sm:$0xff]  ;;  %631 = vst [vmem:[%s5416_s19 + $0x1b0] sm:$0xff] %v630_v54  ;;  %633 = vst [vmem:[%s5416_s19 + $0x1b8] sm:$0xff] %v632_v55  ;;  %v636_v57 = vld [vmem:[%s5411_s18 + $0x388] sm:$0xff] }
  0x33   : > { %635 = vst [vmem:[%s5416_s19 + $0x1c0] sm:$0xff] %v634_v56  ;;  %v638_v58 = vld [vmem:[%s5411_s18 + $0x3a0] sm:$0xff]  ;;  %v640_v59 = vld [vmem:[%s5411_s18 + $0x3a8] sm:$0xff]  ;;  %637 = vst [vmem:[%s5416_s19 + $0x1c8] sm:$0xff] %v636_v57 }
  0x34   : > { %639 = vst [vmem:[%s5416_s19 + $0x1d0] sm:$0xff] %v638_v58  ;;  %641 = vst [vmem:[%s5416_s19 + $0x1d8] sm:$0xff] %v640_v59  ;;  %v642_v60 = vld [vmem:[%s5411_s18 + $0x3c0] sm:$0xff]  ;;  %v644_v61 = vld [vmem:[%s5411_s18 + $0x3c8] sm:$0xff] }
  0x35   : > { %v646_v62 = vld [vmem:[%s5411_s18 + $0x3e0] sm:$0xff]  ;;  %643 = vst [vmem:[%s5416_s19 + $0x1e0] sm:$0xff] %v642_v60  ;;  %645 = vst [vmem:[%s5416_s19 + $0x1e8] sm:$0xff] %v644_v61  ;;  %v648_v63 = vld [vmem:[%s5411_s18 + $0x3e8] sm:$0xff] }
  0x36   : > { %647 = vst [vmem:[%s5416_s19 + $0x1f0] sm:$0xff] %v646_v62  ;;  %v650_v0 = vld [vmem:[%s5411_s18 + $0x400] sm:$0xff]  ;;  %v652_v1 = vld [vmem:[%s5411_s18 + $0x408] sm:$0xff]  ;;  %649 = vst [vmem:[%s5416_s19 + $0x1f8] sm:$0xff] %v648_v63 }
  0x37   : > { %651 = vst [vmem:[%s5416_s19 + $0x200] sm:$0xff] %v650_v0  ;;  %653 = vst [vmem:[%s5416_s19 + $0x208] sm:$0xff] %v652_v1  ;;  %v654_v2 = vld [vmem:[%s5411_s18 + $0x420] sm:$0xff]  ;;  %v656_v3 = vld [vmem:[%s5411_s18 + $0x428] sm:$0xff] }
  0x38   : > { %v658_v4 = vld [vmem:[%s5411_s18 + $0x440] sm:$0xff]  ;;  %655 = vst [vmem:[%s5416_s19 + $0x210] sm:$0xff] %v654_v2  ;;  %657 = vst [vmem:[%s5416_s19 + $0x218] sm:$0xff] %v656_v3  ;;  %v660_v5 = vld [vmem:[%s5411_s18 + $0x448] sm:$0xff] }
  0x39   : > { %659 = vst [vmem:[%s5416_s19 + $0x220] sm:$0xff] %v658_v4  ;;  %v662_v6 = vld [vmem:[%s5411_s18 + $0x460] sm:$0xff]  ;;  %v664_v7 = vld [vmem:[%s5411_s18 + $0x468] sm:$0xff]  ;;  %661 = vst [vmem:[%s5416_s19 + $0x228] sm:$0xff] %v660_v5 }
  0x3a   : > { %663 = vst [vmem:[%s5416_s19 + $0x230] sm:$0xff] %v662_v6  ;;  %665 = vst [vmem:[%s5416_s19 + $0x238] sm:$0xff] %v664_v7  ;;  %v666_v8 = vld [vmem:[%s5411_s18 + $0x480] sm:$0xff]  ;;  %v668_v9 = vld [vmem:[%s5411_s18 + $0x488] sm:$0xff] }
  0x3b   : > { %v670_v10 = vld [vmem:[%s5411_s18 + $0x4a0] sm:$0xff]  ;;  %667 = vst [vmem:[%s5416_s19 + $0x240] sm:$0xff] %v666_v8  ;;  %669 = vst [vmem:[%s5416_s19 + $0x248] sm:$0xff] %v668_v9  ;;  %v672_v11 = vld [vmem:[%s5411_s18 + $0x4a8] sm:$0xff] }
  0x3c   : > { %671 = vst [vmem:[%s5416_s19 + $0x250] sm:$0xff] %v670_v10  ;;  %v674_v12 = vld [vmem:[%s5411_s18 + $0x4c0] sm:$0xff]  ;;  %v676_v13 = vld [vmem:[%s5411_s18 + $0x4c8] sm:$0xff]  ;;  %673 = vst [vmem:[%s5416_s19 + $0x258] sm:$0xff] %v672_v11 }
  0x3d   : > { %675 = vst [vmem:[%s5416_s19 + $0x260] sm:$0xff] %v674_v12  ;;  %677 = vst [vmem:[%s5416_s19 + $0x268] sm:$0xff] %v676_v13  ;;  %v678_v14 = vld [vmem:[%s5411_s18 + $0x4e0] sm:$0xff]  ;;  %v680_v15 = vld [vmem:[%s5411_s18 + $0x4e8] sm:$0xff] }
  0x3e   : > { %v682_v16 = vld [vmem:[%s5411_s18 + $0x500] sm:$0xff]  ;;  %679 = vst [vmem:[%s5416_s19 + $0x270] sm:$0xff] %v678_v14  ;;  %681 = vst [vmem:[%s5416_s19 + $0x278] sm:$0xff] %v680_v15  ;;  %v684_v17 = vld [vmem:[%s5411_s18 + $0x508] sm:$0xff] }
  0x3f   : > { %683 = vst [vmem:[%s5416_s19 + $0x280] sm:$0xff] %v682_v16  ;;  %v686_v18 = vld [vmem:[%s5411_s18 + $0x520] sm:$0xff]  ;;  %v688_v19 = vld [vmem:[%s5411_s18 + $0x528] sm:$0xff]  ;;  %685 = vst [vmem:[%s5416_s19 + $0x288] sm:$0xff] %v684_v17 }
  0x40   : > { %687 = vst [vmem:[%s5416_s19 + $0x290] sm:$0xff] %v686_v18  ;;  %689 = vst [vmem:[%s5416_s19 + $0x298] sm:$0xff] %v688_v19  ;;  %v690_v20 = vld [vmem:[%s5411_s18 + $0x540] sm:$0xff]  ;;  %v692_v21 = vld [vmem:[%s5411_s18 + $0x548] sm:$0xff] }
  0x41   : > { %v694_v22 = vld [vmem:[%s5411_s18 + $0x560] sm:$0xff]  ;;  %691 = vst [vmem:[%s5416_s19 + $0x2a0] sm:$0xff] %v690_v20  ;;  %693 = vst [vmem:[%s5416_s19 + $0x2a8] sm:$0xff] %v692_v21  ;;  %v696_v23 = vld [vmem:[%s5411_s18 + $0x568] sm:$0xff] }
  0x42   : > { %695 = vst [vmem:[%s5416_s19 + $0x2b0] sm:$0xff] %v694_v22  ;;  %v698_v24 = vld [vmem:[%s5411_s18 + $0x580] sm:$0xff]  ;;  %v700_v25 = vld [vmem:[%s5411_s18 + $0x588] sm:$0xff]  ;;  %697 = vst [vmem:[%s5416_s19 + $0x2b8] sm:$0xff] %v696_v23 }
  0x43   : > { %699 = vst [vmem:[%s5416_s19 + $0x2c0] sm:$0xff] %v698_v24  ;;  %701 = vst [vmem:[%s5416_s19 + $0x2c8] sm:$0xff] %v700_v25  ;;  %v702_v26 = vld [vmem:[%s5411_s18 + $0x5a0] sm:$0xff]  ;;  %v704_v27 = vld [vmem:[%s5411_s18 + $0x5a8] sm:$0xff] }
  0x44   : > { %v706_v28 = vld [vmem:[%s5411_s18 + $0x5c0] sm:$0xff]  ;;  %703 = vst [vmem:[%s5416_s19 + $0x2d0] sm:$0xff] %v702_v26  ;;  %705 = vst [vmem:[%s5416_s19 + $0x2d8] sm:$0xff] %v704_v27  ;;  %v708_v29 = vld [vmem:[%s5411_s18 + $0x5c8] sm:$0xff] }
  0x45   : > { %707 = vst [vmem:[%s5416_s19 + $0x2e0] sm:$0xff] %v706_v28  ;;  %v710_v30 = vld [vmem:[%s5411_s18 + $0x5e0] sm:$0xff]  ;;  %v712_v31 = vld [vmem:[%s5411_s18 + $0x5e8] sm:$0xff]  ;;  %709 = vst [vmem:[%s5416_s19 + $0x2e8] sm:$0xff] %v708_v29 }
  0x46   : > { %711 = vst [vmem:[%s5416_s19 + $0x2f0] sm:$0xff] %v710_v30  ;;  %713 = vst [vmem:[%s5416_s19 + $0x2f8] sm:$0xff] %v712_v31  ;;  %v714_v32 = vld [vmem:[%s5411_s18 + $0x600] sm:$0xff]  ;;  %v716_v33 = vld [vmem:[%s5411_s18 + $0x608] sm:$0xff] }
  0x47   : > { %v718_v34 = vld [vmem:[%s5411_s18 + $0x620] sm:$0xff]  ;;  %715 = vst [vmem:[%s5416_s19 + $0x300] sm:$0xff] %v714_v32  ;;  %717 = vst [vmem:[%s5416_s19 + $0x308] sm:$0xff] %v716_v33  ;;  %v720_v35 = vld [vmem:[%s5411_s18 + $0x628] sm:$0xff] }
  0x48   : > { %719 = vst [vmem:[%s5416_s19 + $0x310] sm:$0xff] %v718_v34  ;;  %v722_v36 = vld [vmem:[%s5411_s18 + $0x640] sm:$0xff]  ;;  %v724_v37 = vld [vmem:[%s5411_s18 + $0x648] sm:$0xff]  ;;  %721 = vst [vmem:[%s5416_s19 + $0x318] sm:$0xff] %v720_v35 }
  0x49   : > { %723 = vst [vmem:[%s5416_s19 + $0x320] sm:$0xff] %v722_v36  ;;  %725 = vst [vmem:[%s5416_s19 + $0x328] sm:$0xff] %v724_v37  ;;  %v726_v38 = vld [vmem:[%s5411_s18 + $0x660] sm:$0xff]  ;;  %v728_v39 = vld [vmem:[%s5411_s18 + $0x668] sm:$0xff] }
  0x4a   : > { %v730_v40 = vld [vmem:[%s5411_s18 + $0x680] sm:$0xff]  ;;  %727 = vst [vmem:[%s5416_s19 + $0x330] sm:$0xff] %v726_v38  ;;  %729 = vst [vmem:[%s5416_s19 + $0x338] sm:$0xff] %v728_v39  ;;  %v732_v41 = vld [vmem:[%s5411_s18 + $0x688] sm:$0xff] }
  0x4b   : > { %731 = vst [vmem:[%s5416_s19 + $0x340] sm:$0xff] %v730_v40  ;;  %v734_v42 = vld [vmem:[%s5411_s18 + $0x6a0] sm:$0xff]  ;;  %v736_v43 = vld [vmem:[%s5411_s18 + $0x6a8] sm:$0xff]  ;;  %733 = vst [vmem:[%s5416_s19 + $0x348] sm:$0xff] %v732_v41 }
  0x4c   : > { %735 = vst [vmem:[%s5416_s19 + $0x350] sm:$0xff] %v734_v42  ;;  %737 = vst [vmem:[%s5416_s19 + $0x358] sm:$0xff] %v736_v43  ;;  %v738_v44 = vld [vmem:[%s5411_s18 + $0x6c0] sm:$0xff]  ;;  %v740_v45 = vld [vmem:[%s5411_s18 + $0x6c8] sm:$0xff] }
  0x4d   : > { %v742_v46 = vld [vmem:[%s5411_s18 + $0x6e0] sm:$0xff]  ;;  %739 = vst [vmem:[%s5416_s19 + $0x360] sm:$0xff] %v738_v44  ;;  %741 = vst [vmem:[%s5416_s19 + $0x368] sm:$0xff] %v740_v45  ;;  %v744_v47 = vld [vmem:[%s5411_s18 + $0x6e8] sm:$0xff] }
  0x4e   : > { %743 = vst [vmem:[%s5416_s19 + $0x370] sm:$0xff] %v742_v46  ;;  %v746_v48 = vld [vmem:[%s5411_s18 + $0x700] sm:$0xff]  ;;  %v748_v49 = vld [vmem:[%s5411_s18 + $0x708] sm:$0xff]  ;;  %745 = vst [vmem:[%s5416_s19 + $0x378] sm:$0xff] %v744_v47 }
  0x4f   : > { %747 = vst [vmem:[%s5416_s19 + $0x380] sm:$0xff] %v746_v48  ;;  %749 = vst [vmem:[%s5416_s19 + $0x388] sm:$0xff] %v748_v49  ;;  %v750_v50 = vld [vmem:[%s5411_s18 + $0x720] sm:$0xff]  ;;  %v752_v51 = vld [vmem:[%s5411_s18 + $0x728] sm:$0xff] }
  0x50   : > { %v754_v52 = vld [vmem:[%s5411_s18 + $0x740] sm:$0xff]  ;;  %751 = vst [vmem:[%s5416_s19 + $0x390] sm:$0xff] %v750_v50  ;;  %753 = vst [vmem:[%s5416_s19 + $0x398] sm:$0xff] %v752_v51  ;;  %v756_v53 = vld [vmem:[%s5411_s18 + $0x748] sm:$0xff] }
  0x51   : > { %755 = vst [vmem:[%s5416_s19 + $0x3a0] sm:$0xff] %v754_v52  ;;  %v758_v54 = vld [vmem:[%s5411_s18 + $0x760] sm:$0xff]  ;;  %v760_v55 = vld [vmem:[%s5411_s18 + $0x768] sm:$0xff]  ;;  %757 = vst [vmem:[%s5416_s19 + $0x3a8] sm:$0xff] %v756_v53 }
  0x52   : > { %759 = vst [vmem:[%s5416_s19 + $0x3b0] sm:$0xff] %v758_v54  ;;  %761 = vst [vmem:[%s5416_s19 + $0x3b8] sm:$0xff] %v760_v55  ;;  %v762_v56 = vld [vmem:[%s5411_s18 + $0x780] sm:$0xff]  ;;  %v764_v57 = vld [vmem:[%s5411_s18 + $0x788] sm:$0xff] }
  0x53   : > { %v766_v58 = vld [vmem:[%s5411_s18 + $0x7a0] sm:$0xff]  ;;  %763 = vst [vmem:[%s5416_s19 + $0x3c0] sm:$0xff] %v762_v56  ;;  %765 = vst [vmem:[%s5416_s19 + $0x3c8] sm:$0xff] %v764_v57  ;;  %v768_v59 = vld [vmem:[%s5411_s18 + $0x7a8] sm:$0xff] }
  0x54   : > { %767 = vst [vmem:[%s5416_s19 + $0x3d0] sm:$0xff] %v766_v58  ;;  %v770_v60 = vld [vmem:[%s5411_s18 + $0x7c0] sm:$0xff]  ;;  %v772_v61 = vld [vmem:[%s5411_s18 + $0x7c8] sm:$0xff]  ;;  %769 = vst [vmem:[%s5416_s19 + $0x3d8] sm:$0xff] %v768_v59 }
  0x55   : > { %771 = vst [vmem:[%s5416_s19 + $0x3e0] sm:$0xff] %v770_v60  ;;  %773 = vst [vmem:[%s5416_s19 + $0x3e8] sm:$0xff] %v772_v61  ;;  %v774_v62 = vld [vmem:[%s5411_s18 + $0x7e0] sm:$0xff]  ;;  %v776_v63 = vld [vmem:[%s5411_s18 + $0x7e8] sm:$0xff] }
  0x56   : > { %775 = vst [vmem:[%s5416_s19 + $0x3f0] sm:$0xff] %v774_v62  ;;  %777 = vst [vmem:[%s5416_s19 + $0x3f8] sm:$0xff] %v776_v63 }
  0x57 PF: > { %p4180_p10 = scmp.ge.s32.totalorder %s5307_s27, 1  ;;  %p782_p11 = scmp.lt.s32.totalorder %s5307_s27, 3 }
  0x59   : > { %p783_p12 = pnand %p4180_p10, %p782_p11 }
  0x5a   : > { %v4183_v0 = vld [vmem:[%s6658_s1 + $0x2] sm:$0x3] (!%p783_p12)  ;;  %vm1391_vm0 = vcmask (!%p783_p12), 1041408   ;;  %s5677_s22 = sand.u32 (!%p783_p12), 1, %s5299_s25   ;;  %vm823_vm1 = vcmask (!%p783_p12), 31744   ;;  %v5309_v3 = vmov (!%p783_p12), 0.0  }
  0x5b   : > { %786 = sbr.rel (%p783_p12) target bundleno = 1318 (0x526), region = 82  ;;  %5198 = vmatprep.subr.msk.bf16.mxu0 (!%p783_p12), %vm1391_vm0, %v4183_v0  ;;  %v1393_v1 = vsel (!%p783_p12), %vm1391_vm0, %v4183_v0, 0  ;;  %s4181_s23 = sshll.u32 (!%p783_p12), %s5677_s22, 10  ;;  %v5685_v2 = vld [vmem:[%s6658_s1] sm:$0x3] (!%p783_p12)  ;;  %824 = vst.msk [vmem:[#allocation2] sm:$0xff] (!%p783_p12), %vm823_vm1, %v5309_v3  ;;  %5199 = vmatprep.subr.msk.bf16.mxu1 (!%p783_p12), %vm1391_vm0, %v4183_v0 }
  0x5c   : > { %825 = vst.msk [vmem:[#allocation2 + $0x8] sm:$0xff] (!%p783_p12), %vm823_vm1, %v5309_v3  ;;  %vm829_vm2 = vcmask (!%p783_p12), 261120   ;;  %4595 = vmatpush3.bf16.msra.mxu0 (!%p783_p12), %v1393_v1  ;;  %vm835_vm3 = vcmask (!%p783_p12), 523264   ;;  %v5695_v4 = vld [vmem:[%s6658_s1 + $0x4] sm:$0x3] (!%p783_p12)  ;;  %4973 = vmatpush3.bf16.msra.mxu1 (!%p783_p12), %v1393_v1  ;;  %s5697_s14 = scalar_lea.vmem (!%p783_p12), [#allocation5], %s4181_s23 }
  0x5d   : > { %830 = vst.msk [vmem:[#allocation3] sm:$0xff] (!%p783_p12), %vm829_vm2, %v5309_v3  ;;  %831 = vst.msk [vmem:[#allocation3 + $0x8] sm:$0xff] (!%p783_p12), %vm829_vm2, %v5309_v3  ;;  %v841_v5 = vld [vmem:[%s5697_s14] sm:$0xff] (!%p783_p12)  ;;  %v842_v6 = vld [vmem:[%s5697_s14 + $0x8] sm:$0xff] (!%p783_p12)  ;;  %5200 = vmatprep.subr.msk.bf16.mxu0 (!%p783_p12), %vm1391_vm0, %v5685_v2  ;;  %v5708_v8 = vsel (!%p783_p12), %vm1391_vm0, %v5695_v4, 0  ;;  %v1781_v38 = vsel (!%p783_p12), %vm1391_vm0, %v5685_v2, 0 }
  0x5e   : > { %v845_v7 = vld [vmem:[%s5697_s14 + $0x20] sm:$0xff] (!%p783_p12)  ;;  %836 = vst.msk [vmem:[#allocation4] sm:$0xff] (!%p783_p12), %vm835_vm3, %v5309_v3  ;;  %837 = vst.msk [vmem:[#allocation4 + $0x8] sm:$0xff] (!%p783_p12), %vm835_vm3, %v5309_v3  ;;  %v846_v9 = vld [vmem:[%s5697_s14 + $0x28] sm:$0xff] (!%p783_p12)  ;;  %s4182_s18 = sshll.u32 (!%p783_p12), %s5677_s22, 7  ;;  %s4064_s20 = scalar_lea.sflag (!%p783_p12), [#allocation7], %s5677_s22 }
  0x5f   : > { %970 = vst.msk [vmem:[#allocation2 + $0x10] sm:$0xff] (!%p783_p12), %vm823_vm1, %v841_v5  ;;  %971 = vst.msk [vmem:[#allocation2 + $0x18] sm:$0xff] (!%p783_p12), %vm823_vm1, %v842_v6  ;;  %v849_v10 = vld [vmem:[%s5697_s14 + $0x40] sm:$0xff] (!%p783_p12)  ;;  %v850_v11 = vld [vmem:[%s5697_s14 + $0x48] sm:$0xff] (!%p783_p12)  ;;  %s6600_s19 = scalar_lea.vmem (!%p783_p12), [#allocation6], %s4182_s18 }
  0x60   : > { %974 = vst.msk [vmem:[#allocation2 + $0x30] sm:$0xff] (!%p783_p12), %vm823_vm1, %v845_v7  ;;  %975 = vst.msk [vmem:[#allocation2 + $0x38] sm:$0xff] (!%p783_p12), %vm823_vm1, %v846_v9  ;;  %v853_v12 = vld [vmem:[%s5697_s14 + $0x60] sm:$0xff] (!%p783_p12)  ;;  %v854_v13 = vld [vmem:[%s5697_s14 + $0x68] sm:$0xff] (!%p783_p12) }
  0x61   : > { %978 = vst.msk [vmem:[#allocation2 + $0x50] sm:$0xff] (!%p783_p12), %vm823_vm1, %v849_v10  ;;  %979 = vst.msk [vmem:[#allocation2 + $0x58] sm:$0xff] (!%p783_p12), %vm823_vm1, %v850_v11  ;;  %v857_v14 = vld [vmem:[%s5697_s14 + $0x80] sm:$0xff] (!%p783_p12)  ;;  %v858_v15 = vld [vmem:[%s5697_s14 + $0x88] sm:$0xff] (!%p783_p12) }
  0x62   : > { %982 = vst.msk [vmem:[#allocation2 + $0x70] sm:$0xff] %vm823_vm1, %v853_v12  ;;  %983 = vst.msk [vmem:[#allocation2 + $0x78] sm:$0xff] %vm823_vm1, %v854_v13  ;;  %v861_v16 = vld [vmem:[%s5697_s14 + $0xa0] sm:$0xff]  ;;  %v862_v17 = vld [vmem:[%s5697_s14 + $0xa8] sm:$0xff] }
  0x63   : > { %986 = vst.msk [vmem:[#allocation2 + $0x90] sm:$0xff] %vm823_vm1, %v857_v14  ;;  %987 = vst.msk [vmem:[#allocation2 + $0x98] sm:$0xff] %vm823_vm1, %v858_v15  ;;  %v865_v18 = vld [vmem:[%s5697_s14 + $0xc0] sm:$0xff]  ;;  %v866_v19 = vld [vmem:[%s5697_s14 + $0xc8] sm:$0xff] }
  0x64   : > { %990 = vst.msk [vmem:[#allocation2 + $0xb0] sm:$0xff] %vm823_vm1, %v861_v16  ;;  %991 = vst.msk [vmem:[#allocation2 + $0xb8] sm:$0xff] %vm823_vm1, %v862_v17  ;;  %v869_v20 = vld [vmem:[%s5697_s14 + $0xe0] sm:$0xff]  ;;  %v870_v21 = vld [vmem:[%s5697_s14 + $0xe8] sm:$0xff] }
  0x65   : > { %994 = vst.msk [vmem:[#allocation2 + $0xd0] sm:$0xff] %vm823_vm1, %v865_v18  ;;  %995 = vst.msk [vmem:[#allocation2 + $0xd8] sm:$0xff] %vm823_vm1, %v866_v19  ;;  %v873_v22 = vld [vmem:[%s5697_s14 + $0x100] sm:$0xff]  ;;  %v874_v23 = vld [vmem:[%s5697_s14 + $0x108] sm:$0xff] }
  0x66   : > { %998 = vst.msk [vmem:[#allocation2 + $0xf0] sm:$0xff] %vm823_vm1, %v869_v20  ;;  %999 = vst.msk [vmem:[#allocation2 + $0xf8] sm:$0xff] %vm823_vm1, %v870_v21  ;;  %v877_v24 = vld [vmem:[%s5697_s14 + $0x120] sm:$0xff]  ;;  %v878_v25 = vld [vmem:[%s5697_s14 + $0x128] sm:$0xff] }
  0x67   : > { %1002 = vst.msk [vmem:[#allocation2 + $0x110] sm:$0xff] %vm823_vm1, %v873_v22  ;;  %1003 = vst.msk [vmem:[#allocation2 + $0x118] sm:$0xff] %vm823_vm1, %v874_v23  ;;  %v881_v26 = vld [vmem:[%s5697_s14 + $0x140] sm:$0xff]  ;;  %v882_v27 = vld [vmem:[%s5697_s14 + $0x148] sm:$0xff] }
  0x68   : > { %1006 = vst.msk [vmem:[#allocation2 + $0x130] sm:$0xff] %vm823_vm1, %v877_v24  ;;  %1007 = vst.msk [vmem:[#allocation2 + $0x138] sm:$0xff] %vm823_vm1, %v878_v25  ;;  %v885_v28 = vld [vmem:[%s5697_s14 + $0x160] sm:$0xff]  ;;  %v886_v29 = vld [vmem:[%s5697_s14 + $0x168] sm:$0xff] }
  0x69   : > { %1010 = vst.msk [vmem:[#allocation2 + $0x150] sm:$0xff] %vm823_vm1, %v881_v26  ;;  %v1100_v30 = vld [vmem:[#allocation2 + $0x10] sm:$0xff]  ;;  %v1101_v31 = vld [vmem:[#allocation2 + $0x18] sm:$0xff]  ;;  %1011 = vst.msk [vmem:[#allocation2 + $0x158] sm:$0xff] %vm823_vm1, %v882_v27 }
  0x6a   : > { %v1104_v32 = vld [vmem:[#allocation2 + $0x30] sm:$0xff]  ;;  %1014 = vst.msk [vmem:[#allocation2 + $0x170] sm:$0xff] %vm823_vm1, %v885_v28  ;;  %1015 = vst.msk [vmem:[#allocation2 + $0x178] sm:$0xff] %vm823_vm1, %v886_v29  ;;  %v1261_v33 = vpack.c.bf16 %v1101_v31, %v1100_v30  ;;  %v1105_v34 = vld [vmem:[#allocation2 + $0x38] sm:$0xff] }
  0x6b   : > { %v1108_v35 = vld [vmem:[#allocation2 + $0x50] sm:$0xff]  ;;  %v1109_v36 = vld [vmem:[#allocation2 + $0x58] sm:$0xff]  ;;  %v1262_v37 = vpack.c.bf16 %v1105_v34, %v1104_v32  ;;  %v889_v45 = vld [vmem:[%s5697_s14 + $0x180] sm:$0xff] }
  0x6c   : > { %v1263_v39 = vpack.c.bf16 %v1109_v36, %v1108_v35  ;;  %4596 = vmatprep.mubr.msk.bf16.mxu0 %vm823_vm1, %v1261_v33  ;;  %v1112_v40 = vld [vmem:[#allocation2 + $0x70] sm:$0xff]  ;;  %v1113_v41 = vld [vmem:[#allocation2 + $0x78] sm:$0xff]  ;;  %v890_v46 = vld [vmem:[%s5697_s14 + $0x188] sm:$0xff]  ;;  %1018 = vst.msk [vmem:[#allocation2 + $0x190] sm:$0xff] %vm823_vm1, %v889_v45 }
  0x6d   : > { %4597 = vmatmul.mubr.msk.bf16.vlgmr.msra.gmra.mrb[0].mxu0 %vm823_vm1, %v1262_v37  ;;  %v1116_v42 = vld [vmem:[#allocation2 + $0x90] sm:$0xff]  ;;  %v1117_v43 = vld [vmem:[#allocation2 + $0x98] sm:$0xff]  ;;  %v1264_v44 = vpack.c.bf16 %v1113_v41, %v1112_v40  ;;  %v893_v47 = vld [vmem:[%s5697_s14 + $0x1a0] sm:$0xff]  ;;  %1019 = vst.msk [vmem:[#allocation2 + $0x198] sm:$0xff] %vm823_vm1, %v890_v46 }
  0x6e   : > { %4661 = vmatpush3.bf16.msra.mxu0 %v1781_v38  ;;  %4600 = vmatprep.mubr.msk.bf16.mxu0 %vm823_vm1, %v1263_v39  ;;  %v1265_v48 = vpack.c.bf16 %v1117_v43, %v1116_v42  ;;  %v894_v49 = vld [vmem:[%s5697_s14 + $0x1a8] sm:$0xff]  ;;  %1022 = vst.msk [vmem:[#allocation2 + $0x1b0] sm:$0xff] %vm823_vm1, %v893_v47  ;;  %v897_v50 = vld [vmem:[%s5697_s14 + $0x1c0] sm:$0xff]  ;;  %v1120_v55 = vld [vmem:[#allocation2 + $0xb0] sm:$0xff] }
  0x6f   : > { %5201 = vmatprep.subr.msk.bf16.mxu0 %vm1391_vm0, %v5695_v4  ;;  %v898_v51 = vld [vmem:[%s5697_s14 + $0x1c8] sm:$0xff]  ;;  %1023 = vst.msk [vmem:[#allocation2 + $0x1b8] sm:$0xff] %vm823_vm1, %v894_v49  ;;  %1026 = vst.msk [vmem:[#allocation2 + $0x1d0] sm:$0xff] %vm823_vm1, %v897_v50  ;;  %v901_v52 = vld [vmem:[%s5697_s14 + $0x1e0] sm:$0xff] }
  0x70   : > { %1027 = vst.msk [vmem:[#allocation2 + $0x1d8] sm:$0xff] %vm823_vm1, %v898_v51  ;;  %v902_v53 = vld [vmem:[%s5697_s14 + $0x1e8] sm:$0xff]  ;;  %v905_v54 = vld [vmem:[%s5697_s14 + $0x200] sm:$0xff]  ;;  %v1121_v56 = vld [vmem:[#allocation2 + $0xb8] sm:$0xff] }
  0x71   : > { %1030 = vst.msk [vmem:[#allocation2 + $0x1f0] sm:$0xff] %vm823_vm1, %v901_v52  ;;  %1031 = vst.msk [vmem:[#allocation2 + $0x1f8] sm:$0xff] %vm823_vm1, %v902_v53  ;;  %v906_v57 = vld [vmem:[%s5697_s14 + $0x208] sm:$0xff]  ;;  %v909_v58 = vld [vmem:[%s5697_s14 + $0x220] sm:$0xff]  ;;  %v1266_v9 = vpack.c.bf16 %v1121_v56, %v1120_v55 }
  0x72   : > { %1034 = vst.msk [vmem:[#allocation2 + $0x210] sm:$0xff] %vm823_vm1, %v905_v54  ;;  %v910_v59 = vld [vmem:[%s5697_s14 + $0x228] sm:$0xff]  ;;  %1035 = vst.msk [vmem:[#allocation2 + $0x218] sm:$0xff] %vm823_vm1, %v906_v57  ;;  %v913_v60 = vld [vmem:[%s5697_s14 + $0x240] sm:$0xff] }
  0x73   : > { %1038 = vst.msk [vmem:[#allocation2 + $0x230] sm:$0xff] %vm823_vm1, %v909_v58  ;;  %1039 = vst.msk [vmem:[#allocation2 + $0x238] sm:$0xff] %vm823_vm1, %v910_v59  ;;  %v914_v61 = vld [vmem:[%s5697_s14 + $0x248] sm:$0xff]  ;;  %v917_v62 = vld [vmem:[%s5697_s14 + $0x260] sm:$0xff] }
  0x74   : > { %v1124_v63 = vld [vmem:[#allocation2 + $0xd0] sm:$0xff]  ;;  %v1125_v0 = vld [vmem:[#allocation2 + $0xd8] sm:$0xff]  ;;  %1042 = vst.msk [vmem:[#allocation2 + $0x250] sm:$0xff] %vm823_vm1, %v913_v60  ;;  %1043 = vst.msk [vmem:[#allocation2 + $0x258] sm:$0xff] %vm823_vm1, %v914_v61 }
  0x75   : > { %4601 = vmatmul.mubr.msk.bf16.gmra.mrb[4].mxu0 %vm823_vm1, %v1264_v44  ;;  %v918_v1 = vld [vmem:[%s5697_s14 + $0x268] sm:$0xff]  ;;  %1046 = vst.msk [vmem:[#allocation2 + $0x270] sm:$0xff] %vm823_vm1, %v917_v62  ;;  %v843_v2 = vld [vmem:[%s5697_s14 + $0x10] sm:$0xff]  ;;  %v844_v3 = vld [vmem:[%s5697_s14 + $0x18] sm:$0xff]  ;;  %v1267_v10 = vpack.c.bf16 %v1125_v0, %v1124_v63 }
  0x76   : > { %4604 = vmatprep.mubr.msk.bf16.mxu0 %vm823_vm1, %v1265_v48  ;;  %1047 = vst.msk [vmem:[#allocation2 + $0x278] sm:$0xff] %vm823_vm1, %v918_v1  ;;  %v847_v4 = vld [vmem:[%s5697_s14 + $0x30] sm:$0xff]  ;;  %972 = vst.msk [vmem:[#allocation2 + $0x20] sm:$0xff] %vm823_vm1, %v843_v2  ;;  %v848_v5 = vld [vmem:[%s5697_s14 + $0x38] sm:$0xff] }
  0x77   : > { %973 = vst.msk [vmem:[#allocation2 + $0x28] sm:$0xff] %vm823_vm1, %v844_v3  ;;  %976 = vst.msk [vmem:[#allocation2 + $0x40] sm:$0xff] %vm823_vm1, %v847_v4  ;;  %v851_v6 = vld [vmem:[%s5697_s14 + $0x50] sm:$0xff]  ;;  %v852_v7 = vld [vmem:[%s5697_s14 + $0x58] sm:$0xff] }
  0x78   : > { %977 = vst.msk [vmem:[#allocation2 + $0x48] sm:$0xff] %vm823_vm1, %v848_v5  ;;  %980 = vst.msk [vmem:[#allocation2 + $0x60] sm:$0xff] %vm823_vm1, %v851_v6  ;;  %v1128_v11 = vld [vmem:[#allocation2 + $0xf0] sm:$0xff]  ;;  %v1129_v12 = vld [vmem:[#allocation2 + $0xf8] sm:$0xff] }
  0x79   : > { %981 = vst.msk [vmem:[#allocation2 + $0x68] sm:$0xff] %vm823_vm1, %v852_v7  ;;  %v855_v13 = vld [vmem:[%s5697_s14 + $0x70] sm:$0xff]  ;;  %v856_v14 = vld [vmem:[%s5697_s14 + $0x78] sm:$0xff]  ;;  %v1268_v17 = vpack.c.bf16 %v1129_v12, %v1128_v11 }
  0x7a   : > { %v1132_v15 = vld [vmem:[#allocation2 + $0x110] sm:$0xff]  ;;  %v1133_v16 = vld [vmem:[#allocation2 + $0x118] sm:$0xff]  ;;  %984 = vst.msk [vmem:[#allocation2 + $0x80] sm:$0xff] %vm823_vm1, %v855_v13  ;;  %985 = vst.msk [vmem:[#allocation2 + $0x88] sm:$0xff] %vm823_vm1, %v856_v14 }
  0x7b   : > { %v859_v18 = vld [vmem:[%s5697_s14 + $0x90] sm:$0xff]  ;;  %v860_v19 = vld [vmem:[%s5697_s14 + $0x98] sm:$0xff]  ;;  %v1269_v21 = vpack.c.bf16 %v1133_v16, %v1132_v15 }
  0x7c   : > { %v863_v20 = vld [vmem:[%s5697_s14 + $0xb0] sm:$0xff]  ;;  %988 = vst.msk [vmem:[#allocation2 + $0xa0] sm:$0xff] %vm823_vm1, %v859_v18  ;;  %989 = vst.msk [vmem:[#allocation2 + $0xa8] sm:$0xff] %vm823_vm1, %v860_v19  ;;  %v864_v22 = vld [vmem:[%s5697_s14 + $0xb8] sm:$0xff] }
  0x7d   : > { %4605 = vmatmul.mubr.msk.bf16.gmra.mrb[8].mxu0 %vm823_vm1, %v1266_v9  ;;  %992 = vst.msk [vmem:[#allocation2 + $0xc0] sm:$0xff] %vm823_vm1, %v863_v20  ;;  %v867_v23 = vld [vmem:[%s5697_s14 + $0xd0] sm:$0xff]  ;;  %v868_v24 = vld [vmem:[%s5697_s14 + $0xd8] sm:$0xff]  ;;  %993 = vst.msk [vmem:[#allocation2 + $0xc8] sm:$0xff] %vm823_vm1, %v864_v22 }
  0x7e   : > { %4608 = vmatprep.mubr.msk.bf16.mxu0 %vm823_vm1, %v1267_v10  ;;  %996 = vst.msk [vmem:[#allocation2 + $0xe0] sm:$0xff] %vm823_vm1, %v867_v23  ;;  %997 = vst.msk [vmem:[#allocation2 + $0xe8] sm:$0xff] %vm823_vm1, %v868_v24  ;;  %v871_v25 = vld [vmem:[%s5697_s14 + $0xf0] sm:$0xff]  ;;  %v872_v26 = vld [vmem:[%s5697_s14 + $0xf8] sm:$0xff] }
  0x7f   : > { %v875_v27 = vld [vmem:[%s5697_s14 + $0x110] sm:$0xff]  ;;  %v1137_v29 = vld [vmem:[#allocation2 + $0x138] sm:$0xff]  ;;  %1000 = vst.msk [vmem:[#allocation2 + $0x100] sm:$0xff] %vm823_vm1, %v871_v25  ;;  %1001 = vst.msk [vmem:[#allocation2 + $0x108] sm:$0xff] %vm823_vm1, %v872_v26 }
  0x80   : > { %v1136_v28 = vld [vmem:[#allocation2 + $0x130] sm:$0xff]  ;;  %v876_v30 = vld [vmem:[%s5697_s14 + $0x118] sm:$0xff]  ;;  %1004 = vst.msk [vmem:[#allocation2 + $0x120] sm:$0xff] %vm823_vm1, %v875_v27 }
  0x81   : > { %v879_v31 = vld [vmem:[%s5697_s14 + $0x130] sm:$0xff]  ;;  %v880_v32 = vld [vmem:[%s5697_s14 + $0x138] sm:$0xff]  ;;  %1005 = vst.msk [vmem:[#allocation2 + $0x128] sm:$0xff] %vm823_vm1, %v876_v30  ;;  %v1270_v45 = vpack.c.bf16 %v1137_v29, %v1136_v28 }
  0x82   : > { %1008 = vst.msk [vmem:[#allocation2 + $0x140] sm:$0xff] %vm823_vm1, %v879_v31  ;;  %1009 = vst.msk [vmem:[#allocation2 + $0x148] sm:$0xff] %vm823_vm1, %v880_v32  ;;  %v883_v33 = vld [vmem:[%s5697_s14 + $0x150] sm:$0xff]  ;;  %v884_v34 = vld [vmem:[%s5697_s14 + $0x158] sm:$0xff] }
  0x83   : > { %v887_v35 = vld [vmem:[%s5697_s14 + $0x170] sm:$0xff]  ;;  %v1141_v37 = vld [vmem:[#allocation2 + $0x158] sm:$0xff]  ;;  %1012 = vst.msk [vmem:[#allocation2 + $0x160] sm:$0xff] %vm823_vm1, %v883_v33  ;;  %1013 = vst.msk [vmem:[#allocation2 + $0x168] sm:$0xff] %vm823_vm1, %v884_v34 }
  0x84   : > { %v1140_v36 = vld [vmem:[#allocation2 + $0x150] sm:$0xff]  ;;  %v888_v38 = vld [vmem:[%s5697_s14 + $0x178] sm:$0xff]  ;;  %1016 = vst.msk [vmem:[#allocation2 + $0x180] sm:$0xff] %vm823_vm1, %v887_v35 }
  0x85   : > { %4609 = vmatmul.mubr.msk.bf16.gmra.mrb[12].mxu0 %vm823_vm1, %v1268_v17  ;;  %1017 = vst.msk [vmem:[#allocation2 + $0x188] sm:$0xff] %vm823_vm1, %v888_v38  ;;  %v891_v39 = vld [vmem:[%s5697_s14 + $0x190] sm:$0xff]  ;;  %v892_v40 = vld [vmem:[%s5697_s14 + $0x198] sm:$0xff]  ;;  %v1271_v46 = vpack.c.bf16 %v1141_v37, %v1140_v36 }
  0x86   : > { %4612 = vmatprep.mubr.msk.bf16.mxu0 %vm823_vm1, %v1269_v21  ;;  %v895_v41 = vld [vmem:[%s5697_s14 + $0x1b0] sm:$0xff]  ;;  %1020 = vst.msk [vmem:[#allocation2 + $0x1a0] sm:$0xff] %vm823_vm1, %v891_v39  ;;  %1021 = vst.msk [vmem:[#allocation2 + $0x1a8] sm:$0xff] %vm823_vm1, %v892_v40  ;;  %v896_v42 = vld [vmem:[%s5697_s14 + $0x1b8] sm:$0xff] }
  0x87   : > { %1024 = vst.msk [vmem:[#allocation2 + $0x1c0] sm:$0xff] %vm823_vm1, %v895_v41  ;;  %v899_v43 = vld [vmem:[%s5697_s14 + $0x1d0] sm:$0xff]  ;;  %v900_v44 = vld [vmem:[%s5697_s14 + $0x1d8] sm:$0xff]  ;;  %1025 = vst.msk [vmem:[#allocation2 + $0x1c8] sm:$0xff] %vm823_vm1, %v896_v42 }
  0x88   : > { %1028 = vst.msk [vmem:[#allocation2 + $0x1e0] sm:$0xff] %vm823_vm1, %v899_v43  ;;  %1029 = vst.msk [vmem:[#allocation2 + $0x1e8] sm:$0xff] %vm823_vm1, %v900_v44  ;;  %v1144_v47 = vld [vmem:[#allocation2 + $0x170] sm:$0xff]  ;;  %v1145_v48 = vld [vmem:[#allocation2 + $0x178] sm:$0xff] }
  0x89   : > { %v903_v49 = vld [vmem:[%s5697_s14 + $0x1f0] sm:$0xff]  ;;  %v904_v50 = vld [vmem:[%s5697_s14 + $0x1f8] sm:$0xff]  ;;  %v1272_v53 = vpack.c.bf16 %v1145_v48, %v1144_v47  ;;  %v1098_v42 = vld [vmem:[#allocation2] sm:$0xff] }
  0x8a   : > { %v1148_v51 = vld [vmem:[#allocation2 + $0x190] sm:$0xff]  ;;  %v1149_v52 = vld [vmem:[#allocation2 + $0x198] sm:$0xff]  ;;  %1032 = vst.msk [vmem:[#allocation2 + $0x200] sm:$0xff] %vm823_vm1, %v903_v49  ;;  %1033 = vst.msk [vmem:[#allocation2 + $0x208] sm:$0xff] %vm823_vm1, %v904_v50 }
  0x8b   : > { %v907_v54 = vld [vmem:[%s5697_s14 + $0x210] sm:$0xff]  ;;  %v908_v55 = vld [vmem:[%s5697_s14 + $0x218] sm:$0xff]  ;;  %v1273_v57 = vpack.c.bf16 %v1149_v52, %v1148_v51  ;;  %v1099_v43 = vld [vmem:[#allocation2 + $0x8] sm:$0xff] }
  0x8c   : > { %v911_v56 = vld [vmem:[%s5697_s14 + $0x230] sm:$0xff]  ;;  %1036 = vst.msk [vmem:[#allocation2 + $0x220] sm:$0xff] %vm823_vm1, %v907_v54  ;;  %1037 = vst.msk [vmem:[#allocation2 + $0x228] sm:$0xff] %vm823_vm1, %v908_v55  ;;  %v912_v58 = vld [vmem:[%s5697_s14 + $0x238] sm:$0xff] }
  0x8d   : > { %4613 = vmatmul.mubr.msk.bf16.gmra.mrb[16].mxu0 %vm823_vm1, %v1270_v45  ;;  %1040 = vst.msk [vmem:[#allocation2 + $0x240] sm:$0xff] %vm823_vm1, %v911_v56  ;;  %v915_v59 = vld [vmem:[%s5697_s14 + $0x250] sm:$0xff]  ;;  %v916_v60 = vld [vmem:[%s5697_s14 + $0x258] sm:$0xff]  ;;  %1041 = vst.msk [vmem:[#allocation2 + $0x248] sm:$0xff] %vm823_vm1, %v912_v58  ;;  %v1228_v45 = vpack.c.bf16 %v1099_v43, %v1098_v42 }
  0x8e   : > { %4616 = vmatprep.mubr.msk.bf16.mxu0 %vm823_vm1, %v1271_v46  ;;  %1044 = vst.msk [vmem:[#allocation2 + $0x260] sm:$0xff] %vm823_vm1, %v915_v59  ;;  %1045 = vst.msk [vmem:[#allocation2 + $0x268] sm:$0xff] %vm823_vm1, %v916_v60  ;;  %v919_v61 = vld [vmem:[%s5697_s14 + $0x270] sm:$0xff]  ;;  %v920_v62 = vld [vmem:[%s5697_s14 + $0x278] sm:$0xff] }
  0x8f   : > { %v923_v63 = vld [vmem:[%s5697_s14 + $0x290] sm:$0xff]  ;;  %v1153_v1 = vld [vmem:[#allocation2 + $0x1b8] sm:$0xff]  ;;  %1048 = vst.msk [vmem:[#allocation2 + $0x280] sm:$0xff] %vm823_vm1, %v919_v61  ;;  %1049 = vst.msk [vmem:[#allocation2 + $0x288] sm:$0xff] %vm823_vm1, %v920_v62 }
  0x90   : > { %v1152_v0 = vld [vmem:[#allocation2 + $0x1b0] sm:$0xff]  ;;  %v924_v2 = vld [vmem:[%s5697_s14 + $0x298] sm:$0xff]  ;;  %1052 = vst.msk [vmem:[#allocation2 + $0x2a0] sm:$0xff] %vm823_vm1, %v923_v63  ;;  %v1102_v46 = vld [vmem:[#allocation2 + $0x20] sm:$0xff] }
  0x91   : > { %v927_v3 = vld [vmem:[%s5697_s14 + $0x2b0] sm:$0xff]  ;;  %v928_v4 = vld [vmem:[%s5697_s14 + $0x2b8] sm:$0xff]  ;;  %1053 = vst.msk [vmem:[#allocation2 + $0x2a8] sm:$0xff] %vm823_vm1, %v924_v2  ;;  %v1274_v14 = vpack.c.bf16 %v1153_v1, %v1152_v0  ;;  %v1103_v47 = vld [vmem:[#allocation2 + $0x28] sm:$0xff] }
  0x92   : > { %1056 = vst.msk [vmem:[#allocation2 + $0x2c0] sm:$0xff] %vm823_vm1, %v927_v3  ;;  %1057 = vst.msk [vmem:[#allocation2 + $0x2c8] sm:$0xff] %vm823_vm1, %v928_v4  ;;  %v931_v5 = vld [vmem:[%s5697_s14 + $0x2d0] sm:$0xff]  ;;  %v932_v6 = vld [vmem:[%s5697_s14 + $0x2d8] sm:$0xff]  ;;  %v5936_v50 = vpack.c.bf16 %v1103_v47, %v1102_v46 }
  0x93   : > { %v935_v7 = vld [vmem:[%s5697_s14 + $0x2f0] sm:$0xff]  ;;  %v1157_v10 = vld [vmem:[#allocation2 + $0x1d8] sm:$0xff]  ;;  %1060 = vst.msk [vmem:[#allocation2 + $0x2e0] sm:$0xff] %vm823_vm1, %v931_v5  ;;  %1061 = vst.msk [vmem:[#allocation2 + $0x2e8] sm:$0xff] %vm823_vm1, %v932_v6 }
  0x94   : > { %v1156_v9 = vld [vmem:[#allocation2 + $0x1d0] sm:$0xff]  ;;  %v936_v11 = vld [vmem:[%s5697_s14 + $0x2f8] sm:$0xff]  ;;  %1064 = vst.msk [vmem:[#allocation2 + $0x300] sm:$0xff] %vm823_vm1, %v935_v7  ;;  %v1106_v48 = vld [vmem:[#allocation2 + $0x40] sm:$0xff] }
  0x95   : > { %4617 = vmatmul.mubr.msk.bf16.gmra.mrb[20].mxu0 %vm823_vm1, %v1272_v53  ;;  %1065 = vst.msk [vmem:[#allocation2 + $0x308] sm:$0xff] %vm823_vm1, %v936_v11  ;;  %v939_v12 = vld [vmem:[%s5697_s14 + $0x310] sm:$0xff]  ;;  %v940_v13 = vld [vmem:[%s5697_s14 + $0x318] sm:$0xff]  ;;  %v1275_v15 = vpack.c.bf16 %v1157_v10, %v1156_v9  ;;  %v1107_v49 = vld [vmem:[#allocation2 + $0x48] sm:$0xff] }
  0x96   : > { %4620 = vmatprep.mubr.msk.bf16.mxu0 %vm823_vm1, %v1273_v57  ;;  %1068 = vst.msk [vmem:[#allocation2 + $0x320] sm:$0xff] %vm823_vm1, %v939_v12  ;;  %1069 = vst.msk [vmem:[#allocation2 + $0x328] sm:$0xff] %vm823_vm1, %v940_v13  ;;  %v1160_v16 = vld [vmem:[#allocation2 + $0x1f0] sm:$0xff]  ;;  %v1161_v17 = vld [vmem:[#allocation2 + $0x1f8] sm:$0xff]  ;;  %v5938_v51 = vpack.c.bf16 %v1107_v49, %v1106_v48 }
  0x97   : > { %v943_v18 = vld [vmem:[%s5697_s14 + $0x330] sm:$0xff]  ;;  %v944_v19 = vld [vmem:[%s5697_s14 + $0x338] sm:$0xff]  ;;  %v1276_v24 = vpack.c.bf16 %v1161_v17, %v1160_v16  ;;  %v1110_v52 = vld [vmem:[#allocation2 + $0x60] sm:$0xff] }
  0x98   : > { %v1164_v20 = vld [vmem:[#allocation2 + $0x210] sm:$0xff]  ;;  %v1165_v21 = vld [vmem:[#allocation2 + $0x218] sm:$0xff]  ;;  %1072 = vst.msk [vmem:[#allocation2 + $0x340] sm:$0xff] %vm823_vm1, %v943_v18  ;;  %1073 = vst.msk [vmem:[#allocation2 + $0x348] sm:$0xff] %vm823_vm1, %v944_v19 }
  0x99   : > { %v947_v22 = vld [vmem:[%s5697_s14 + $0x350] sm:$0xff]  ;;  %v948_v23 = vld [vmem:[%s5697_s14 + $0x358] sm:$0xff]  ;;  %v1277_v27 = vpack.c.bf16 %v1165_v21, %v1164_v20  ;;  %v1111_v53 = vld [vmem:[#allocation2 + $0x68] sm:$0xff] }
  0x9a   : > { %1076 = vst.msk [vmem:[#allocation2 + $0x360] sm:$0xff] %vm823_vm1, %v947_v22  ;;  %1077 = vst.msk [vmem:[#allocation2 + $0x368] sm:$0xff] %vm823_vm1, %v948_v23  ;;  %v951_v25 = vld [vmem:[%s5697_s14 + $0x370] sm:$0xff]  ;;  %v952_v26 = vld [vmem:[%s5697_s14 + $0x378] sm:$0xff]  ;;  %v5945_v56 = vpack.c.bf16 %v1111_v53, %v1110_v52 }
  0x9b   : > { %1080 = vst.msk [vmem:[#allocation2 + $0x380] sm:$0xff] %vm823_vm1, %v951_v25  ;;  %1081 = vst.msk [vmem:[#allocation2 + $0x388] sm:$0xff] %vm823_vm1, %v952_v26  ;;  %v955_v28 = vld [vmem:[%s5697_s14 + $0x390] sm:$0xff]  ;;  %v956_v29 = vld [vmem:[%s5697_s14 + $0x398] sm:$0xff] }
  0x9c   : > { %1084 = vst.msk [vmem:[#allocation2 + $0x3a0] sm:$0xff] %vm823_vm1, %v955_v28  ;;  %1085 = vst.msk [vmem:[#allocation2 + $0x3a8] sm:$0xff] %vm823_vm1, %v956_v29  ;;  %v1168_v30 = vld [vmem:[#allocation2 + $0x230] sm:$0xff]  ;;  %v1169_v31 = vld [vmem:[#allocation2 + $0x238] sm:$0xff] }
  0x9d   : > { %4621 = vmatmul.mubr.msk.bf16.gmra.mrb[24].mxu0 %vm823_vm1, %v1274_v14  ;;  %v1172_v32 = vld [vmem:[#allocation2 + $0x250] sm:$0xff]  ;;  %v1173_v33 = vld [vmem:[#allocation2 + $0x258] sm:$0xff]  ;;  %v1278_v34 = vpack.c.bf16 %v1169_v31, %v1168_v30  ;;  %v1114_v54 = vld [vmem:[#allocation2 + $0x80] sm:$0xff] }
  0x9e   : > { %4624 = vmatprep.mubr.msk.bf16.mxu0 %vm823_vm1, %v1275_v15  ;;  %v959_v35 = vld [vmem:[%s5697_s14 + $0x3b0] sm:$0xff]  ;;  %v1279_v36 = vpack.c.bf16 %v1173_v33, %v1172_v32  ;;  %v960_v37 = vld [vmem:[%s5697_s14 + $0x3b8] sm:$0xff]  ;;  %v1115_v55 = vld [vmem:[#allocation2 + $0x88] sm:$0xff] }
  0x9f   : > { %1088 = vst.msk [vmem:[#allocation2 + $0x3c0] sm:$0xff] %vm823_vm1, %v959_v35  ;;  %1089 = vst.msk [vmem:[#allocation2 + $0x3c8] sm:$0xff] %vm823_vm1, %v960_v37  ;;  %v963_v38 = vld [vmem:[%s5697_s14 + $0x3d0] sm:$0xff]  ;;  %v964_v39 = vld [vmem:[%s5697_s14 + $0x3d8] sm:$0xff]  ;;  %v5947_v57 = vpack.c.bf16 %v1115_v55, %v1114_v54 }
  0xa0   : > { %v1176_v40 = vld [vmem:[#allocation2 + $0x270] sm:$0xff]  ;;  %v1177_v41 = vld [vmem:[#allocation2 + $0x278] sm:$0xff]  ;;  %1092 = vst.msk [vmem:[#allocation2 + $0x3e0] sm:$0xff] %vm823_vm1, %v963_v38  ;;  %1093 = vst.msk [vmem:[#allocation2 + $0x3e8] sm:$0xff] %vm823_vm1, %v964_v39 }
  0xa1   : > { %v1280_v44 = vpack.c.bf16 %v1177_v41, %v1176_v40  ;;  %v1118_v58 = vld [vmem:[#allocation2 + $0xa0] sm:$0xff]  ;;  %v1119_v59 = vld [vmem:[#allocation2 + $0xa8] sm:$0xff] }
  0xa2   : > { %v1123_v60 = vld [vmem:[#allocation2 + $0xc8] sm:$0xff]  ;;  %v5953_v61 = vpack.c.bf16 %v1119_v59, %v1118_v58  ;;  %v1126_v63 = vld [vmem:[#allocation2 + $0xe0] sm:$0xff] }
  0xa3   : > { %v1127_v0 = vld [vmem:[#allocation2 + $0xe8] sm:$0xff]  ;;  %v1130_v1 = vld [vmem:[#allocation2 + $0x100] sm:$0xff] }
  0xa4   : > { %v1131_v2 = vld [vmem:[#allocation2 + $0x108] sm:$0xff]  ;;  %v5961_v3 = vpack.c.bf16 %v1127_v0, %v1126_v63  ;;  %v1134_v5 = vld [vmem:[#allocation2 + $0x120] sm:$0xff] }
  0xa5   : > { %4625 = vmatmul.mubr.msk.bf16.gmra.mrb[28].mxu0 %vm823_vm1, %v1276_v24  ;;  %v5963_v4 = vpack.c.bf16 %v1131_v2, %v1130_v1  ;;  %v1135_v6 = vld [vmem:[#allocation2 + $0x128] sm:$0xff]  ;;  %v1138_v7 = vld [vmem:[#allocation2 + $0x140] sm:$0xff] }
  0xa6   : > { %4628 = vmatprep.mubr.msk.bf16.mxu0 %vm823_vm1, %v1277_v27  ;;  %v1139_v9 = vld [vmem:[#allocation2 + $0x148] sm:$0xff]  ;;  %v5969_v10 = vpack.c.bf16 %v1135_v6, %v1134_v5  ;;  %v1142_v12 = vld [vmem:[#allocation2 + $0x160] sm:$0xff] }
  0xa7   : > { %v5971_v11 = vpack.c.bf16 %v1139_v9, %v1138_v7  ;;  %v1143_v13 = vld [vmem:[#allocation2 + $0x168] sm:$0xff]  ;;  %v1146_v14 = vld [vmem:[#allocation2 + $0x180] sm:$0xff] }
  0xa8   : > { %v1147_v15 = vld [vmem:[#allocation2 + $0x188] sm:$0xff]  ;;  %v5977_v16 = vpack.c.bf16 %v1143_v13, %v1142_v12  ;;  %v1150_v18 = vld [vmem:[#allocation2 + $0x1a0] sm:$0xff] }
  0xa9   : > { %v5979_v17 = vpack.c.bf16 %v1147_v15, %v1146_v14  ;;  %v1151_v19 = vld [vmem:[#allocation2 + $0x1a8] sm:$0xff]  ;;  %v1154_v20 = vld [vmem:[#allocation2 + $0x1c0] sm:$0xff] }
  0xaa   : > { %v1155_v21 = vld [vmem:[#allocation2 + $0x1c8] sm:$0xff]  ;;  %v5985_v22 = vpack.c.bf16 %v1151_v19, %v1150_v18  ;;  %v1158_v24 = vld [vmem:[#allocation2 + $0x1e0] sm:$0xff] }
  0xab   : > { %v5987_v23 = vpack.c.bf16 %v1155_v21, %v1154_v20  ;;  %v1159_v25 = vld [vmem:[#allocation2 + $0x1e8] sm:$0xff]  ;;  %v1162_v26 = vld [vmem:[#allocation2 + $0x200] sm:$0xff] }
  0xac   : > { %v1163_v27 = vld [vmem:[#allocation2 + $0x208] sm:$0xff]  ;;  %v5993_v28 = vpack.c.bf16 %v1159_v25, %v1158_v24  ;;  %v1166_v30 = vld [vmem:[#allocation2 + $0x220] sm:$0xff] }
  0xad   : > { %4629 = vmatmul.mubr.msk.bf16.gmra.mrb[32].mxu0 %vm823_vm1, %v1278_v34  ;;  %v5995_v29 = vpack.c.bf16 %v1163_v27, %v1162_v26  ;;  %v1167_v31 = vld [vmem:[#allocation2 + $0x228] sm:$0xff]  ;;  %v1170_v32 = vld [vmem:[#allocation2 + $0x240] sm:$0xff] }
  0xae   : > { %4632 = vmatprep.mubr.msk.bf16.mxu0 %vm823_vm1, %v1279_v36  ;;  %v1171_v33 = vld [vmem:[#allocation2 + $0x248] sm:$0xff]  ;;  %v6001_v34 = vpack.c.bf16 %v1167_v31, %v1166_v30  ;;  %v1174_v36 = vld [vmem:[#allocation2 + $0x260] sm:$0xff] }
  0xaf   : > { %v6003_v35 = vpack.c.bf16 %v1171_v33, %v1170_v32  ;;  %v1175_v37 = vld [vmem:[#allocation2 + $0x268] sm:$0xff]  ;;  %v1178_v38 = vld [vmem:[#allocation2 + $0x280] sm:$0xff] }
  0xb0   : > { %v921_v39 = vld [vmem:[%s5697_s14 + $0x280] sm:$0xff]  ;;  %v922_v40 = vld [vmem:[%s5697_s14 + $0x288] sm:$0xff] }
  0xb1   : > { %v1179_v41 = vld [vmem:[#allocation2 + $0x288] sm:$0xff]  ;;  %1050 = vst.msk [vmem:[#allocation2 + $0x290] sm:$0xff] %vm823_vm1, %v921_v39  ;;  %1051 = vst.msk [vmem:[#allocation2 + $0x298] sm:$0xff] %vm823_vm1, %v922_v40  ;;  %v925_v42 = vld [vmem:[%s5697_s14 + $0x2a0] sm:$0xff] }
  0xb2   : > { %v926_v43 = vld [vmem:[%s5697_s14 + $0x2a8] sm:$0xff]  ;;  %1054 = vst.msk [vmem:[#allocation2 + $0x2b0] sm:$0xff] %vm823_vm1, %v925_v42  ;;  %v1182_v46 = vld [vmem:[#allocation2 + $0x2a0] sm:$0xff] }
  0xb3   : > { %1055 = vst.msk [vmem:[#allocation2 + $0x2b8] sm:$0xff] %vm823_vm1, %v926_v43  ;;  %v1183_v47 = vld [vmem:[#allocation2 + $0x2a8] sm:$0xff]  ;;  %v1186_v48 = vld [vmem:[#allocation2 + $0x2c0] sm:$0xff] }
  0xb4   : > { %v1187_v49 = vld [vmem:[#allocation2 + $0x2c8] sm:$0xff]  ;;  %v929_v54 = vld [vmem:[%s5697_s14 + $0x2c0] sm:$0xff]  ;;  %v6031_v1 = vpack.c.bf16 %v1183_v47, %v1182_v46 }
  0xb5   : > { %4633 = vmatmul.mubr.msk.bf16.gmra.mrb[36].mxu0 %vm823_vm1, %v1280_v44  ;;  %v6017_v44 = vpack.c.bf16 %v1175_v37, %v1174_v36  ;;  %1058 = vst.msk [vmem:[#allocation2 + $0x2d0] sm:$0xff] %vm823_vm1, %v929_v54  ;;  %v933_v63 = vld [vmem:[%s5697_s14 + $0x2e0] sm:$0xff]  ;;  %v934_v0 = vld [vmem:[%s5697_s14 + $0x2e8] sm:$0xff]  ;;  %v6036_v2 = vpack.c.bf16 %v1187_v49, %v1186_v48 }
  0xb6   : > { %4662 = vmatprep.mubr.msk.bf16.mxu0 %vm823_vm1, %v1228_v45  ;;  %v6019_v45 = vpack.c.bf16 %v1179_v41, %v1178_v38  ;;  %1062 = vst.msk [vmem:[#allocation2 + $0x2f0] sm:$0xff] %vm823_vm1, %v933_v63  ;;  %1063 = vst.msk [vmem:[#allocation2 + $0x2f8] sm:$0xff] %vm823_vm1, %v934_v0  ;;  %v1190_v5 = vld [vmem:[#allocation2 + $0x2e0] sm:$0xff]  ;;  %v1191_v6 = vld [vmem:[#allocation2 + $0x2e8] sm:$0xff] }
  0xb7   : > { %v1194_v7 = vld [vmem:[#allocation2 + $0x300] sm:$0xff]  ;;  %v1195_v9 = vld [vmem:[#allocation2 + $0x308] sm:$0xff]  ;;  %v6051_v25 = vpack.c.bf16 %v1191_v6, %v1190_v5 }
  0xb8   : > { %v1180_v52 = vld [vmem:[#allocation2 + $0x290] sm:$0xff]  ;;  %v1181_v53 = vld [vmem:[#allocation2 + $0x298] sm:$0xff]  ;;  %v937_v13 = vld [vmem:[%s5697_s14 + $0x300] sm:$0xff]  ;;  %v6053_v27 = vpack.c.bf16 %v1195_v9, %v1194_v7 }
  0xb9   : > { %v1281_v55 = vpack.c.bf16 %v1181_v53, %v1180_v52  ;;  %v1184_v58 = vld [vmem:[#allocation2 + $0x2b0] sm:$0xff]  ;;  %v938_v14 = vld [vmem:[%s5697_s14 + $0x308] sm:$0xff]  ;;  %1066 = vst.msk [vmem:[#allocation2 + $0x310] sm:$0xff] %vm823_vm1, %v937_v13  ;;  %v941_v18 = vld [vmem:[%s5697_s14 + $0x320] sm:$0xff] }
  0xba   : > { %v1185_v59 = vld [vmem:[#allocation2 + $0x2b8] sm:$0xff]  ;;  %1067 = vst.msk [vmem:[#allocation2 + $0x318] sm:$0xff] %vm823_vm1, %v938_v14  ;;  %v942_v19 = vld [vmem:[%s5697_s14 + $0x328] sm:$0xff]  ;;  %1070 = vst.msk [vmem:[#allocation2 + $0x330] sm:$0xff] %vm823_vm1, %v941_v18 }
  0xbb   : > { %4636 = vmatprep.mubr.msk.bf16.mxu1 %vm823_vm1, %v1281_v55  ;;  %1071 = vst.msk [vmem:[#allocation2 + $0x338] sm:$0xff] %vm823_vm1, %v942_v19  ;;  %v1198_v30 = vld [vmem:[#allocation2 + $0x320] sm:$0xff]  ;;  %v1199_v31 = vld [vmem:[#allocation2 + $0x328] sm:$0xff] }
  0xbc   : > { %v1188_v12 = vld [vmem:[#allocation2 + $0x2d0] sm:$0xff]  ;;  %v1202_v32 = vld [vmem:[#allocation2 + $0x340] sm:$0xff]  ;;  %v1203_v33 = vld [vmem:[#allocation2 + $0x348] sm:$0xff]  ;;  %v6067_v48 = vpack.c.bf16 %v1199_v31, %v1198_v30 }
  0xbd   : > { %4663 = vmatmul.mubr.msk.bf16.vlgmr.msra.gmra.mrb[0].mxu0 %vm823_vm1, %v5936_v50  ;;  %v1192_v21 = vld [vmem:[#allocation2 + $0x2f0] sm:$0xff]  ;;  %v1193_v24 = vld [vmem:[#allocation2 + $0x2f8] sm:$0xff]  ;;  %v945_v38 = vld [vmem:[%s5697_s14 + $0x340] sm:$0xff]  ;;  %v6072_v49 = vpack.c.bf16 %v1203_v33, %v1202_v32 }
  0xbe   : > { %4727 = vmatpush3.bf16.msra.mxu0 %v5708_v8  ;;  %4666 = vmatprep.mubr.msk.bf16.mxu0 %vm823_vm1, %v5938_v51  ;;  %v1122_v8 = vld [vmem:[#allocation2 + $0xc0] sm:$0xff]  ;;  %v1284_v26 = vpack.c.bf16 %v1193_v24, %v1192_v21  ;;  %v946_v42 = vld [vmem:[%s5697_s14 + $0x348] sm:$0xff]  ;;  %1074 = vst.msk [vmem:[#allocation2 + $0x350] sm:$0xff] %vm823_vm1, %v945_v38 }
  0xbf   : > { %v5955_v62 = vpack.c.bf16 %v1123_v60, %v1122_v8  ;;  %v930_v8 = vld [vmem:[%s5697_s14 + $0x2c8] sm:$0xff]  ;;  %v1282_v60 = vpack.c.bf16 %v1185_v59, %v1184_v58  ;;  %1075 = vst.msk [vmem:[#allocation2 + $0x358] sm:$0xff] %vm823_vm1, %v946_v42  ;;  %v949_v46 = vld [vmem:[%s5697_s14 + $0x360] sm:$0xff] }
  0xc0   : > { %1059 = vst.msk [vmem:[#allocation2 + $0x2d8] sm:$0xff] %vm823_vm1, %v930_v8  ;;  %v1196_v36 = vld [vmem:[#allocation2 + $0x310] sm:$0xff]  ;;  %v950_v47 = vld [vmem:[%s5697_s14 + $0x368] sm:$0xff]  ;;  %1078 = vst.msk [vmem:[#allocation2 + $0x370] sm:$0xff] %vm823_vm1, %v949_v46 }
  0xc1   : > { %4637 = vmatmul.mubr.msk.bf16.vlgmr.msra.gmra.mrb[0].mxu1 %vm823_vm1, %v1282_v60  ;;  %v1197_v37 = vld [vmem:[#allocation2 + $0x318] sm:$0xff]  ;;  %v1200_v40 = vld [vmem:[#allocation2 + $0x330] sm:$0xff]  ;;  %1079 = vst.msk [vmem:[#allocation2 + $0x378] sm:$0xff] %vm823_vm1, %v950_v47  ;;  %v1206_v52 = vld [vmem:[#allocation2 + $0x360] sm:$0xff] }
  0xc2   : > { %v1285_v39 = vpack.c.bf16 %v1197_v37, %v1196_v36  ;;  %v1201_v41 = vld [vmem:[#allocation2 + $0x338] sm:$0xff]  ;;  %v1207_v53 = vld [vmem:[#allocation2 + $0x368] sm:$0xff]  ;;  %v1210_v54 = vld [vmem:[#allocation2 + $0x380] sm:$0xff] }
  0xc3   : > { %v1286_v43 = vpack.c.bf16 %v1201_v41, %v1200_v40  ;;  %v1211_v55 = vld [vmem:[#allocation2 + $0x388] sm:$0xff]  ;;  %v953_v59 = vld [vmem:[%s5697_s14 + $0x380] sm:$0xff]  ;;  %v6087_v9 = vpack.c.bf16 %v1207_v53, %v1206_v52  ;;  %v967_v40 = vld [vmem:[%s5697_s14 + $0x3f0] sm:$0xff] }
  0xc4   : > { %v954_v8 = vld [vmem:[%s5697_s14 + $0x388] sm:$0xff]  ;;  %1082 = vst.msk [vmem:[#allocation2 + $0x390] sm:$0xff] %vm823_vm1, %v953_v59  ;;  %v957_v63 = vld [vmem:[%s5697_s14 + $0x3a0] sm:$0xff]  ;;  %v6089_v13 = vpack.c.bf16 %v1211_v55, %v1210_v54  ;;  %v968_v41 = vld [vmem:[%s5697_s14 + $0x3f8] sm:$0xff] }
  0xc5   : > { %4667 = vmatmul.mubr.msk.bf16.gmra.mrb[4].mxu0 %vm823_vm1, %v5945_v56  ;;  %v1204_v58 = vld [vmem:[#allocation2 + $0x350] sm:$0xff]  ;;  %1083 = vst.msk [vmem:[#allocation2 + $0x398] sm:$0xff] %vm823_vm1, %v954_v8  ;;  %v958_v0 = vld [vmem:[%s5697_s14 + $0x3a8] sm:$0xff]  ;;  %1086 = vst.msk [vmem:[#allocation2 + $0x3b0] sm:$0xff] %vm823_vm1, %v957_v63 }
  0xc6   : > { %4670 = vmatprep.mubr.msk.bf16.mxu0 %vm823_vm1, %v5947_v57  ;;  %v1205_v60 = vld [vmem:[#allocation2 + $0x358] sm:$0xff]  ;;  %1087 = vst.msk [vmem:[#allocation2 + $0x3b8] sm:$0xff] %vm823_vm1, %v958_v0  ;;  %v1214_v14 = vld [vmem:[#allocation2 + $0x3a0] sm:$0xff]  ;;  %v1219_v19 = vld [vmem:[#allocation2 + $0x3c8] sm:$0xff] }
  0xc7   : > { %v1189_v15 = vld [vmem:[#allocation2 + $0x2d8] sm:$0xff]  ;;  %v1287_v5 = vpack.c.bf16 %v1205_v60, %v1204_v58  ;;  %v1208_v6 = vld [vmem:[#allocation2 + $0x370] sm:$0xff]  ;;  %v1218_v18 = vld [vmem:[#allocation2 + $0x3c0] sm:$0xff]  ;;  %1096 = vst.msk [vmem:[#allocation2 + $0x400] sm:$0xff] %vm823_vm1, %v967_v40 }
  0xc8   : > { %v1283_v20 = vpack.c.bf16 %v1189_v15, %v1188_v12  ;;  %v1209_v7 = vld [vmem:[#allocation2 + $0x378] sm:$0xff]  ;;  %v1215_v15 = vld [vmem:[#allocation2 + $0x3a8] sm:$0xff]  ;;  %v961_v24 = vld [vmem:[%s5697_s14 + $0x3c0] sm:$0xff]  ;;  %1097 = vst.msk [vmem:[#allocation2 + $0x408] sm:$0xff] %vm823_vm1, %v968_v41 }
  0xc9   : > { %v1288_v12 = vpack.c.bf16 %v1209_v7, %v1208_v6  ;;  %v962_v32 = vld [vmem:[%s5697_s14 + $0x3c8] sm:$0xff]  ;;  %1090 = vst.msk [vmem:[#allocation2 + $0x3d0] sm:$0xff] %vm823_vm1, %v961_v24  ;;  %v965_v36 = vld [vmem:[%s5697_s14 + $0x3e0] sm:$0xff]  ;;  %v1257_v38 = vpack.c.bf16 %v1215_v15, %v1214_v14 }
  0xca   : > { %4640 = vmatprep.mubr.msk.bf16.mxu1 %vm823_vm1, %v1283_v20  ;;  %1091 = vst.msk [vmem:[#allocation2 + $0x3d8] sm:$0xff] %vm823_vm1, %v962_v32  ;;  %v966_v37 = vld [vmem:[%s5697_s14 + $0x3e8] sm:$0xff]  ;;  %1094 = vst.msk [vmem:[#allocation2 + $0x3f0] sm:$0xff] %vm823_vm1, %v965_v36  ;;  %v1222_v42 = vld [vmem:[#allocation2 + $0x3e0] sm:$0xff] }
  0xcb   : > { %4641 = vmatmul.mubr.msk.bf16.gmra.mrb[4].mxu1 %vm823_vm1, %v1284_v26  ;;  %v1212_v20 = vld [vmem:[#allocation2 + $0x390] sm:$0xff]  ;;  %1095 = vst.msk [vmem:[#allocation2 + $0x3f8] sm:$0xff] %vm823_vm1, %v966_v37  ;;  %v6239_v0 = vld [vmem:[%s6659_s2] ss:$0 sm:$0xff] }
  0xcc   : > { %4644 = vmatprep.mubr.msk.bf16.mxu1 %vm823_vm1, %v1285_v39  ;;  %v1213_v21 = vld [vmem:[#allocation2 + $0x398] sm:$0xff]  ;;  %v1216_v30 = vld [vmem:[#allocation2 + $0x3b0] sm:$0xff]  ;;  %v1258_v39 = vpack.c.bf16 %v1219_v19, %v1218_v18 }
  0xcd   : > { %4671 = vmatmul.mubr.msk.bf16.gmra.mrb[8].mxu0 %vm823_vm1, %v5953_v61  ;;  %v1289_v26 = vpack.c.bf16 %v1213_v21, %v1212_v20  ;;  %v1217_v31 = vld [vmem:[#allocation2 + $0x3b8] sm:$0xff] }
  0xce   : > { %4674 = vmatprep.mubr.msk.bf16.mxu0 %vm823_vm1, %v5955_v62  ;;  %v1290_v33 = vpack.c.bf16 %v1217_v31, %v1216_v30 }
  0xd0   : > { %v1220_v46 = vld [vmem:[#allocation2 + $0x3d0] sm:$0xff] }
  0xd1   : > { %v1221_v47 = vld [vmem:[#allocation2 + $0x3d8] sm:$0xff]  ;;  %v1224_v53 = vld [vmem:[#allocation2 + $0x3f0] sm:$0xff] }
  0xd2   : > { %v1291_v52 = vpack.c.bf16 %v1221_v47, %v1220_v46  ;;  %v1225_v54 = vld [vmem:[#allocation2 + $0x3f8] sm:$0xff] }
  0xd3   : > { %4645 = vmatmul.mubr.msk.bf16.gmra.mrb[8].mxu1 %vm823_vm1, %v1286_v43  ;;  %v1223_v43 = vld [vmem:[#allocation2 + $0x3e8] sm:$0xff]  ;;  %v1292_v58 = vpack.c.bf16 %v1225_v54, %v1224_v53 }
  0xd4   : > { %4648 = vmatprep.mubr.msk.bf16.mxu1 %vm823_vm1, %v1287_v5  ;;  %v1259_v55 = vpack.c.bf16 %v1223_v43, %v1222_v42 }
  0xd5   : > { %4675 = vmatmul.mubr.msk.bf16.gmra.mrb[12].mxu0 %vm823_vm1, %v5961_v3 }
  0xd6   : > { %4678 = vmatprep.mubr.msk.bf16.mxu0 %vm823_vm1, %v5963_v4 }
  0xdb   : > { %4649 = vmatmul.mubr.msk.bf16.gmra.mrb[12].mxu1 %vm823_vm1, %v1288_v12 }
  0xdc   : > { %4652 = vmatprep.mubr.msk.bf16.mxu1 %vm823_vm1, %v1289_v26 }
  0xdd   : > { %4679 = vmatmul.mubr.msk.bf16.gmra.mrb[16].mxu0 %vm823_vm1, %v5969_v10 }
  0xde   : > { %4682 = vmatprep.mubr.msk.bf16.mxu0 %vm823_vm1, %v5971_v11 }
  0xe3   : > { %4653 = vmatmul.mubr.msk.bf16.gmra.mrb[16].mxu1 %vm823_vm1, %v1290_v33 }
  0xe4   : > { %4656 = vmatprep.mubr.msk.bf16.mxu1 %vm823_vm1, %v1291_v52 }
  0xe5   : > { %4683 = vmatmul.mubr.msk.bf16.gmra.mrb[20].mxu0 %vm823_vm1, %v5977_v16 }
  0xe6   : > { %4686 = vmatprep.mubr.msk.bf16.mxu0 %vm823_vm1, %v5979_v17 }
  0xeb   : > { %4657 = vmatmul.mubr.msk.bf16.gmra.mrb[20].mxu1 %vm823_vm1, %v1292_v58 }
  0xed   : > { %4687 = vmatmul.mubr.msk.bf16.gmra.mrb[24].mxu0 %vm823_vm1, %v5985_v22 }
  0xee   : > { %4690 = vmatprep.mubr.msk.bf16.mxu0 %vm823_vm1, %v5987_v23 }
  0xf5   : > { %4691 = vmatmul.mubr.msk.bf16.gmra.mrb[28].mxu0 %vm823_vm1, %v5993_v28 }
  0xf6   : > { %4694 = vmatprep.mubr.msk.bf16.mxu0 %vm823_vm1, %v5995_v29 }
  0xfd   : > { %4695 = vmatmul.mubr.msk.bf16.gmra.mrb[32].mxu0 %vm823_vm1, %v6001_v34 }
  0xfe   : > { %4698 = vmatprep.mubr.msk.bf16.mxu0 %vm823_vm1, %v6003_v35 }
 0x105   : > { %4699 = vmatmul.mubr.msk.bf16.gmra.mrb[36].mxu0 %vm823_vm1, %v6017_v44 }
 0x106   : > { %4702 = vmatprep.mubr.msk.bf16.mxu0 %vm823_vm1, %v6019_v45 }
 0x10d   : > { %4703 = vmatmul.mubr.msk.bf16.gmra.mrb[40].mxu0 %vm823_vm1, %v6031_v1 }
 0x10e   : > { %4706 = vmatprep.mubr.msk.bf16.mxu0 %vm823_vm1, %v6036_v2 }
 0x115   : > { %4707 = vmatmul.mubr.msk.bf16.gmra.mrb[44].mxu0 %vm823_vm1, %v6051_v25 }
 0x116   : > { %4710 = vmatprep.mubr.msk.bf16.mxu0 %vm823_vm1, %v6053_v27 }
 0x11d   : > { %4711 = vmatmul.mubr.msk.bf16.gmra.mrb[48].mxu0 %vm823_vm1, %v6067_v48 }
 0x11e   : > { %4714 = vmatprep.mubr.msk.bf16.mxu0 %vm823_vm1, %v6072_v49 }
 0x125   : > { %4715 = vmatmul.mubr.msk.bf16.gmra.mrb[52].mxu0 %vm823_vm1, %v6087_v9 }
 0x126   : > { %4718 = vmatprep.mubr.msk.bf16.mxu0 %vm823_vm1, %v6089_v13 }
 0x12d   : > { %4719 = vmatmul.mubr.msk.bf16.gmra.mrb[56].mxu0 %vm823_vm1, %v1257_v38 }
 0x12e   : > { %4722 = vmatprep.mubr.msk.bf16.mxu0 %vm823_vm1, %v1258_v39 }
 0x135   : > { %4723 = vmatmul.mubr.msk.bf16.gmra.mrb[60].mxu0 %vm823_vm1, %v1259_v55 }
 0x136   : > { %4728 = vmatprep.mubr.msk.bf16.mxu0 %vm823_vm1, %v5936_v50  ;;  %v5255_v50 = vld [vmem:[%s6660_s3 + $0x10] sm:$0xff]  }
 0x137   : > { %4792 = vmatprep.subr.bf16.mxu1 %v5255_v50 }
 0x138   : > { %4793 = vmatpush3.bf16.msra.mxu1 %v5255_v50 }
 0x13d   : > { %4729 = vmatmul.mubr.msk.bf16.vlgmr.msra.gmra.mrb[0].mxu0 %vm823_vm1, %v5938_v51  ;;  %v5256_v51 = vld [vmem:[%s6660_s3 + $0x18] sm:$0xff]  }
 0x13e   : > { %4732 = vmatprep.mubr.msk.bf16.mxu0 %vm823_vm1, %v5945_v56  ;;  %4794 = vmatprep.subr.bf16.mxu1 %v5256_v51  ;;  %v1226_v56 = vld [vmem:[#allocation2 + $0x400] sm:$0xff] }
 0x13f   : > { %4795 = vmatpush3.bf16.msra.mxu1 %v5256_v51 }
 0x145   : > { %4733 = vmatmul.mubr.msk.bf16.gmra.mrb[4].mxu0 %vm823_vm1, %v5947_v57  ;;  %v1227_v57 = vld [vmem:[#allocation2 + $0x408] sm:$0xff] }
 0x146   : > { %4736 = vmatprep.mubr.msk.bf16.mxu0 %vm823_vm1, %v5953_v61  ;;  %v2072_v61 = vpack.c.bf16 %v1227_v57, %v1226_v56 }
 0x14d   : > { %4737 = vmatmul.mubr.msk.bf16.gmra.mrb[8].mxu0 %vm823_vm1, %v5955_v62 }
 0x14e   : > { %4740 = vmatprep.mubr.msk.bf16.mxu0 %vm823_vm1, %v5961_v3 }
 0x155   : > { %4741 = vmatmul.mubr.msk.bf16.gmra.mrb[12].mxu0 %vm823_vm1, %v5963_v4 }
 0x156   : > { %4744 = vmatprep.mubr.msk.bf16.mxu0 %vm823_vm1, %v5969_v10 }
 0x15d   : > { %4745 = vmatmul.mubr.msk.bf16.gmra.mrb[16].mxu0 %vm823_vm1, %v5971_v11 }
 0x15e   : > { %4748 = vmatprep.mubr.msk.bf16.mxu0 %vm823_vm1, %v5977_v16 }
 0x165   : > { %4749 = vmatmul.mubr.msk.bf16.gmra.mrb[20].mxu0 %vm823_vm1, %v5979_v17 }
 0x166   : > { %4752 = vmatprep.mubr.msk.bf16.mxu0 %vm823_vm1, %v5985_v22 }
 0x16d   : > { %4753 = vmatmul.mubr.msk.bf16.gmra.mrb[24].mxu0 %vm823_vm1, %v5987_v23  ;;  %v6201_v23 = vld [vmem:[%s6660_s3] sm:$0xff]  }
 0x16e   : > { %4756 = vmatprep.mubr.msk.bf16.mxu0 %vm823_vm1, %v5993_v28  ;;  %4828 = vmatprep.subr.bf16.mxu1 %v6201_v23 }
 0x175   : > { %4757 = vmatmul.mubr.msk.bf16.gmra.mrb[28].mxu0 %vm823_vm1, %v5995_v29 }
 0x176   : > { %4760 = vmatprep.mubr.msk.bf16.mxu0 %vm823_vm1, %v6001_v34 }
 0x17d   : > { %4761 = vmatmul.mubr.msk.bf16.gmra.mrb[32].mxu0 %vm823_vm1, %v6003_v35 }
 0x17e   : > { %4764 = vmatprep.mubr.msk.bf16.mxu0 %vm823_vm1, %v6017_v44 }
 0x185   : > { %4765 = vmatmul.mubr.msk.bf16.gmra.mrb[36].mxu0 %vm823_vm1, %v6019_v45 }
 0x186   : > { %4768 = vmatprep.mubr.msk.bf16.mxu0 %vm823_vm1, %v6031_v1 }
 0x18d   : > { %4769 = vmatmul.mubr.msk.bf16.gmra.mrb[40].mxu0 %vm823_vm1, %v6036_v2 }
 0x18e   : > { %4772 = vmatprep.mubr.msk.bf16.mxu0 %vm823_vm1, %v6051_v25 }
 0x194   : > { %v6182_v62 = vpop.f32.mrb[0].mxu1 }
 0x195   : > { %4773 = vmatmul.mubr.msk.bf16.gmra.mrb[44].mxu0 %vm823_vm1, %v6053_v27  ;;  %v6184_v3 = vpop.f32.mrb[1].mxu1 }
 0x196   : > { %4776 = vmatprep.mubr.msk.bf16.mxu0 %vm823_vm1, %v6067_v48  ;;  %v6186_v4 = vpop.f32.mrb[2].mxu1 }
 0x197   : > { %v6188_v10 = vpop.f32.mrb[3].mxu1 }
 0x19d   : > { %4777 = vmatmul.mubr.msk.bf16.gmra.mrb[48].mxu0 %vm823_vm1, %v6072_v49 }
 0x19e   : > { %4780 = vmatprep.mubr.msk.bf16.mxu0 %vm823_vm1, %v6087_v9  ;;  %v6190_v11 = vpop.f32.mrb[4].mxu1 }
 0x19f   : > { %v6192_v16 = vpop.f32.mrb[5].mxu1 }
 0x1a0   : > { %v6194_v17 = vpop.f32.mrb[6].mxu1 }
 0x1a1   : > { %v6196_v22 = vpop.f32.mrb[7].mxu1 }
 0x1a5   : > { %4781 = vmatmul.mubr.msk.bf16.gmra.mrb[52].mxu0 %vm823_vm1, %v6089_v13 }
 0x1a6   : > { %4784 = vmatprep.mubr.msk.bf16.mxu0 %vm823_vm1, %v1257_v38  ;;  %v6204_v28 = vpop.f32.mrb[8].mxu1 }
 0x1a7   : > { %v6206_v29 = vpop.f32.mrb[9].mxu1 }
 0x1a8   : > { %v6208_v34 = vpop.f32.mrb[10].mxu1 }
 0x1a9   : > { %v6210_v35 = vpop.f32.mrb[11].mxu1 }
 0x1ad   : > { %4785 = vmatmul.mubr.msk.bf16.gmra.mrb[56].mxu0 %vm823_vm1, %v1258_v39 }
 0x1ae   : > { %4788 = vmatprep.mubr.msk.bf16.mxu0 %vm823_vm1, %v1259_v55  ;;  %v6212_v44 = vpop.f32.mrb[12].mxu1 }
 0x1af   : > { %v6214_v45 = vpop.f32.mrb[13].mxu1 }
 0x1b0   : > { %v6216_v1 = vpop.f32.mrb[14].mxu1 }
 0x1b1   : > { %v6218_v2 = vpop.f32.mrb[15].mxu1 }
 0x1b5   : > { %4789 = vmatmul.mubr.msk.bf16.gmra.mrb[60].mxu0 %vm823_vm1, %v2072_v61 }
 0x1b6   : > { %v6220_v25 = vpop.f32.mrb[16].mxu1 }
 0x1b7   : > { %v6222_v27 = vpop.f32.mrb[17].mxu1 }
 0x1b8   : > { %v6224_v48 = vpop.f32.mrb[18].mxu1 }
 0x1b9   : > { %v6226_v49 = vpop.f32.mrb[19].mxu1 }
 0x1be   : > { %v6228_v59 = vpop.f32.mrb[20].mxu1 }
 0x1bf   : > { %v6230_v8 = vpop.f32.mrb[21].mxu1 }
 0x1c0   : > { %v6232_v60 = vpop.f32.mrb[22].mxu1 }
 0x1c1   : > { %v6234_v63 = vpop.f32.mrb[23].mxu1 }
 0x210   : > { %v4730_v5 = vpop.f32.mrb[0].mxu0 }
 0x211   : > { %v2443_v6 = vadd.f32 %v4730_v5, %v6239_v0  ;;  %v2115_v7 = vpop.f32.mrb[1].mxu0 }
 0x212   : > { %v2441_v9 = vadd.f32 %v6239_v0, %v2115_v7  ;;  %v4731_v12 = vpop.f32.mrb[2].mxu0 }
 0x213   : > { %v2507_v13 = vmax.f32 %v2443_v6, 0.0  ;;  %v2444_v14 = vadd.f32 %v4731_v12, %v6239_v0  ;;  %v2118_v15 = vpop.f32.mrb[3].mxu0 }
 0x214   : > { %v2505_v18 = vmax.f32 %v2441_v9, 0.0  ;;  %v2442_v19 = vadd.f32 %v6239_v0, %v2118_v15 }
 0x215   : > { %2572 = vst.msk [vmem:[#allocation3 + $0x20] sm:$0xff] %vm829_vm2, %v2507_v13  ;;  %v2508_v20 = vmax.f32 %v2444_v14, 0.0  ;;  %v5258_v13 = vld [vmem:[%s6660_s3 + $0x8] sm:$0xff]  }
 0x216   : > { %2570 = vst.msk [vmem:[#allocation3 + $0x10] sm:$0xff] %vm829_vm2, %v2505_v18  ;;  %v2506_v21 = vmax.f32 %v2442_v19, 0.0 }
 0x217   : > { %2573 = vst.msk [vmem:[#allocation3 + $0x28] sm:$0xff] %vm829_vm2, %v2508_v20 }
 0x218   : > { %2571 = vst.msk [vmem:[#allocation3 + $0x18] sm:$0xff] %vm829_vm2, %v2506_v21  ;;  %v4734_v24 = vpop.f32.mrb[4].mxu0 }
 0x219   : > { %v2447_v26 = vadd.f32 %v4734_v24, %v6239_v0  ;;  %v2131_v30 = vpop.f32.mrb[5].mxu0 }
 0x21a   : > { %v2445_v31 = vadd.f32 %v6239_v0, %v2131_v30  ;;  %v4735_v32 = vpop.f32.mrb[6].mxu0 }
 0x21b   : > { %v2511_v33 = vmax.f32 %v2447_v26, 0.0  ;;  %v2448_v36 = vadd.f32 %v4735_v32, %v6239_v0  ;;  %v2134_v37 = vpop.f32.mrb[7].mxu0 }
 0x21c   : > { %v2509_v38 = vmax.f32 %v2445_v31, 0.0  ;;  %v2446_v39 = vadd.f32 %v6239_v0, %v2134_v37  ;;  %v6278_v31 = vld [vmem:[%s6660_s3 + $0x20] sm:$0xff]  }
 0x21d   : > { %2576 = vst.msk [vmem:[#allocation3 + $0x40] sm:$0xff] %vm829_vm2, %v2511_v33  ;;  %v2512_v40 = vmax.f32 %v2448_v36, 0.0  ;;  %v2636_v42 = vld [vmem:[#allocation3 + $0x10] sm:$0xff] }
 0x21e   : > { %2574 = vst.msk [vmem:[#allocation3 + $0x30] sm:$0xff] %vm829_vm2, %v2509_v38  ;;  %v2510_v41 = vmax.f32 %v2446_v39, 0.0 }
 0x21f   : > { %2577 = vst.msk [vmem:[#allocation3 + $0x48] sm:$0xff] %vm829_vm2, %v2512_v40  ;;  %v2637_v43 = vld [vmem:[#allocation3 + $0x18] sm:$0xff] }
 0x220   : > { %2575 = vst.msk [vmem:[#allocation3 + $0x38] sm:$0xff] %vm829_vm2, %v2510_v41  ;;  %v4738_v46 = vpop.f32.mrb[8].mxu0  ;;  %v2720_v47 = vpack.c.bf16 %v2637_v43, %v2636_v42 }
 0x221   : > { %v2451_v52 = vadd.f32 %v4738_v46, %v6239_v0  ;;  %v2147_v53 = vpop.f32.mrb[9].mxu0 }
 0x222   : > { %v2449_v54 = vadd.f32 %v6239_v0, %v2147_v53  ;;  %v4739_v55 = vpop.f32.mrb[10].mxu0  ;;  %4796 = vmatprep.mubr.msk.bf16.mxu1 %vm829_vm2, %v2720_v47 }
 0x223   : > { %v2515_v58 = vmax.f32 %v2451_v52, 0.0  ;;  %v2452_v50 = vadd.f32 %v4739_v55, %v6239_v0  ;;  %v2150_v51 = vpop.f32.mrb[11].mxu0 }
 0x224   : > { %v2513_v56 = vmax.f32 %v2449_v54, 0.0  ;;  %v2450_v57 = vadd.f32 %v6239_v0, %v2150_v51 }
 0x225   : > { %2580 = vst.msk [vmem:[#allocation3 + $0x60] sm:$0xff] %vm829_vm2, %v2515_v58  ;;  %v2516_v61 = vmax.f32 %v2452_v50, 0.0  ;;  %v2640_v6 = vld [vmem:[#allocation3 + $0x30] sm:$0xff] }
 0x226   : > { %2578 = vst.msk [vmem:[#allocation3 + $0x50] sm:$0xff] %vm829_vm2, %v2513_v56  ;;  %v2514_v5 = vmax.f32 %v2450_v57, 0.0 }
 0x227   : > { %2581 = vst.msk [vmem:[#allocation3 + $0x68] sm:$0xff] %vm829_vm2, %v2516_v61  ;;  %v2641_v7 = vld [vmem:[#allocation3 + $0x38] sm:$0xff] }
 0x228   : > { %2579 = vst.msk [vmem:[#allocation3 + $0x58] sm:$0xff] %vm829_vm2, %v2514_v5  ;;  %v4742_v9 = vpop.f32.mrb[12].mxu0  ;;  %v2721_v12 = vpack.c.bf16 %v2641_v7, %v2640_v6 }
 0x229   : > { %v2455_v14 = vadd.f32 %v4742_v9, %v6239_v0  ;;  %v2163_v15 = vpop.f32.mrb[13].mxu0 }
 0x22a   : > { %v2453_v18 = vadd.f32 %v6239_v0, %v2163_v15  ;;  %v4743_v19 = vpop.f32.mrb[14].mxu0  ;;  %4797 = vmatmul.mubr.msk.bf16.vlgmr.msra.gmra.mrb[24].mxu1 %vm829_vm2, %v2721_v12 }
 0x22b   : > { %v2519_v20 = vmax.f32 %v2455_v14, 0.0  ;;  %v2456_v21 = vadd.f32 %v4743_v19, %v6239_v0  ;;  %v2166_v24 = vpop.f32.mrb[15].mxu0  ;;  %4829 = vmatpush3.bf16.msra.mxu1 %v6201_v23 }
 0x22c   : > { %v2517_v26 = vmax.f32 %v2453_v18, 0.0  ;;  %v2454_v30 = vadd.f32 %v6239_v0, %v2166_v24  ;;  %4830 = vmatprep.subr.bf16.mxu1 %v5258_v13 }
 0x22d   : > { %2584 = vst.msk [vmem:[#allocation3 + $0x80] sm:$0xff] %vm829_vm2, %v2519_v20  ;;  %v2520_v32 = vmax.f32 %v2456_v21, 0.0  ;;  %v2644_v36 = vld [vmem:[#allocation3 + $0x50] sm:$0xff] }
 0x22e   : > { %2582 = vst.msk [vmem:[#allocation3 + $0x70] sm:$0xff] %vm829_vm2, %v2517_v26  ;;  %v2518_v33 = vmax.f32 %v2454_v30, 0.0 }
 0x22f   : > { %2585 = vst.msk [vmem:[#allocation3 + $0x88] sm:$0xff] %vm829_vm2, %v2520_v32  ;;  %v2645_v37 = vld [vmem:[#allocation3 + $0x58] sm:$0xff]  ;;  %4831 = vmatpush3.bf16.msra.mxu1 %v5258_v13 }
 0x230   : > { %2583 = vst.msk [vmem:[#allocation3 + $0x78] sm:$0xff] %vm829_vm2, %v2518_v33  ;;  %v4746_v23 = vpop.f32.mrb[16].mxu0  ;;  %v2722_v38 = vpack.c.bf16 %v2645_v37, %v2644_v36  ;;  %4864 = vmatprep.subr.bf16.mxu1 %v6278_v31 }
 0x231   : > { %v2459_v39 = vadd.f32 %v4746_v23, %v6239_v0  ;;  %v2179_v40 = vpop.f32.mrb[17].mxu0 }
 0x232   : > { %v2457_v41 = vadd.f32 %v6239_v0, %v2179_v40  ;;  %v4747_v42 = vpop.f32.mrb[18].mxu0  ;;  %4800 = vmatprep.mubr.msk.bf16.mxu1 %vm829_vm2, %v2722_v38 }
 0x233   : > { %v2523_v43 = vmax.f32 %v2459_v39, 0.0  ;;  %v2460_v46 = vadd.f32 %v4747_v42, %v6239_v0  ;;  %v2182_v47 = vpop.f32.mrb[19].mxu0 }
 0x234   : > { %v2521_v52 = vmax.f32 %v2457_v41, 0.0  ;;  %v2458_v53 = vadd.f32 %v6239_v0, %v2182_v47 }
 0x235   : > { %2588 = vst.msk [vmem:[#allocation3 + $0xa0] sm:$0xff] %vm829_vm2, %v2523_v43  ;;  %v2524_v54 = vmax.f32 %v2460_v46, 0.0  ;;  %v2648_v58 = vld [vmem:[#allocation3 + $0x70] sm:$0xff] }
 0x236   : > { %2586 = vst.msk [vmem:[#allocation3 + $0x90] sm:$0xff] %vm829_vm2, %v2521_v52  ;;  %v2522_v55 = vmax.f32 %v2458_v53, 0.0 }
 0x237   : > { %2589 = vst.msk [vmem:[#allocation3 + $0xa8] sm:$0xff] %vm829_vm2, %v2524_v54  ;;  %v2649_v50 = vld [vmem:[#allocation3 + $0x78] sm:$0xff] }
 0x238   : > { %2587 = vst.msk [vmem:[#allocation3 + $0x98] sm:$0xff] %vm829_vm2, %v2522_v55  ;;  %v4750_v51 = vpop.f32.mrb[20].mxu0  ;;  %v2723_v56 = vpack.c.bf16 %v2649_v50, %v2648_v58 }
 0x239   : > { %v2463_v57 = vadd.f32 %v4750_v51, %v6239_v0  ;;  %v2195_v61 = vpop.f32.mrb[21].mxu0 }
 0x23a   : > { %v2461_v5 = vadd.f32 %v6239_v0, %v2195_v61  ;;  %v4751_v6 = vpop.f32.mrb[22].mxu0  ;;  %4801 = vmatmul.mubr.msk.bf16.gmra.mrb[28].mxu1 %vm829_vm2, %v2723_v56 }
 0x23b   : > { %v2527_v7 = vmax.f32 %v2463_v57, 0.0  ;;  %v2464_v9 = vadd.f32 %v4751_v6, %v6239_v0  ;;  %v2198_v12 = vpop.f32.mrb[23].mxu0 }
 0x23c   : > { %v2525_v13 = vmax.f32 %v2461_v5, 0.0  ;;  %v2462_v14 = vadd.f32 %v6239_v0, %v2198_v12 }
 0x23d   : > { %2592 = vst.msk [vmem:[#allocation3 + $0xc0] sm:$0xff] %vm829_vm2, %v2527_v7  ;;  %v2528_v15 = vmax.f32 %v2464_v9, 0.0  ;;  %v2652_v19 = vld [vmem:[#allocation3 + $0x90] sm:$0xff] }
 0x23e   : > { %2590 = vst.msk [vmem:[#allocation3 + $0xb0] sm:$0xff] %vm829_vm2, %v2525_v13  ;;  %v2526_v18 = vmax.f32 %v2462_v14, 0.0 }
 0x23f   : > { %2593 = vst.msk [vmem:[#allocation3 + $0xc8] sm:$0xff] %vm829_vm2, %v2528_v15  ;;  %v2653_v20 = vld [vmem:[#allocation3 + $0x98] sm:$0xff] }
 0x240   : > { %2591 = vst.msk [vmem:[#allocation3 + $0xb8] sm:$0xff] %vm829_vm2, %v2526_v18  ;;  %v4754_v21 = vpop.f32.mrb[24].mxu0  ;;  %v2724_v24 = vpack.c.bf16 %v2653_v20, %v2652_v19 }
 0x241   : > { %v2467_v26 = vadd.f32 %v4754_v21, %v6239_v0  ;;  %v2211_v30 = vpop.f32.mrb[25].mxu0 }
 0x242   : > { %v2465_v32 = vadd.f32 %v6239_v0, %v2211_v30  ;;  %v4755_v33 = vpop.f32.mrb[26].mxu0  ;;  %4804 = vmatprep.mubr.msk.bf16.mxu1 %vm829_vm2, %v2724_v24 }
 0x243   : > { %v2531_v36 = vmax.f32 %v2467_v26, 0.0  ;;  %v2468_v37 = vadd.f32 %v4755_v33, %v6239_v0  ;;  %v2214_v23 = vpop.f32.mrb[27].mxu0 }
 0x244   : > { %v2529_v38 = vmax.f32 %v2465_v32, 0.0  ;;  %v2466_v39 = vadd.f32 %v6239_v0, %v2214_v23 }
 0x245   : > { %2596 = vst.msk [vmem:[#allocation3 + $0xe0] sm:$0xff] %vm829_vm2, %v2531_v36  ;;  %v2532_v40 = vmax.f32 %v2468_v37, 0.0  ;;  %v2656_v42 = vld [vmem:[#allocation3 + $0xb0] sm:$0xff] }
 0x246   : > { %2594 = vst.msk [vmem:[#allocation3 + $0xd0] sm:$0xff] %vm829_vm2, %v2529_v38  ;;  %v2530_v41 = vmax.f32 %v2466_v39, 0.0 }
 0x247   : > { %2597 = vst.msk [vmem:[#allocation3 + $0xe8] sm:$0xff] %vm829_vm2, %v2532_v40  ;;  %v2657_v43 = vld [vmem:[#allocation3 + $0xb8] sm:$0xff] }
 0x248   : > { %2595 = vst.msk [vmem:[#allocation3 + $0xd8] sm:$0xff] %vm829_vm2, %v2530_v41  ;;  %v4758_v46 = vpop.f32.mrb[28].mxu0  ;;  %v2725_v47 = vpack.c.bf16 %v2657_v43, %v2656_v42 }
 0x249   : > { %v2471_v52 = vadd.f32 %v4758_v46, %v6239_v0  ;;  %v2227_v53 = vpop.f32.mrb[29].mxu0 }
 0x24a   : > { %v2469_v54 = vadd.f32 %v6239_v0, %v2227_v53  ;;  %v4759_v55 = vpop.f32.mrb[30].mxu0  ;;  %4805 = vmatmul.mubr.msk.bf16.gmra.mrb[32].mxu1 %vm829_vm2, %v2725_v47 }
 0x24b   : > { %v2535_v58 = vmax.f32 %v2471_v52, 0.0  ;;  %v2472_v50 = vadd.f32 %v4759_v55, %v6239_v0  ;;  %v2230_v51 = vpop.f32.mrb[31].mxu0 }
 0x24c   : > { %v2533_v56 = vmax.f32 %v2469_v54, 0.0  ;;  %v2470_v57 = vadd.f32 %v6239_v0, %v2230_v51 }
 0x24d   : > { %2600 = vst.msk [vmem:[#allocation3 + $0x100] sm:$0xff] %vm829_vm2, %v2535_v58  ;;  %v2536_v61 = vmax.f32 %v2472_v50, 0.0  ;;  %v2660_v6 = vld [vmem:[#allocation3 + $0xd0] sm:$0xff] }
 0x24e   : > { %2598 = vst.msk [vmem:[#allocation3 + $0xf0] sm:$0xff] %vm829_vm2, %v2533_v56  ;;  %v2534_v5 = vmax.f32 %v2470_v57, 0.0 }
 0x24f   : > { %2601 = vst.msk [vmem:[#allocation3 + $0x108] sm:$0xff] %vm829_vm2, %v2536_v61  ;;  %v2661_v7 = vld [vmem:[#allocation3 + $0xd8] sm:$0xff] }
 0x250   : > { %2599 = vst.msk [vmem:[#allocation3 + $0xf8] sm:$0xff] %vm829_vm2, %v2534_v5  ;;  %v4762_v9 = vpop.f32.mrb[32].mxu0  ;;  %v2726_v12 = vpack.c.bf16 %v2661_v7, %v2660_v6 }
 0x251   : > { %v2475_v13 = vadd.f32 %v4762_v9, %v6239_v0  ;;  %v2243_v14 = vpop.f32.mrb[33].mxu0 }
 0x252   : > { %v2473_v15 = vadd.f32 %v6239_v0, %v2243_v14  ;;  %v4763_v18 = vpop.f32.mrb[34].mxu0  ;;  %4808 = vmatprep.mubr.msk.bf16.mxu1 %vm829_vm2, %v2726_v12 }
 0x253   : > { %v2539_v19 = vmax.f32 %v2475_v13, 0.0  ;;  %v2476_v20 = vadd.f32 %v4763_v18, %v6239_v0  ;;  %v2246_v21 = vpop.f32.mrb[35].mxu0 }
 0x254   : > { %v2537_v24 = vmax.f32 %v2473_v15, 0.0  ;;  %v2474_v26 = vadd.f32 %v6239_v0, %v2246_v21 }
 0x255   : > { %2604 = vst.msk [vmem:[#allocation3 + $0x120] sm:$0xff] %vm829_vm2, %v2539_v19  ;;  %v2540_v30 = vmax.f32 %v2476_v20, 0.0  ;;  %v2664_v33 = vld [vmem:[#allocation3 + $0xf0] sm:$0xff] }
 0x256   : > { %2602 = vst.msk [vmem:[#allocation3 + $0x110] sm:$0xff] %vm829_vm2, %v2537_v24  ;;  %v2538_v32 = vmax.f32 %v2474_v26, 0.0 }
 0x257   : > { %2605 = vst.msk [vmem:[#allocation3 + $0x128] sm:$0xff] %vm829_vm2, %v2540_v30  ;;  %v2665_v36 = vld [vmem:[#allocation3 + $0xf8] sm:$0xff] }
 0x258   : > { %2603 = vst.msk [vmem:[#allocation3 + $0x118] sm:$0xff] %vm829_vm2, %v2538_v32  ;;  %v4766_v37 = vpop.f32.mrb[36].mxu0  ;;  %v2727_v23 = vpack.c.bf16 %v2665_v36, %v2664_v33 }
 0x259   : > { %v2479_v38 = vadd.f32 %v4766_v37, %v6239_v0  ;;  %v2259_v39 = vpop.f32.mrb[37].mxu0 }
 0x25a   : > { %v2477_v40 = vadd.f32 %v6239_v0, %v2259_v39  ;;  %v4767_v41 = vpop.f32.mrb[38].mxu0  ;;  %4809 = vmatmul.mubr.msk.bf16.gmra.mrb[36].mxu1 %vm829_vm2, %v2727_v23 }
 0x25b   : > { %v2543_v42 = vmax.f32 %v2479_v38, 0.0  ;;  %v2480_v43 = vadd.f32 %v4767_v41, %v6239_v0  ;;  %v2262_v46 = vpop.f32.mrb[39].mxu0 }
 0x25c   : > { %v2541_v47 = vmax.f32 %v2477_v40, 0.0  ;;  %v2478_v52 = vadd.f32 %v6239_v0, %v2262_v46 }
 0x25d   : > { %2608 = vst.msk [vmem:[#allocation3 + $0x140] sm:$0xff] %vm829_vm2, %v2543_v42  ;;  %v2544_v53 = vmax.f32 %v2480_v43, 0.0  ;;  %v2668_v55 = vld [vmem:[#allocation3 + $0x110] sm:$0xff] }
 0x25e   : > { %2606 = vst.msk [vmem:[#allocation3 + $0x130] sm:$0xff] %vm829_vm2, %v2541_v47  ;;  %v2542_v54 = vmax.f32 %v2478_v52, 0.0 }
 0x25f   : > { %2609 = vst.msk [vmem:[#allocation3 + $0x148] sm:$0xff] %vm829_vm2, %v2544_v53  ;;  %v2669_v58 = vld [vmem:[#allocation3 + $0x118] sm:$0xff] }
 0x260   : > { %2607 = vst.msk [vmem:[#allocation3 + $0x138] sm:$0xff] %vm829_vm2, %v2542_v54  ;;  %v4770_v50 = vpop.f32.mrb[40].mxu0  ;;  %v2728_v51 = vpack.c.bf16 %v2669_v58, %v2668_v55 }
 0x261   : > { %v4974_v56 = vadd.f32 %v4770_v50, %v6182_v62  ;;  %v2275_v57 = vpop.f32.mrb[41].mxu0 }
 0x262   : > { %v4975_v61 = vadd.f32 %v2275_v57, %v6184_v3  ;;  %v4771_v5 = vpop.f32.mrb[42].mxu0  ;;  %4812 = vmatprep.mubr.msk.bf16.mxu1 %vm829_vm2, %v2728_v51 }
 0x263   : > { %v2483_v6 = vadd.f32 %v4974_v56, %v6239_v0  ;;  %v4976_v7 = vadd.f32 %v4771_v5, %v6186_v4  ;;  %v2278_v9 = vpop.f32.mrb[43].mxu0 }
 0x264   : > { %v2481_v12 = vadd.f32 %v4975_v61, %v6239_v0  ;;  %v4977_v13 = vadd.f32 %v2278_v9, %v6188_v10 }
 0x265   : > { %v2547_v14 = vmax.f32 %v2483_v6, 0.0  ;;  %v2484_v15 = vadd.f32 %v4976_v7, %v6239_v0  ;;  %v2672_v19 = vld [vmem:[#allocation3 + $0x130] sm:$0xff] }
 0x266   : > { %v2545_v18 = vmax.f32 %v2481_v12, 0.0  ;;  %v2482_v62 = vadd.f32 %v4977_v13, %v6239_v0 }
 0x267   : > { %2612 = vst.msk [vmem:[#allocation3 + $0x160] sm:$0xff] %vm829_vm2, %v2547_v14  ;;  %v2548_v3 = vmax.f32 %v2484_v15, 0.0  ;;  %v2673_v20 = vld [vmem:[#allocation3 + $0x138] sm:$0xff] }
 0x268   : > { %2610 = vst.msk [vmem:[#allocation3 + $0x150] sm:$0xff] %vm829_vm2, %v2545_v18  ;;  %v2546_v21 = vmax.f32 %v2482_v62, 0.0  ;;  %v4774_v4 = vpop.f32.mrb[44].mxu0  ;;  %v2729_v24 = vpack.c.bf16 %v2673_v20, %v2672_v19 }
 0x269   : > { %2613 = vst.msk [vmem:[#allocation3 + $0x168] sm:$0xff] %vm829_vm2, %v2548_v3  ;;  %v4978_v10 = vadd.f32 %v4774_v4, %v6190_v11  ;;  %v2291_v26 = vpop.f32.mrb[45].mxu0 }
 0x26a   : > { %2611 = vst.msk [vmem:[#allocation3 + $0x158] sm:$0xff] %vm829_vm2, %v2546_v21  ;;  %v4979_v30 = vadd.f32 %v2291_v26, %v6192_v16  ;;  %v4775_v32 = vpop.f32.mrb[46].mxu0  ;;  %4813 = vmatmul.mubr.msk.bf16.gmra.mrb[40].mxu1 %vm829_vm2, %v2729_v24 }
 0x26b   : > { %v2487_v33 = vadd.f32 %v4978_v10, %v6239_v0  ;;  %v4980_v36 = vadd.f32 %v4775_v32, %v6194_v17  ;;  %v2294_v37 = vpop.f32.mrb[47].mxu0 }
 0x26c   : > { %v2485_v23 = vadd.f32 %v4979_v30, %v6239_v0  ;;  %v4981_v38 = vadd.f32 %v2294_v37, %v6196_v22 }
 0x26d   : > { %v2551_v39 = vmax.f32 %v2487_v33, 0.0  ;;  %v2488_v11 = vadd.f32 %v4980_v36, %v6239_v0 }
 0x26e   : > { %v2549_v40 = vmax.f32 %v2485_v23, 0.0  ;;  %v2486_v41 = vadd.f32 %v4981_v38, %v6239_v0 }
 0x26f   : > { %2616 = vst.msk [vmem:[#allocation3 + $0x180] sm:$0xff] %vm829_vm2, %v2551_v39  ;;  %v2552_v16 = vmax.f32 %v2488_v11, 0.0  ;;  %v2676_v47 = vld [vmem:[#allocation3 + $0x150] sm:$0xff] }
 0x270   : > { %2614 = vst.msk [vmem:[#allocation3 + $0x170] sm:$0xff] %vm829_vm2, %v2549_v40  ;;  %v2550_v42 = vmax.f32 %v2486_v41, 0.0  ;;  %v4778_v43 = vpop.f32.mrb[48].mxu0 }
 0x271   : > { %2617 = vst.msk [vmem:[#allocation3 + $0x188] sm:$0xff] %vm829_vm2, %v2552_v16  ;;  %v4982_v17 = vadd.f32 %v4778_v43, %v6204_v28  ;;  %v2307_v46 = vpop.f32.mrb[49].mxu0  ;;  %v2677_v22 = vld [vmem:[#allocation3 + $0x158] sm:$0xff] }
 0x272   : > { %2615 = vst.msk [vmem:[#allocation3 + $0x178] sm:$0xff] %vm829_vm2, %v2550_v42  ;;  %v4983_v52 = vadd.f32 %v2307_v46, %v6206_v29  ;;  %v4779_v53 = vpop.f32.mrb[50].mxu0  ;;  %v2730_v54 = vpack.c.bf16 %v2677_v22, %v2676_v47 }
 0x273   : > { %v2491_v55 = vadd.f32 %v4982_v17, %v6239_v0  ;;  %v4984_v58 = vadd.f32 %v4779_v53, %v6208_v34  ;;  %v2310_v50 = vpop.f32.mrb[51].mxu0 }
 0x274   : > { %v2489_v51 = vadd.f32 %v4983_v52, %v6239_v0  ;;  %v4985_v56 = vadd.f32 %v2310_v50, %v6210_v35  ;;  %4816 = vmatprep.mubr.msk.bf16.mxu1 %vm829_vm2, %v2730_v54 }
 0x275   : > { %v2555_v28 = vmax.f32 %v2491_v55, 0.0  ;;  %v2492_v57 = vadd.f32 %v4984_v58, %v6239_v0 }
 0x276   : > { %v2553_v61 = vmax.f32 %v2489_v51, 0.0  ;;  %v2490_v5 = vadd.f32 %v4985_v56, %v6239_v0 }
 0x277   : > { %2620 = vst.msk [vmem:[#allocation3 + $0x1a0] sm:$0xff] %vm829_vm2, %v2555_v28  ;;  %v2556_v29 = vmax.f32 %v2492_v57, 0.0  ;;  %v2680_v9 = vld [vmem:[#allocation3 + $0x170] sm:$0xff] }
 0x278   : > { %2618 = vst.msk [vmem:[#allocation3 + $0x190] sm:$0xff] %vm829_vm2, %v2553_v61  ;;  %v2554_v6 = vmax.f32 %v2490_v5, 0.0  ;;  %v4782_v34 = vpop.f32.mrb[52].mxu0 }
 0x279   : > { %2621 = vst.msk [vmem:[#allocation3 + $0x1a8] sm:$0xff] %vm829_vm2, %v2556_v29  ;;  %v4986_v7 = vadd.f32 %v4782_v34, %v6212_v44  ;;  %v2323_v35 = vpop.f32.mrb[53].mxu0  ;;  %v2681_v12 = vld [vmem:[#allocation3 + $0x178] sm:$0xff]  ;;  %v2634_v29 = vld [vmem:[#allocation3] sm:$0xff] }
 0x27a   : > { %2619 = vst.msk [vmem:[#allocation3 + $0x198] sm:$0xff] %vm829_vm2, %v2554_v6  ;;  %v4987_v13 = vadd.f32 %v2323_v35, %v6214_v45  ;;  %v4783_v14 = vpop.f32.mrb[54].mxu0  ;;  %v2731_v15 = vpack.c.bf16 %v2681_v12, %v2680_v9  ;;  %v2635_v6 = vld [vmem:[#allocation3 + $0x8] sm:$0xff] }
 0x27b   : > { %v2495_v18 = vadd.f32 %v4986_v7, %v6239_v0  ;;  %v4988_v62 = vadd.f32 %v4783_v14, %v6216_v1  ;;  %v2326_v3 = vpop.f32.mrb[55].mxu0  ;;  %v2639_v9 = vld [vmem:[#allocation3 + $0x28] sm:$0xff] }
 0x27c   : > { %v2493_v19 = vadd.f32 %v4987_v13, %v6239_v0  ;;  %v4989_v20 = vadd.f32 %v2326_v3, %v6218_v2  ;;  %4817 = vmatmul.mubr.msk.bf16.gmra.mrb[44].mxu1 %vm829_vm2, %v2731_v15  ;;  %v2643_v12 = vld [vmem:[#allocation3 + $0x48] sm:$0xff]  ;;  %v2638_v13 = vld [vmem:[#allocation3 + $0x20] sm:$0xff] }
 0x27d   : > { %v2559_v44 = vmax.f32 %v2495_v18, 0.0  ;;  %v2496_v21 = vadd.f32 %v4988_v62, %v6239_v0  ;;  %v6420_v14 = vpack.c.bf16 %v2639_v9, %v2638_v13  ;;  %v2642_v15 = vld [vmem:[#allocation3 + $0x40] sm:$0xff]  ;;  %v5260_v18 = vld [vmem:[%s6660_s3 + $0x28] sm:$0xff]  }
 0x27e   : > { %v2557_v4 = vmax.f32 %v2493_v19, 0.0  ;;  %v2494_v24 = vadd.f32 %v4989_v20, %v6239_v0  ;;  %v2702_v62 = vpack.c.bf16 %v2643_v12, %v2642_v15  ;;  %v5261_v3 = vld [vmem:[%s6662_s5 + $0x20] sm:$0xff]   ;;  %v2647_v19 = vld [vmem:[#allocation3 + $0x68] sm:$0xff] }
 0x27f   : > { %2624 = vst.msk [vmem:[#allocation3 + $0x1c0] sm:$0xff] %vm829_vm2, %v2559_v44  ;;  %v2560_v45 = vmax.f32 %v2496_v21, 0.0  ;;  %v2684_v30 = vld [vmem:[#allocation3 + $0x190] sm:$0xff]  ;;  %v2651_v20 = vld [vmem:[#allocation3 + $0x88] sm:$0xff]  ;;  %v2646_v44 = vld [vmem:[#allocation3 + $0x60] sm:$0xff] }
 0x280   : > { %2622 = vst.msk [vmem:[#allocation3 + $0x1b0] sm:$0xff] %vm829_vm2, %v2557_v4  ;;  %v2558_v10 = vmax.f32 %v2494_v24, 0.0  ;;  %v4786_v1 = vpop.f32.mrb[56].mxu0  ;;  %v2703_v21 = vpack.c.bf16 %v2647_v19, %v2646_v44  ;;  %v2650_v4 = vld [vmem:[#allocation3 + $0x80] sm:$0xff] }
 0x281   : > { %2625 = vst.msk [vmem:[#allocation3 + $0x1c8] sm:$0xff] %vm829_vm2, %v2560_v45  ;;  %v4990_v26 = vadd.f32 %v4786_v1, %v6220_v25  ;;  %v2339_v2 = vpop.f32.mrb[57].mxu0  ;;  %v2685_v32 = vld [vmem:[#allocation3 + $0x198] sm:$0xff]  ;;  %v2704_v24 = vpack.c.bf16 %v2651_v20, %v2650_v4  ;;  %v2659_v45 = vld [vmem:[#allocation3 + $0xc8] sm:$0xff] }
 0x282   : > { %2623 = vst.msk [vmem:[#allocation3 + $0x1b8] sm:$0xff] %vm829_vm2, %v2558_v10  ;;  %v4991_v33 = vadd.f32 %v2339_v2, %v6222_v27  ;;  %v4787_v36 = vpop.f32.mrb[58].mxu0  ;;  %v2732_v37 = vpack.c.bf16 %v2685_v32, %v2684_v30  ;;  %v2654_v10 = vld [vmem:[#allocation3 + $0xa0] sm:$0xff]  ;;  %v2663_v30 = vld [vmem:[#allocation3 + $0xe8] sm:$0xff] }
 0x283   : > { %v2499_v23 = vadd.f32 %v4990_v26, %v6239_v0  ;;  %v4992_v38 = vadd.f32 %v4787_v36, %v6224_v48  ;;  %v2342_v39 = vpop.f32.mrb[59].mxu0  ;;  %v2658_v26 = vld [vmem:[#allocation3 + $0xc0] sm:$0xff]  ;;  %v2667_v32 = vld [vmem:[#allocation3 + $0x108] sm:$0xff] }
 0x284   : > { %v2497_v11 = vadd.f32 %v4991_v33, %v6239_v0  ;;  %v4993_v40 = vadd.f32 %v2342_v39, %v6226_v49  ;;  %4820 = vmatprep.mubr.msk.bf16.mxu1 %vm829_vm2, %v2732_v37  ;;  %v2706_v2 = vpack.c.bf16 %v2659_v45, %v2658_v26  ;;  %v2662_v33 = vld [vmem:[#allocation3 + $0xe0] sm:$0xff]  ;;  %v2675_v39 = vld [vmem:[#allocation3 + $0x148] sm:$0xff] }
 0x285   : > { %v2563_v25 = vmax.f32 %v2499_v23, 0.0  ;;  %v2500_v41 = vadd.f32 %v4992_v38, %v6239_v0  ;;  %v2707_v36 = vpack.c.bf16 %v2663_v30, %v2662_v33  ;;  %v2666_v37 = vld [vmem:[#allocation3 + $0x100] sm:$0xff]  ;;  %v2671_v38 = vld [vmem:[#allocation3 + $0x128] sm:$0xff] }
 0x286   : > { %v2561_v16 = vmax.f32 %v2497_v11, 0.0  ;;  %v2498_v42 = vadd.f32 %v4993_v40, %v6239_v0  ;;  %v2708_v23 = vpack.c.bf16 %v2667_v32, %v2666_v37  ;;  %v2670_v11 = vld [vmem:[#allocation3 + $0x120] sm:$0xff] }
 0x287   : > { %2628 = vst.msk [vmem:[#allocation3 + $0x1e0] sm:$0xff] %vm829_vm2, %v2563_v25  ;;  %v2564_v27 = vmax.f32 %v2500_v41, 0.0  ;;  %v2688_v46 = vld [vmem:[#allocation3 + $0x1b0] sm:$0xff]  ;;  %v2709_v40 = vpack.c.bf16 %v2671_v38, %v2670_v11  ;;  %v2674_v25 = vld [vmem:[#allocation3 + $0x140] sm:$0xff] }
 0x288   : > { %2626 = vst.msk [vmem:[#allocation3 + $0x1d0] sm:$0xff] %vm829_vm2, %v2561_v16  ;;  %v2562_v43 = vmax.f32 %v2498_v42, 0.0  ;;  %v4790_v48 = vpop.f32.mrb[60].mxu0  ;;  %v2710_v41 = vpack.c.bf16 %v2675_v39, %v2674_v25  ;;  %v2679_v16 = vld [vmem:[#allocation3 + $0x168] sm:$0xff] }
 0x289   : > { %2629 = vst.msk [vmem:[#allocation3 + $0x1e8] sm:$0xff] %vm829_vm2, %v2564_v27  ;;  %v4994_v17 = vadd.f32 %v4790_v48, %v6228_v59  ;;  %v2355_v49 = vpop.f32.mrb[61].mxu0  ;;  %v2689_v47 = vld [vmem:[#allocation3 + $0x1b8] sm:$0xff]  ;;  %v2683_v42 = vld [vmem:[#allocation3 + $0x188] sm:$0xff]  ;;  %v2678_v27 = vld [vmem:[#allocation3 + $0x160] sm:$0xff] }
 0x28a   : > { %2627 = vst.msk [vmem:[#allocation3 + $0x1d8] sm:$0xff] %vm829_vm2, %v2562_v43  ;;  %v4995_v22 = vadd.f32 %v2355_v49, %v6230_v8  ;;  %v4791_v52 = vpop.f32.mrb[62].mxu0  ;;  %v2733_v53 = vpack.c.bf16 %v2689_v47, %v2688_v46  ;;  %v2711_v43 = vpack.c.bf16 %v2679_v16, %v2678_v27  ;;  %v2682_v48 = vld [vmem:[#allocation3 + $0x180] sm:$0xff]  ;;  %v2687_v49 = vld [vmem:[#allocation3 + $0x1a8] sm:$0xff] }
 0x28b   : > { %v2503_v54 = vadd.f32 %v4994_v17, %v6239_v0  ;;  %v4996_v55 = vadd.f32 %v4791_v52, %v6232_v60  ;;  %v2358_v58 = vpop.f32.mrb[63].mxu0  ;;  %v2712_v17 = vpack.c.bf16 %v2683_v42, %v2682_v48  ;;  %v2691_v46 = vld [vmem:[#allocation3 + $0x1c8] sm:$0xff]  ;;  %v2686_v47 = vld [vmem:[#allocation3 + $0x1a0] sm:$0xff] }
 0x28c   : > { %v2501_v50 = vadd.f32 %v4995_v22, %v6239_v0  ;;  %v4997_v51 = vadd.f32 %v2358_v58, %v6234_v63  ;;  %4821 = vmatmul.mubr.msk.bf16.gmra.mrb[48].mxu1 %vm829_vm2, %v2733_v53  ;;  %v2713_v22 = vpack.c.bf16 %v2687_v49, %v2686_v47  ;;  %v2690_v52 = vld [vmem:[#allocation3 + $0x1c0] sm:$0xff]  ;;  %v5266_v27 = vld [vmem:[%s6662_s5 + $0x8] sm:$0xff]  }
 0x28d   : > { %v2567_v59 = vmax.f32 %v2503_v54, 0.0  ;;  %v2504_v56 = vadd.f32 %v4996_v55, %v6239_v0  ;;  %v2714_v53 = vpack.c.bf16 %v2691_v46, %v2690_v52 }
 0x28e   : > { %v2565_v28 = vmax.f32 %v2501_v50, 0.0  ;;  %v2502_v57 = vadd.f32 %v4997_v51, %v6239_v0  ;;  %v2700_v0 = vpack.c.bf16 %v2635_v6, %v2634_v29  ;;  %v2694_v55 = vld [vmem:[#allocation3 + $0x1e0] sm:$0xff] }
 0x28f   : > { %2632 = vst.msk [vmem:[#allocation3 + $0x200] sm:$0xff] %vm829_vm2, %v2567_v59  ;;  %v2568_v8 = vmax.f32 %v2504_v56, 0.0  ;;  %v2692_v60 = vld [vmem:[#allocation3 + $0x1d0] sm:$0xff]  ;;  %v5262_v56 = vld [vmem:[%s6662_s5 + $0x28] sm:$0xff]  }
 0x290   : > { %2630 = vst.msk [vmem:[#allocation3 + $0x1f0] sm:$0xff] %vm829_vm2, %v2565_v28  ;;  %v2566_v61 = vmax.f32 %v2502_v57, 0.0  ;;  %v2695_v54 = vld [vmem:[#allocation3 + $0x1e8] sm:$0xff]  ;;  %v5263_v28 = vld [vmem:[%s6662_s5 + $0x30] sm:$0xff]   ;;  %v5264_v57 = vld [vmem:[%s6662_s5 + $0x38] sm:$0xff]  }
 0x291   : > { %2633 = vst.msk [vmem:[#allocation3 + $0x208] sm:$0xff] %vm829_vm2, %v2568_v8  ;;  %v2693_v5 = vld [vmem:[#allocation3 + $0x1d8] sm:$0xff]  ;;  %v2715_v58 = vpack.c.bf16 %v2695_v54, %v2694_v55  ;;  %v6474_v8 = vld [vmem:[%s6662_s5] sm:$0xff]   ;;  %v5267_v54 = vld [vmem:[%s6662_s5 + $0x10] sm:$0xff]  }
 0x292   : > { %2631 = vst.msk [vmem:[#allocation3 + $0x1f8] sm:$0xff] %vm829_vm2, %v2566_v61  ;;  %v2734_v63 = vpack.c.bf16 %v2693_v5, %v2692_v60  ;;  %v6480_v61 = vld [vmem:[%s6661_s4] ss:$0 sm:$0xff] }
 0x294   : > { %4824 = vmatprep.mubr.msk.bf16.mxu1 %vm829_vm2, %v2734_v63 }
 0x296   : > { %v2698_v51 = vld [vmem:[#allocation3 + $0x200] sm:$0xff] }
 0x297   : > { %v2696_v34 = vld [vmem:[#allocation3 + $0x1f0] sm:$0xff] }
 0x298   : > { %v2699_v50 = vld [vmem:[#allocation3 + $0x208] sm:$0xff] }
 0x299   : > { %v2697_v7 = vld [vmem:[#allocation3 + $0x1f8] sm:$0xff]  ;;  %v3183_v59 = vpack.c.bf16 %v2699_v50, %v2698_v51 }
 0x29a   : > { %v2735_v35 = vpack.c.bf16 %v2697_v7, %v2696_v34 }
 0x29c   : > { %4825 = vmatmul.mubr.msk.bf16.gmra.mrb[52].mxu1 %vm829_vm2, %v2735_v35 }
 0x29d   : > { %4832 = vmatprep.mubr.msk.bf16.mxu1 %vm829_vm2, %v2700_v0 }
 0x2a4   : > { %4833 = vmatmul.mubr.msk.bf16.vlgmr.msra.gmra.mrb[24].mxu1 %vm829_vm2, %v6420_v14 }
 0x2a5   : > { %4865 = vmatpush3.bf16.msra.mxu1 %v6278_v31  ;;  %4836 = vmatprep.mubr.msk.bf16.mxu1 %vm829_vm2, %v2702_v62  ;;  %v2655_v31 = vld [vmem:[#allocation3 + $0xa8] sm:$0xff] }
 0x2a6   : > { %4866 = vmatprep.subr.bf16.mxu1 %v5260_v18  ;;  %v2705_v1 = vpack.c.bf16 %v2655_v31, %v2654_v10 }
 0x2a9   : > { %4867 = vmatpush3.bf16.msra.mxu1 %v5260_v18 }
 0x2aa   : > { %4900 = vmatprep.subr.bf16.mxu1 %v5261_v3 }
 0x2ac   : > { %4837 = vmatmul.mubr.msk.bf16.gmra.mrb[28].mxu1 %vm829_vm2, %v2703_v21 }
 0x2ad   : > { %4840 = vmatprep.mubr.msk.bf16.mxu1 %vm829_vm2, %v2704_v24 }
 0x2b4   : > { %4841 = vmatmul.mubr.msk.bf16.gmra.mrb[32].mxu1 %vm829_vm2, %v2705_v1 }
 0x2b5   : > { %4844 = vmatprep.mubr.msk.bf16.mxu1 %vm829_vm2, %v2706_v2 }
 0x2bc   : > { %4845 = vmatmul.mubr.msk.bf16.gmra.mrb[36].mxu1 %vm829_vm2, %v2707_v36 }
 0x2bd   : > { %4848 = vmatprep.mubr.msk.bf16.mxu1 %vm829_vm2, %v2708_v23 }
 0x2c4   : > { %4849 = vmatmul.mubr.msk.bf16.gmra.mrb[40].mxu1 %vm829_vm2, %v2709_v40 }
 0x2c5   : > { %4852 = vmatprep.mubr.msk.bf16.mxu1 %vm829_vm2, %v2710_v41 }
 0x2cc   : > { %4853 = vmatmul.mubr.msk.bf16.gmra.mrb[44].mxu1 %vm829_vm2, %v2711_v43 }
 0x2cd   : > { %4856 = vmatprep.mubr.msk.bf16.mxu1 %vm829_vm2, %v2712_v17 }
 0x2d4   : > { %4857 = vmatmul.mubr.msk.bf16.gmra.mrb[48].mxu1 %vm829_vm2, %v2713_v22 }
 0x2d5   : > { %4860 = vmatprep.mubr.msk.bf16.mxu1 %vm829_vm2, %v2714_v53 }
 0x2dc   : > { %4861 = vmatmul.mubr.msk.bf16.gmra.mrb[52].mxu1 %vm829_vm2, %v2715_v58 }
 0x2dd   : > { %4868 = vmatprep.mubr.msk.bf16.mxu1 %vm829_vm2, %v6420_v14 }
 0x2e4   : > { %4869 = vmatmul.mubr.msk.bf16.vlgmr.msra.gmra.mrb[24].mxu1 %vm829_vm2, %v2702_v62 }
 0x2e5   : > { %4872 = vmatprep.mubr.msk.bf16.mxu1 %vm829_vm2, %v2703_v21  ;;  %4901 = vmatpush3.bf16.msra.mxu1 %v5261_v3 }
 0x2e6   : > { %4902 = vmatprep.subr.bf16.mxu1 %v5262_v56 }
 0x2e9   : > { %4903 = vmatpush3.bf16.msra.mxu1 %v5262_v56 }
 0x2ea   : > { %4904 = vmatprep.subr.bf16.mxu1 %v5263_v28 }
 0x2ec   : > { %4873 = vmatmul.mubr.msk.bf16.gmra.mrb[28].mxu1 %vm829_vm2, %v2704_v24 }
 0x2ed   : > { %4876 = vmatprep.mubr.msk.bf16.mxu1 %vm829_vm2, %v2705_v1  ;;  %4905 = vmatpush3.bf16.msra.mxu1 %v5263_v28  ;;  %v5268_v28 = vld [vmem:[%s6662_s5 + $0x18] sm:$0xff]  }
 0x2ee   : > { %4906 = vmatprep.subr.bf16.mxu1 %v5264_v57 }
 0x2f1   : > { %4907 = vmatpush3.bf16.msra.mxu1 %v5264_v57 }
 0x2f2   : > { %4924 = vmatprep.subr.bf16.mxu1 %v6474_v8 }
 0x2f4   : > { %4877 = vmatmul.mubr.msk.bf16.gmra.mrb[32].mxu1 %vm829_vm2, %v2706_v2 }
 0x2f5   : > { %4880 = vmatprep.mubr.msk.bf16.mxu1 %vm829_vm2, %v2707_v36 }
 0x2fc   : > { %4881 = vmatmul.mubr.msk.bf16.gmra.mrb[36].mxu1 %vm829_vm2, %v2708_v23 }
 0x2fd   : > { %4884 = vmatprep.mubr.msk.bf16.mxu1 %vm829_vm2, %v2709_v40 }
 0x304   : > { %4885 = vmatmul.mubr.msk.bf16.gmra.mrb[40].mxu1 %vm829_vm2, %v2710_v41 }
 0x305   : > { %4888 = vmatprep.mubr.msk.bf16.mxu1 %vm829_vm2, %v2711_v43 }
 0x30c   : > { %4889 = vmatmul.mubr.msk.bf16.gmra.mrb[44].mxu1 %vm829_vm2, %v2712_v17 }
 0x30d   : > { %4892 = vmatprep.mubr.msk.bf16.mxu1 %vm829_vm2, %v2713_v22 }
 0x314   : > { %4893 = vmatmul.mubr.msk.bf16.gmra.mrb[48].mxu1 %vm829_vm2, %v2714_v53 }
 0x315   : > { %4896 = vmatprep.mubr.msk.bf16.mxu1 %vm829_vm2, %v2715_v58 }
 0x31c   : > { %4897 = vmatmul.mubr.msk.bf16.gmra.mrb[52].mxu1 %vm829_vm2, %v3183_v59 }
 0x3b7   : > { %v4870_v60 = vpop.f32.mrb[24].mxu1 }
 0x3b8   : > { %v3406_v5 = vadd.f32 %v4870_v60, %v6480_v61  ;;  %v3238_v63 = vpop.f32.mrb[25].mxu1 }
 0x3b9   : > { %v3404_v29 = vadd.f32 %v6480_v61, %v3238_v63  ;;  %v4871_v6 = vpop.f32.mrb[26].mxu1 }
 0x3ba   : > { %v3438_v34 = vmax.f32 %v3406_v5, 0.0  ;;  %v3407_v7 = vadd.f32 %v4871_v6, %v6480_v61  ;;  %v3241_v0 = vpop.f32.mrb[27].mxu1 }
 0x3bb   : > { %v3436_v35 = vmax.f32 %v3404_v29, 0.0  ;;  %v3405_v9 = vadd.f32 %v6480_v61, %v3241_v0  ;;  %v6534_v0 = vld [vmem:[%s6662_s5 + $0x40] sm:$0xff]  }
 0x3bc   : > { %3471 = vst.msk [vmem:[#allocation4 + $0x20] sm:$0xff] %vm835_vm3, %v3438_v34  ;;  %v3439_v12 = vmax.f32 %v3407_v7, 0.0 }
 0x3bd   : > { %3469 = vst.msk [vmem:[#allocation4 + $0x10] sm:$0xff] %vm835_vm3, %v3436_v35  ;;  %v3437_v13 = vmax.f32 %v3405_v9, 0.0 }
 0x3be   : > { %3472 = vst.msk [vmem:[#allocation4 + $0x28] sm:$0xff] %vm835_vm3, %v3439_v12 }
 0x3bf   : > { %3470 = vst.msk [vmem:[#allocation4 + $0x18] sm:$0xff] %vm835_vm3, %v3437_v13  ;;  %v4874_v14 = vpop.f32.mrb[28].mxu1 }
 0x3c0   : > { %v3410_v15 = vadd.f32 %v4874_v14, %v6480_v61  ;;  %v3254_v18 = vpop.f32.mrb[29].mxu1 }
 0x3c1   : > { %v3408_v62 = vadd.f32 %v6480_v61, %v3254_v18  ;;  %v4875_v3 = vpop.f32.mrb[30].mxu1 }
 0x3c2   : > { %v3442_v19 = vmax.f32 %v3410_v15, 0.0  ;;  %v3411_v20 = vadd.f32 %v4875_v3, %v6480_v61  ;;  %v3257_v44 = vpop.f32.mrb[31].mxu1 }
 0x3c3   : > { %v3440_v21 = vmax.f32 %v3408_v62, 0.0  ;;  %v3409_v4 = vadd.f32 %v6480_v61, %v3257_v44 }
 0x3c4   : > { %3475 = vst.msk [vmem:[#allocation4 + $0x40] sm:$0xff] %vm835_vm3, %v3442_v19  ;;  %v3443_v24 = vmax.f32 %v3411_v20, 0.0  ;;  %v3503_v45 = vld [vmem:[#allocation4 + $0x10] sm:$0xff] }
 0x3c5   : > { %3473 = vst.msk [vmem:[#allocation4 + $0x30] sm:$0xff] %vm835_vm3, %v3440_v21  ;;  %v3441_v31 = vmax.f32 %v3409_v4, 0.0 }
 0x3c6   : > { %3476 = vst.msk [vmem:[#allocation4 + $0x48] sm:$0xff] %vm835_vm3, %v3443_v24  ;;  %v3504_v10 = vld [vmem:[#allocation4 + $0x18] sm:$0xff] }
 0x3c7   : > { %3474 = vst.msk [vmem:[#allocation4 + $0x38] sm:$0xff] %vm835_vm3, %v3441_v31  ;;  %v4878_v1 = vpop.f32.mrb[32].mxu1  ;;  %v3551_v26 = vpack.c.bf16 %v3504_v10, %v3503_v45 }
 0x3c8   : > { %v3414_v2 = vadd.f32 %v4878_v1, %v6480_v61  ;;  %v3270_v30 = vpop.f32.mrb[33].mxu1 }
 0x3c9   : > { %v3412_v32 = vadd.f32 %v6480_v61, %v3270_v30  ;;  %v4879_v33 = vpop.f32.mrb[34].mxu1  ;;  %4908 = vmatprep.mubr.msk.bf16.mxu1 %vm835_vm3, %v3551_v26 }
 0x3ca   : > { %v3446_v36 = vmax.f32 %v3414_v2, 0.0  ;;  %v3415_v37 = vadd.f32 %v4879_v33, %v6480_v61  ;;  %v3273_v23 = vpop.f32.mrb[35].mxu1 }
 0x3cb   : > { %v3444_v38 = vmax.f32 %v3412_v32, 0.0  ;;  %v3413_v39 = vadd.f32 %v6480_v61, %v3273_v23 }
 0x3cc   : > { %3479 = vst.msk [vmem:[#allocation4 + $0x60] sm:$0xff] %vm835_vm3, %v3446_v36  ;;  %v3447_v11 = vmax.f32 %v3415_v37, 0.0  ;;  %v3507_v25 = vld [vmem:[#allocation4 + $0x30] sm:$0xff] }
 0x3cd   : > { %3477 = vst.msk [vmem:[#allocation4 + $0x50] sm:$0xff] %vm835_vm3, %v3444_v38  ;;  %v3445_v40 = vmax.f32 %v3413_v39, 0.0 }
 0x3ce   : > { %3480 = vst.msk [vmem:[#allocation4 + $0x68] sm:$0xff] %vm835_vm3, %v3447_v11  ;;  %v3508_v41 = vld [vmem:[#allocation4 + $0x38] sm:$0xff] }
 0x3cf   : > { %3478 = vst.msk [vmem:[#allocation4 + $0x58] sm:$0xff] %vm835_vm3, %v3445_v40  ;;  %v4882_v16 = vpop.f32.mrb[36].mxu1  ;;  %v3552_v42 = vpack.c.bf16 %v3508_v41, %v3507_v25 }
 0x3d0   : > { %v3418_v43 = vadd.f32 %v4882_v16, %v6480_v61  ;;  %v3286_v48 = vpop.f32.mrb[37].mxu1 }
 0x3d1   : > { %v3416_v17 = vadd.f32 %v6480_v61, %v3286_v48  ;;  %v4883_v49 = vpop.f32.mrb[38].mxu1  ;;  %4909 = vmatmul.mubr.msk.bf16.vlgmr.msra.gmra.mrb[56].mxu1 %vm835_vm3, %v3552_v42 }
 0x3d2   : > { %v3450_v46 = vmax.f32 %v3418_v43, 0.0  ;;  %v3419_v47 = vadd.f32 %v4883_v49, %v6480_v61  ;;  %v3289_v22 = vpop.f32.mrb[39].mxu1  ;;  %4925 = vmatpush3.bf16.msra.mxu1 %v6474_v8 }
 0x3d3   : > { %v3448_v52 = vmax.f32 %v3416_v17, 0.0  ;;  %v3417_v53 = vadd.f32 %v6480_v61, %v3289_v22  ;;  %4926 = vmatprep.subr.bf16.mxu1 %v5266_v27 }
 0x3d4   : > { %3483 = vst.msk [vmem:[#allocation4 + $0x80] sm:$0xff] %vm835_vm3, %v3450_v46  ;;  %v3451_v55 = vmax.f32 %v3419_v47, 0.0  ;;  %v3511_v50 = vld [vmem:[#allocation4 + $0x50] sm:$0xff] }
 0x3d5   : > { %3481 = vst.msk [vmem:[#allocation4 + $0x70] sm:$0xff] %vm835_vm3, %v3448_v52  ;;  %v3449_v58 = vmax.f32 %v3417_v53, 0.0 }
 0x3d6   : > { %3484 = vst.msk [vmem:[#allocation4 + $0x88] sm:$0xff] %vm835_vm3, %v3451_v55  ;;  %v3512_v51 = vld [vmem:[#allocation4 + $0x58] sm:$0xff]  ;;  %4927 = vmatpush3.bf16.msra.mxu1 %v5266_v27 }
 0x3d7   : > { %3482 = vst.msk [vmem:[#allocation4 + $0x78] sm:$0xff] %vm835_vm3, %v3449_v58  ;;  %v4886_v59 = vpop.f32.mrb[40].mxu1  ;;  %v3553_v56 = vpack.c.bf16 %v3512_v51, %v3511_v50  ;;  %4928 = vmatprep.subr.bf16.mxu1 %v5267_v54 }
 0x3d8   : > { %v3422_v57 = vadd.f32 %v4886_v59, %v6480_v61  ;;  %v3302_v8 = vpop.f32.mrb[41].mxu1  ;;  %v3501_v59 = vld [vmem:[#allocation4] sm:$0xff] }
 0x3d9   : > { %v3420_v60 = vadd.f32 %v6480_v61, %v3302_v8  ;;  %v4887_v5 = vpop.f32.mrb[42].mxu1  ;;  %4912 = vmatprep.mubr.msk.bf16.mxu1 %vm835_vm3, %v3553_v56  ;;  %v3502_v56 = vld [vmem:[#allocation4 + $0x8] sm:$0xff] }
 0x3da   : > { %v3454_v63 = vmax.f32 %v3422_v57, 0.0  ;;  %v3423_v29 = vadd.f32 %v4887_v5, %v6480_v61  ;;  %v3305_v6 = vpop.f32.mrb[43].mxu1  ;;  %4929 = vmatpush3.bf16.msra.mxu1 %v5267_v54  ;;  %v3510_v5 = vld [vmem:[#allocation4 + $0x48] sm:$0xff] }
 0x3db   : > { %v3452_v34 = vmax.f32 %v3420_v60, 0.0  ;;  %v3421_v7 = vadd.f32 %v6480_v61, %v3305_v6  ;;  %4930 = vmatprep.subr.bf16.mxu1 %v5268_v28  ;;  %v3506_v60 = vld [vmem:[#allocation4 + $0x28] sm:$0xff]  ;;  %v3509_v6 = vld [vmem:[#allocation4 + $0x40] sm:$0xff] }
 0x3dc   : > { %3487 = vst.msk [vmem:[#allocation4 + $0xa0] sm:$0xff] %vm835_vm3, %v3454_v63  ;;  %v3455_v35 = vmax.f32 %v3423_v29, 0.0  ;;  %v3515_v12 = vld [vmem:[#allocation4 + $0x70] sm:$0xff]  ;;  %v3505_v63 = vld [vmem:[#allocation4 + $0x20] sm:$0xff] }
 0x3dd   : > { %3485 = vst.msk [vmem:[#allocation4 + $0x90] sm:$0xff] %vm835_vm3, %v3452_v34  ;;  %v3453_v9 = vmax.f32 %v3421_v7, 0.0  ;;  %v3536_v29 = vpack.c.bf16 %v3506_v60, %v3505_v63  ;;  %v5270_v34 = vld [vmem:[%s6662_s5 + $0x48] sm:$0xff]   ;;  %v3537_v7 = vpack.c.bf16 %v3510_v5, %v3509_v6 }
 0x3de   : > { %3488 = vst.msk [vmem:[#allocation4 + $0xa8] sm:$0xff] %vm835_vm3, %v3455_v35  ;;  %v3516_v13 = vld [vmem:[#allocation4 + $0x78] sm:$0xff]  ;;  %4931 = vmatpush3.bf16.msra.mxu1 %v5268_v28  ;;  %v5271_v35 = vld [vmem:[%s6662_s5 + $0x50] sm:$0xff]  }
 0x3df   : > { %3486 = vst.msk [vmem:[#allocation4 + $0x98] sm:$0xff] %vm835_vm3, %v3453_v9  ;;  %v4890_v14 = vpop.f32.mrb[44].mxu1  ;;  %v3554_v15 = vpack.c.bf16 %v3516_v13, %v3515_v12  ;;  %4948 = vmatprep.subr.bf16.mxu1 %v6534_v0  ;;  %v3514_v9 = vld [vmem:[#allocation4 + $0x68] sm:$0xff]  ;;  %v3513_v13 = vld [vmem:[#allocation4 + $0x60] sm:$0xff] }
 0x3e0   : > { %v3426_v18 = vadd.f32 %v4890_v14, %v6480_v61  ;;  %v3318_v62 = vpop.f32.mrb[45].mxu1  ;;  %v3518_v12 = vld [vmem:[#allocation4 + $0x88] sm:$0xff]  ;;  %v3538_v14 = vpack.c.bf16 %v3514_v9, %v3513_v13 }
 0x3e1   : > { %v3424_v3 = vadd.f32 %v6480_v61, %v3318_v62  ;;  %v4891_v19 = vpop.f32.mrb[46].mxu1  ;;  %4913 = vmatmul.mubr.msk.bf16.gmra.mrb[60].mxu1 %vm835_vm3, %v3554_v15  ;;  %v3517_v15 = vld [vmem:[#allocation4 + $0x80] sm:$0xff] }
 0x3e2   : > { %v3458_v20 = vmax.f32 %v3426_v18, 0.0  ;;  %v3427_v44 = vadd.f32 %v4891_v19, %v6480_v61  ;;  %v3321_v21 = vpop.f32.mrb[47].mxu1  ;;  %v5272_v18 = vld [vmem:[%s6662_s5 + $0x58] sm:$0xff]   ;;  %v3539_v62 = vpack.c.bf16 %v3518_v12, %v3517_v15 }
 0x3e3   : > { %v3456_v4 = vmax.f32 %v3424_v3, 0.0  ;;  %v3425_v24 = vadd.f32 %v6480_v61, %v3321_v21  ;;  %v3521_v19 = vld [vmem:[#allocation4 + $0xa0] sm:$0xff] }
 0x3e4   : > { %3491 = vst.msk [vmem:[#allocation4 + $0xc0] sm:$0xff] %vm835_vm3, %v3458_v20  ;;  %v3459_v31 = vmax.f32 %v3427_v44, 0.0  ;;  %v3519_v10 = vld [vmem:[#allocation4 + $0x90] sm:$0xff] }
 0x3e5   : > { %3489 = vst.msk [vmem:[#allocation4 + $0xb0] sm:$0xff] %vm835_vm3, %v3456_v4  ;;  %v3457_v45 = vmax.f32 %v3425_v24, 0.0 }
 0x3e6   : > { %3492 = vst.msk [vmem:[#allocation4 + $0xc8] sm:$0xff] %vm835_vm3, %v3459_v31  ;;  %v3520_v1 = vld [vmem:[#allocation4 + $0x98] sm:$0xff] }
 0x3e7   : > { %3490 = vst.msk [vmem:[#allocation4 + $0xb8] sm:$0xff] %vm835_vm3, %v3457_v45  ;;  %v4894_v26 = vpop.f32.mrb[48].mxu1  ;;  %v3555_v2 = vpack.c.bf16 %v3520_v1, %v3519_v10 }
 0x3e8   : > { %v3430_v30 = vadd.f32 %v4894_v26, %v6480_v61  ;;  %v3334_v32 = vpop.f32.mrb[49].mxu1  ;;  %v4397_v26 = vld [vmem:[%s6663_s6] ss:$0 sm:$0xff] }
 0x3e9   : > { %v3428_v33 = vadd.f32 %v6480_v61, %v3334_v32  ;;  %v4895_v36 = vpop.f32.mrb[50].mxu1  ;;  %4916 = vmatprep.mubr.msk.bf16.mxu1 %vm835_vm3, %v3555_v2 }
 0x3ea   : > { %v3462_v37 = vmax.f32 %v3430_v30, 0.0  ;;  %v3431_v23 = vadd.f32 %v4895_v36, %v6480_v61  ;;  %v3337_v38 = vpop.f32.mrb[51].mxu1 }
 0x3eb   : > { %v3460_v39 = vmax.f32 %v3428_v33, 0.0  ;;  %v3429_v11 = vadd.f32 %v6480_v61, %v3337_v38  ;;  %v3525_v44 = vld [vmem:[#allocation4 + $0xc0] sm:$0xff] }
 0x3ec   : > { %3495 = vst.msk [vmem:[#allocation4 + $0xe0] sm:$0xff] %vm835_vm3, %v3462_v37  ;;  %v3463_v40 = vmax.f32 %v3431_v23, 0.0  ;;  %v3523_v41 = vld [vmem:[#allocation4 + $0xb0] sm:$0xff] }
 0x3ed   : > { %3493 = vst.msk [vmem:[#allocation4 + $0xd0] sm:$0xff] %vm835_vm3, %v3460_v39  ;;  %v3461_v25 = vmax.f32 %v3429_v11, 0.0  ;;  %v3526_v3 = vld [vmem:[#allocation4 + $0xc8] sm:$0xff] }
 0x3ee   : > { %3496 = vst.msk [vmem:[#allocation4 + $0xe8] sm:$0xff] %vm835_vm3, %v3463_v40  ;;  %v3524_v16 = vld [vmem:[#allocation4 + $0xb8] sm:$0xff]  ;;  %v3541_v21 = vpack.c.bf16 %v3526_v3, %v3525_v44 }
 0x3ef   : > { %3494 = vst.msk [vmem:[#allocation4 + $0xd8] sm:$0xff] %vm835_vm3, %v3461_v25  ;;  %v4898_v42 = vpop.f32.mrb[52].mxu1  ;;  %v3556_v27 = vpack.c.bf16 %v3524_v16, %v3523_v41 }
 0x3f0   : > { %v3434_v43 = vadd.f32 %v4898_v42, %v6480_v61  ;;  %v3350_v48 = vpop.f32.mrb[53].mxu1 }
 0x3f1   : > { %v3432_v17 = vadd.f32 %v6480_v61, %v3350_v48  ;;  %v4899_v49 = vpop.f32.mrb[54].mxu1  ;;  %4917 = vmatmul.mubr.msk.bf16.gmra.mrb[64].mxu1 %vm835_vm3, %v3556_v27 }
 0x3f2   : > { %v3466_v46 = vmax.f32 %v3434_v43, 0.0  ;;  %v3435_v47 = vadd.f32 %v4899_v49, %v6480_v61  ;;  %v3353_v22 = vpop.f32.mrb[55].mxu1 }
 0x3f3   : > { %v3464_v52 = vmax.f32 %v3432_v17, 0.0  ;;  %v3433_v53 = vadd.f32 %v6480_v61, %v3353_v22  ;;  %v3535_v61 = vpack.c.bf16 %v3502_v56, %v3501_v59  ;;  %v3529_v24 = vld [vmem:[#allocation4 + $0xe0] sm:$0xff] }
 0x3f4   : > { %3499 = vst.msk [vmem:[#allocation4 + $0x100] sm:$0xff] %vm835_vm3, %v3466_v46  ;;  %v3467_v54 = vmax.f32 %v3435_v47, 0.0  ;;  %v3527_v58 = vld [vmem:[#allocation4 + $0xd0] sm:$0xff] }
 0x3f5   : > { %3497 = vst.msk [vmem:[#allocation4 + $0xf0] sm:$0xff] %vm835_vm3, %v3464_v52  ;;  %v3465_v55 = vmax.f32 %v3433_v53, 0.0  ;;  %v3530_v4 = vld [vmem:[#allocation4 + $0xe8] sm:$0xff] }
 0x3f6   : > { %3500 = vst.msk [vmem:[#allocation4 + $0x108] sm:$0xff] %vm835_vm3, %v3467_v54  ;;  %v3528_v50 = vld [vmem:[#allocation4 + $0xd8] sm:$0xff]  ;;  %v3542_v31 = vpack.c.bf16 %v3530_v4, %v3529_v24 }
 0x3f7   : > { %3498 = vst.msk [vmem:[#allocation4 + $0xf8] sm:$0xff] %vm835_vm3, %v3465_v55  ;;  %v3557_v51 = vpack.c.bf16 %v3528_v50, %v3527_v58 }
 0x3f9   : > { %4920 = vmatprep.mubr.msk.bf16.mxu1 %vm835_vm3, %v3557_v51 }
 0x3fb   : > { %v3533_v10 = vld [vmem:[#allocation4 + $0x100] sm:$0xff] }
 0x3fc   : > { %v3531_v28 = vld [vmem:[#allocation4 + $0xf0] sm:$0xff] }
 0x3fd   : > { %v3534_v45 = vld [vmem:[#allocation4 + $0x108] sm:$0xff] }
 0x3fe   : > { %v3532_v57 = vld [vmem:[#allocation4 + $0xf8] sm:$0xff]  ;;  %v3858_v1 = vpack.c.bf16 %v3534_v45, %v3533_v10 }
 0x3ff   : > { %v3558_v8 = vpack.c.bf16 %v3532_v57, %v3531_v28 }
 0x401   : > { %4921 = vmatmul.mubr.msk.bf16.gmra.mrb[68].mxu1 %vm835_vm3, %v3558_v8 }
 0x402   : > { %4932 = vmatprep.mubr.msk.bf16.mxu1 %vm835_vm3, %v3535_v61 }
 0x409   : > { %4933 = vmatmul.mubr.msk.bf16.vlgmr.msra.gmra.mrb[56].mxu1 %vm835_vm3, %v3536_v29 }
 0x40a   : > { %4949 = vmatpush3.bf16.msra.mxu1 %v6534_v0  ;;  %4936 = vmatprep.mubr.msk.bf16.mxu1 %vm835_vm3, %v3537_v7  ;;  %v3522_v0 = vld [vmem:[#allocation4 + $0xa8] sm:$0xff] }
 0x40b   : > { %4950 = vmatprep.subr.bf16.mxu1 %v5270_v34  ;;  %v3540_v20 = vpack.c.bf16 %v3522_v0, %v3521_v19 }
 0x40e   : > { %4951 = vmatpush3.bf16.msra.mxu1 %v5270_v34 }
 0x40f   : > { %4952 = vmatprep.subr.bf16.mxu1 %v5271_v35 }
 0x411   : > { %4937 = vmatmul.mubr.msk.bf16.gmra.mrb[60].mxu1 %vm835_vm3, %v3538_v14 }
 0x412   : > { %4940 = vmatprep.mubr.msk.bf16.mxu1 %vm835_vm3, %v3539_v62  ;;  %4953 = vmatpush3.bf16.msra.mxu1 %v5271_v35 }
 0x413   : > { %4954 = vmatprep.subr.bf16.mxu1 %v5272_v18 }
 0x416   : > { %4955 = vmatpush3.bf16.msra.mxu1 %v5272_v18 }
 0x419   : > { %4941 = vmatmul.mubr.msk.bf16.gmra.mrb[64].mxu1 %vm835_vm3, %v3540_v20 }
 0x41a   : > { %4944 = vmatprep.mubr.msk.bf16.mxu1 %vm835_vm3, %v3541_v21 }
 0x421   : > { %4945 = vmatmul.mubr.msk.bf16.gmra.mrb[68].mxu1 %vm835_vm3, %v3542_v31 }
 0x422   : > { %4956 = vmatprep.mubr.msk.bf16.mxu1 %vm835_vm3, %v3536_v29 }
 0x429   : > { %4957 = vmatmul.mubr.msk.bf16.vlgmr.msra.gmra.mrb[56].mxu1 %vm835_vm3, %v3537_v7 }
 0x42a   : > { %4960 = vmatprep.mubr.msk.bf16.mxu1 %vm835_vm3, %v3538_v14 }
 0x431   : > { %4961 = vmatmul.mubr.msk.bf16.gmra.mrb[60].mxu1 %vm835_vm3, %v3539_v62 }
 0x432   : > { %4964 = vmatprep.mubr.msk.bf16.mxu1 %vm835_vm3, %v3540_v20 }
 0x439   : > { %4965 = vmatmul.mubr.msk.bf16.gmra.mrb[64].mxu1 %vm835_vm3, %v3541_v21 }
 0x43a   : > { %4968 = vmatprep.mubr.msk.bf16.mxu1 %vm835_vm3, %v3542_v31 }
 0x441   : > { %4969 = vmatmul.mubr.msk.bf16.gmra.mrb[68].mxu1 %vm835_vm3, %v3858_v1 }
 0x4fc   : > { %v4958_v2 = vpop.f32.mrb[56].mxu1 }
 0x4fd   : > { %v4017_v30 = vadd.f32 %v4958_v2, %v4397_v26  ;;  %v3929_v32 = vpop.f32.mrb[57].mxu1 }
 0x4fe   : > { %v4015_v33 = vadd.f32 %v4397_v26, %v3929_v32  ;;  %v4959_v36 = vpop.f32.mrb[58].mxu1 }
 0x4ff   : > { %v4033_v37 = vmax.f32 %v4017_v30, 0.0  ;;  %v4018_v23 = vadd.f32 %v4959_v36, %v4397_v26  ;;  %v3932_v38 = vpop.f32.mrb[59].mxu1 }
 0x500   : > { %v4031_v39 = vmax.f32 %v4015_v33, 0.0  ;;  %v4016_v11 = vadd.f32 %v4397_v26, %v3932_v38 }
 0x501   : > { %4049 = vst [vmem:[%s6600_s19 + $0x10] sm:$0xff] %v4033_v37  ;;  %v4034_v40 = vmax.f32 %v4018_v23, 0.0 }
 0x502   : > { %4047 = vst [vmem:[%s6600_s19] sm:$0xff] %v4031_v39  ;;  %v4032_v25 = vmax.f32 %v4016_v11, 0.0 }
 0x503   : > { %4050 = vst [vmem:[%s6600_s19 + $0x18] sm:$0xff] %v4034_v40 }
 0x504   : > { %4048 = vst [vmem:[%s6600_s19 + $0x8] sm:$0xff] %v4032_v25  ;;  %v4962_v41 = vpop.f32.mrb[60].mxu1 }
 0x505   : > { %v4021_v16 = vadd.f32 %v4962_v41, %v4397_v26  ;;  %v3945_v42 = vpop.f32.mrb[61].mxu1 }
 0x506   : > { %v4019_v27 = vadd.f32 %v4397_v26, %v3945_v42  ;;  %v4963_v43 = vpop.f32.mrb[62].mxu1 }
 0x507   : > { %v4037_v48 = vmax.f32 %v4021_v16, 0.0  ;;  %v4022_v17 = vadd.f32 %v4963_v43, %v4397_v26  ;;  %v3948_v49 = vpop.f32.mrb[63].mxu1 }
 0x508   : > { %v4035_v46 = vmax.f32 %v4019_v27, 0.0  ;;  %v4020_v47 = vadd.f32 %v4397_v26, %v3948_v49 }
 0x509   : > { %4053 = vst [vmem:[%s6600_s19 + $0x30] sm:$0xff] %v4037_v48  ;;  %v4038_v22 = vmax.f32 %v4022_v17, 0.0 }
 0x50a   : > { %4051 = vst [vmem:[%s6600_s19 + $0x20] sm:$0xff] %v4035_v46  ;;  %v4036_v52 = vmax.f32 %v4020_v47, 0.0 }
 0x50b   : > { %4054 = vst [vmem:[%s6600_s19 + $0x38] sm:$0xff] %v4038_v22 }
 0x50c   : > { %4052 = vst [vmem:[%s6600_s19 + $0x28] sm:$0xff] %v4036_v52  ;;  %v4966_v53 = vpop.f32.mrb[64].mxu1 }
 0x50d   : > { %v4025_v54 = vadd.f32 %v4966_v53, %v4397_v26  ;;  %v3961_v55 = vpop.f32.mrb[65].mxu1 }
 0x50e   : > { %v4023_v58 = vadd.f32 %v4397_v26, %v3961_v55  ;;  %v4967_v50 = vpop.f32.mrb[66].mxu1 }
 0x50f   : > { %v4041_v51 = vmax.f32 %v4025_v54, 0.0  ;;  %v4026_v59 = vadd.f32 %v4967_v50, %v4397_v26  ;;  %v3964_v56 = vpop.f32.mrb[67].mxu1 }
 0x510   : > { %v4039_v28 = vmax.f32 %v4023_v58, 0.0  ;;  %v4024_v57 = vadd.f32 %v4397_v26, %v3964_v56 }
 0x511   : > { %4057 = vst [vmem:[%s6600_s19 + $0x50] sm:$0xff] %v4041_v51  ;;  %v4042_v61 = vmax.f32 %v4026_v59, 0.0 }
 0x512   : > { %4055 = vst [vmem:[%s6600_s19 + $0x40] sm:$0xff] %v4039_v28  ;;  %v4040_v8 = vmax.f32 %v4024_v57, 0.0 }
 0x513   : > { %4058 = vst [vmem:[%s6600_s19 + $0x58] sm:$0xff] %v4042_v61 }
 0x514   : > { %4056 = vst [vmem:[%s6600_s19 + $0x48] sm:$0xff] %v4040_v8  ;;  %v4970_v60 = vpop.f32.mrb[68].mxu1 }
 0x515   : > { %v4029_v5 = vadd.f32 %v4970_v60, %v4397_v26  ;;  %v3977_v63 = vpop.f32.mrb[69].mxu1 }
 0x516   : > { %v4027_v29 = vadd.f32 %v4397_v26, %v3977_v63  ;;  %v4971_v6 = vpop.f32.mrb[70].mxu1 }
 0x517   : > { %v4045_v34 = vmax.f32 %v4029_v5, 0.0  ;;  %v4030_v7 = vadd.f32 %v4971_v6, %v4397_v26  ;;  %v3980_v35 = vpop.f32.mrb[71].mxu1 }
 0x518   : > { %v4043_v9 = vmax.f32 %v4027_v29, 0.0  ;;  %v4028_v12 = vadd.f32 %v4397_v26, %v3980_v35 }
 0x519   : > { %4061 = vst [vmem:[%s6600_s19 + $0x70] sm:$0xff] %v4045_v34  ;;  %v4046_v13 = vmax.f32 %v4030_v7, 0.0 }
 0x51a   : > { %4059 = vst [vmem:[%s6600_s19 + $0x60] sm:$0xff] %v4043_v9  ;;  %v4044_v14 = vmax.f32 %v4028_v12, 0.0 }
 0x51b   : > { %4062 = vst [vmem:[%s6600_s19 + $0x78] sm:$0xff] %v4046_v13 }
 0x51c   : > { %4060 = vst [vmem:[%s6600_s19 + $0x68] sm:$0xff] %v4044_v14 }
 0x51d   : > { %s4404_s21 = sshll.u32 %s4173_s28, 8  ;;  %s4093_s23 = sshll.u32 %s6600_s19, 4  ;;  %s4094_s23 = int_to_ptr.vmem [resolvable:$true] %s4093_s23 }
 0x51e   : > { %s4076_s9 = scalar_lea.hbm %s6664_s7, %s4404_s21  ;;  %s5310_s13 = smov 256  }
 0x51f   : > { %5202 = sst [smem:[#allocation9]] (%p5395_p6), %s5310_s13  ;;  %s5311_s22 = smov 512  }
 0x520   : > { %5203 = sst [smem:[#allocation9 + $0x1]] (%p5395_p6), %s5311_s22  ;;  %s5312_s14 = smov 2  }
 0x521   : > { %5204 = sst [smem:[#allocation9 + $0x2]] (%p5395_p6), %s5312_s14  ;;  %s5313_s15 = smov 128  }
 0x522   : > { %5205 = sst [smem:[#allocation9 + $0x3]] (%p5395_p6), %s5313_s15  ;;  %s5314_s28 = smov 8  }
 0x523   : > { %5206 = sst [smem:[#allocation9 + $0x4]] (%p5395_p6), %s5313_s15  ;;  %s5315_s16 = smov [#allocation8]  }
 0x524   : > { %5207 = sst [smem:[#allocation9 + $0x5]] (%p5395_p6), %s5314_s28  ;;  %s5316_s17 = smov 0  }
 0x525   : > { %5208 = dma.general (%p5395_p6), %s4094_s23, 2048, %s4076_s9, %s4064_s20, %s5315_s16, [#allocation9], %s5316_s17, 0  }
 0x526 PF: > { %s4121_s18 = sand.u32 1, %s5295_s24   ;;  %p5211_p13 = pnand %p4176_p9, %p5399_p8 }
 0x527   : > { %s4122_s19 = scalar_lea.sflag [#allocation7], %s4121_s18 }
 0x528   : > { %5290 = dma.done.wait (!%p5211_p13), %s4122_s19, 2048  }
 0x529   : > { %5292 = vsyncadd (!%p5211_p13), %s4122_s19, 4294965248  ;;  %p17_p0 = scmp.ge.s32.totalorder %s5380_s30, 4   ;;  %s6667_s24 = smov %s5299_s25 }
 0x52a   : > { %s6668_s25 = smov %s5303_s26  ;;  %s6669_s26 = smov %s5393_s10 }
 0x52b   : > { %s6670_s27 = smov %s5380_s30  ;;  %19 = sbr.rel (!%p17_p0) target bundleno = 3 (0x3), region = 143 }
 0x532   :  { %4127 = vsyncpa [#allocation7], 1 }
 0x533   :  { %4129 = vsyncpa [#allocation7 + $0x1], 1 }

</bundles_post_ra>
